<compile_context>
chip_gen: v6e
topology: v6e:2x2x1
jax: 0.10.0
libtpu: 0.0.40
codegen_flags: <defaults>
</compile_context>

<pallas_src>
from functools import partial

import jax
import jax.numpy as jnp
from jax import lax
from jax.experimental import pallas as pl
from jax.experimental.pallas import tpu as pltpu

EPS = 1e-5
TILE_M = 512                      # conv output-tile width (lane axis)
BN_TILE_M = 2048                  # tile width for the halo-free BN/residual pass
VMEM_LIMIT = 48 * 1024 * 1024     # scoped-VMEM budget (safe on v5e/v6e/v7x)


def _round_up(v, m):
    return ((v + m - 1) // m) * m


# ---------------------------------------------------------------------------
# Pallas kernel 1: 3x3x3 conv on a manually-DMA'd halo window, 3 tap-group MXU
# matmuls, optional fused (bn + ReLU + pad-mask) on the input window, plus
# per-tile masked BN partial statistics computed on the MXU.
# ---------------------------------------------------------------------------
def _conv_tap_kernel(x_hbm, m_hbm, w_ref, scin_ref, shin_ref,
                     y_ref, sum_ref, sq_ref,
                     xwin, mwin, sems, *,
                     gpad, tile_m, offsets, x_left, apply_input_affine):
    # x_hbm   : (Cin, Mx)  bf16 HBM ref, >= gpad of slack on each side
    # m_hbm   : (1, mtot + 2*gpad) f32 HBM ref (validity mask, gpad slack)
    # w_ref   : (3, Cout, 9*Cin) bf16  per-kd tap-group weights (fetched once)
    # scin/shin: (Cin, 1) f32 folded bn1 affine (used only when fused, stage 2)
    # y_ref   : (Cout, tile_m)  raw conv output tile (lane dense)
    # sum/sq  : (1, Cout, 1) f32 per-tile masked partial statistics
    # xwin    : VMEM (Cin, tile_m + 2*gpad) bf16 halo'd input window
    # mwin    : VMEM (1, tile_m + 2*gpad) f32 halo'd mask window
    i = pl.program_id(0)
    win = tile_m + 2 * gpad
    x_start = pl.multiple_of(x_left + i * tile_m, 128)
    m_start = pl.multiple_of(i * tile_m, 128)
    cx = pltpu.make_async_copy(x_hbm.at[:, pl.ds(x_start, win)], xwin, sems.at[0])
    cm = pltpu.make_async_copy(m_hbm.at[:, pl.ds(m_start, win)], mwin, sems.at[1])
    cx.start()
    cm.start()
    cx.wait()
    cm.wait()

    xw = xwin[...]                                       # (Cin, win) bf16
    if apply_input_affine:
        # fused bn1 + ReLU + conv-padding mask, applied on the halo'd window.
        # jnp.where (not multiply) so uninitialized border garbage in the
        # stage-1 output buffer can never propagate (even if NaN/Inf).
        hf = jnp.maximum(
            xw.astype(jnp.float32) * scin_ref[...] + shin_ref[...], 0.0)
        xw = jnp.where(mwin[...] > 0.0, hf, 0.0).astype(jnp.bfloat16)

    # 3 tap groups (one per kd): 9 shifted bf16 slices -> one MXU matmul each,
    # accumulated in f32.  Slices stay in bf16 end-to-end (no f32 round trip).
    acc = None
    for g in range(3):
        offs = offsets[9 * g: 9 * (g + 1)]
        slab = jnp.concatenate(
            [xw[:, gpad + o: gpad + o + tile_m] for o in offs], axis=0)
        part = jnp.dot(w_ref[g], slab, preferred_element_type=jnp.float32)
        acc = part if acc is None else acc + part
    y_ref[...] = acc.astype(y_ref.dtype)

    # Masked partial stats via MXU (lane reduction as matmul against ones),
    # keeping the XLU free for the tap-slice lane rotations.
    mrow = mwin[:, gpad: gpad + tile_m]                  # (1, tile_m)
    ym = jnp.where(mrow > 0.0, acc, 0.0)
    ones_rhs = jnp.ones((tile_m, 128), jnp.float32)
    sum_ref[0] = jnp.dot(ym, ones_rhs,
                         preferred_element_type=jnp.float32)[:, 0:1]
    sq_ref[0] = jnp.dot(ym * acc, ones_rhs,
                        preferred_element_type=jnp.float32)[:, 0:1]


def _conv_stage(x_hbm, mask_hbm, w3, sc_in, sh_in, *, cin_p, cout_p,
                num_tiles, gpad, offsets, x_left, out_cols, out_block_off,
                out_dtype, apply_input_affine):
    win = TILE_M + 2 * gpad
    kernel = partial(_conv_tap_kernel, gpad=gpad, tile_m=TILE_M,
                     offsets=tuple(offsets), x_left=x_left,
                     apply_input_affine=apply_input_affine)
    return pl.pallas_call(
        kernel,
        out_shape=(
            jax.ShapeDtypeStruct((cout_p, out_cols), out_dtype),
            jax.ShapeDtypeStruct((num_tiles, cout_p, 1), jnp.float32),
            jax.ShapeDtypeStruct((num_tiles, cout_p, 1), jnp.float32),
        ),
        grid=(num_tiles,),
        in_specs=[
            pl.BlockSpec(memory_space=pl.ANY),                      # x (HBM)
            pl.BlockSpec(memory_space=pl.ANY),                      # mask (HBM)
            pl.BlockSpec((3, cout_p, 9 * cin_p), lambda i: (0, 0, 0)),
            pl.BlockSpec((cin_p, 1), lambda i: (0, 0)),
            pl.BlockSpec((cin_p, 1), lambda i: (0, 0)),
        ],
        out_specs=(
            pl.BlockSpec((cout_p, TILE_M), lambda i: (0, i + out_block_off)),
            pl.BlockSpec((1, cout_p, 1), lambda i: (i, 0, 0)),
            pl.BlockSpec((1, cout_p, 1), lambda i: (i, 0, 0)),
        ),
        scratch_shapes=[
            pltpu.VMEM((cin_p, win), jnp.bfloat16),
            pltpu.VMEM((1, win), jnp.float32),
            pltpu.SemaphoreType.DMA((2,)),
        ],
        compiler_params=pltpu.CompilerParams(
            dimension_semantics=("parallel",),
            vmem_limit_bytes=VMEM_LIMIT),
    )(x_hbm, mask_hbm, w3, sc_in, sh_in)


# ---------------------------------------------------------------------------
# Pallas kernel 2: final bn2 affine (precomputed scale/shift) + residual + ReLU
# ---------------------------------------------------------------------------
def _bn_res_relu_kernel(y_ref, sc_ref, sh_ref, r_ref, o_ref):
    o_ref[...] = jnp.maximum(
        y_ref[...] * sc_ref[...] + sh_ref[...] + r_ref[...], 0.0)


def _bn_res_relu(y, scale, shift, resid, *, tile_m):
    c, mtot = y.shape
    nt = mtot // tile_m
    return pl.pallas_call(
        _bn_res_relu_kernel,
        out_shape=jax.ShapeDtypeStruct((c, mtot), jnp.float32),
        grid=(nt,),
        in_specs=[
            pl.BlockSpec((c, tile_m), lambda i: (0, i)),
            pl.BlockSpec((c, 1), lambda i: (0, 0)),
            pl.BlockSpec((c, 1), lambda i: (0, 0)),
            pl.BlockSpec((c, tile_m), lambda i: (0, i)),
        ],
        out_specs=pl.BlockSpec((c, tile_m), lambda i: (0, i)),
        compiler_params=pltpu.CompilerParams(
            dimension_semantics=("parallel",),
            vmem_limit_bytes=VMEM_LIMIT),
    )(y, scale, shift, resid)


# ---------------------------------------------------------------------------
# Plain-JAX glue
# ---------------------------------------------------------------------------
def _bn_scale_shift(psum, psq, gamma, beta, count):
    # NOTE: E[x^2]-E[x]^2 in f32; partials are per-tile so cancellation is mild
    # at these sizes; clamped to 0 for safety (biased variance, BN forward).
    s = jnp.sum(psum[:, :, 0], axis=0)
    q = jnp.sum(psq[:, :, 0], axis=0)
    mean = s / count
    var = jnp.maximum(q / count - mean * mean, 0.0)
    scale = gamma * lax.rsqrt(var + EPS)
    shift = beta - mean * scale
    return scale.reshape(-1, 1), shift.reshape(-1, 1)


def _weight_groups(wt, cin_p, cout_p):
    # (Cout, Cin, 3, 3, 3) -> (3, cout_p, 9*cin_p); group = kd, column index =
    # ((kh*3)+kw)*cin_p + cin, matching the kernel's tap/slab ordering.
    cout, cin = wt.shape[0], wt.shape[1]
    wp_ = jnp.zeros((cout_p, cin_p, 3, 3, 3), wt.dtype).at[:cout, :cin].set(wt)
    wg = jnp.transpose(wp_, (2, 0, 3, 4, 1)).reshape(3, cout_p, 9 * cin_p)
    return wg.astype(jnp.bfloat16)


def _pad_vec(v, n):
    return jnp.zeros((n,), jnp.float32).at[:v.shape[0]].set(v)


@jax.jit
def basic_block_forward(x, w1, g1, b1, w2, g2, b2):
    n, cin, d, h, w = x.shape
    planes = w1.shape[0]
    assert cin == planes, "downsample=None path requires in_planes == planes"
    cin_p = _round_up(cin, 16)
    cout_p = _round_up(planes, 16)
    dp, hp, wp = d + 2, h + 2, w + 2
    lp = dp * hp * wp
    m_flat = n * lp
    m_valid = float(n * d * h * w)
    mtot = _round_up(m_flat, BN_TILE_M)            # multiple of TILE_M too
    num_tiles = mtot // TILE_M
    guard = hp * wp + wp + 1                       # max |tap offset|
    gpad = _round_up(guard, 128)                   # 128-aligned halo width
    tpad = _round_up(gpad, TILE_M)                 # TILE-aligned slack for y1
    offsets = tuple((kd - 1) * hp * wp + (kh - 1) * wp + (kw - 1)
                    for kd in range(3) for kh in range(3) for kw in range(3))

    # channels-major, spatially padded, flattened layout (C, mtot)
    x_cm = jnp.transpose(x, (1, 0, 2, 3, 4))
    x_cm = jnp.pad(x_cm, ((0, cin_p - cin), (0, 0), (1, 1), (1, 1), (1, 1)))
    x_flat = jnp.pad(x_cm.reshape(cin_p, m_flat),
                     ((0, 0), (0, mtot - m_flat)))            # f32 residual
    x_hbm = jnp.pad(x_flat, ((0, 0), (gpad, gpad))).astype(jnp.bfloat16)

    mask = jnp.pad(jnp.ones((n, d, h, w), jnp.float32),
                   ((0, 0), (1, 1), (1, 1), (1, 1))).reshape(1, m_flat)
    mask = jnp.pad(mask, ((0, 0), (0, mtot - m_flat)))
    mask_hbm = jnp.pad(mask, ((0, 0), (gpad, gpad)))

    w1g = _weight_groups(w1, cin_p, cout_p)
    w2g = _weight_groups(w2, cout_p, cout_p)
    g1p, b1p = _pad_vec(g1, cout_p), _pad_vec(b1, cout_p)
    g2p, b2p = _pad_vec(g2, cout_p), _pad_vec(b2, cout_p)
    zeros_c = jnp.zeros((cin_p, 1), jnp.float32)

    conv_kw = dict(num_tiles=num_tiles, gpad=gpad, offsets=offsets)

    # ---- stage 1: conv1 + masked partial BN stats (raw output kept in bf16,
    #      with TILE-aligned slack so stage 2 can halo-window it from HBM) ----
    y1, s1, q1 = _conv_stage(
        x_hbm, mask_hbm, w1g, zeros_c, zeros_c,
        cin_p=cin_p, cout_p=cout_p, x_left=0,
        out_cols=mtot + 2 * tpad, out_block_off=tpad // TILE_M,
        out_dtype=jnp.bfloat16, apply_input_affine=False, **conv_kw)
    sc1, sh1 = _bn_scale_shift(s1, q1, g1p, b1p, m_valid)

    # ---- stage 2: (fused bn1 + ReLU + pad-mask on the y1 window) -> conv2 ----
    y2, s2, q2 = _conv_stage(
        y1, mask_hbm, w2g, sc1, sh1,
        cin_p=cout_p, cout_p=cout_p, x_left=tpad - gpad,
        out_cols=mtot, out_block_off=0,
        out_dtype=jnp.float32, apply_input_affine=True, **conv_kw)
    sc2, sh2 = _bn_scale_shift(s2, q2, g2p, b2p, m_valid)

    # ---- bn2 + residual + ReLU ----
    out_flat = _bn_res_relu(y2, sc2, sh2, x_flat, tile_m=BN_TILE_M)

    out = out_flat[:planes, :m_flat].reshape(planes, n, dp, hp, wp)
    out = out[:, :, 1:1 + d, 1:1 + h, 1:1 + w]
    return jnp.transpose(out, (1, 0, 2, 3, 4))


# ---------------------------------------------------------------------------
# Pure-JAX reference (mirrors the PyTorch forward) for a correctness check
# ---------------------------------------------------------------------------
def _reference(x, w1, g1, b1, w2, g2, b2):
    def conv(v, wt):
        return lax.conv_general_dilated(
            v, wt, window_strides=(1, 1, 1), padding=((1, 1), (1, 1), (1, 1)),
            dimension_numbers=('NCDHW', 'OIDHW', 'NCDHW'))

    def bn(v, g, b):
        mean = v.mean(axis=(0, 2, 3, 4), keepdims=True)
        var = ((v - mean) ** 2).mean(axis=(0, 2, 3, 4), keepdims=True)
        return ((v - mean) * lax.rsqrt(var + EPS)
                * g.reshape(1, -1, 1, 1, 1) + b.reshape(1, -1, 1, 1, 1))

    out = jax.nn.relu(bn(conv(x, w1), g1, b1))
    out = bn(conv(out, w2), g2, b2)
    return jax.nn.relu(out + x)


if __name__ == "__main__":
    key = jax.random.PRNGKey(0)
    kx, kw1, kw2 = jax.random.split(key, 3)

    # in_planes == planes (required for the residual add when downsample=None)
    N, C, D, H, W = 2, 8, 8, 8, 8
    x = jax.random.normal(kx, (N, C, D, H, W), jnp.float32)

    w1 = 0.1 * jax.random.normal(kw1, (C, C, 3, 3, 3), jnp.float32)  # conv1.weight
    w2 = 0.1 * jax.random.normal(kw2, (C, C, 3, 3, 3), jnp.float32)  # conv2.weight
    g1 = 1.0 + 0.10 * jnp.arange(C, dtype=jnp.float32)               # bn1.weight
    b1 = 0.05 * jnp.arange(C, dtype=jnp.float32)                     # bn1.bias
    g2 = 1.0 - 0.05 * jnp.arange(C, dtype=jnp.float32)               # bn2.weight
    b2 = -0.03 * jnp.arange(C, dtype=jnp.float32)                    # bn2.bias

    out = basic_block_forward(x, w1, g1, b1, w2, g2, b2)
    jax.block_until_ready(out)

    ref = _reference(x, w1, g1, b1, w2, g2, b2)
    assert out.shape == ref.shape == (N, C, D, H, W)
    max_err = float(jnp.max(jnp.abs(out - ref)))
    assert max_err < 5e-2, f"max abs err {max_err}"
    print("KERNEL_OK")
</pallas_src>

<mosaic_0001>
module attributes {stable_mosaic.version = 11 : i64} {
  func.func @_conv_tap_kernel(%arg0: i32, %arg1: memref<16x2304xbf16, #tpu.memory_space<any>>, %arg2: memref<1x2304xf32, #tpu.memory_space<any>>, %arg3: memref<3x16x144xbf16, #tpu.memory_space<vmem>>, %arg4: memref<16x1xf32, #tpu.memory_space<vmem>>, %arg5: memref<16x1xf32, #tpu.memory_space<vmem>>, %arg6: memref<16x512xbf16, #tpu.memory_space<vmem>>, %arg7: memref<1x16x1xf32, #tpu.memory_space<vmem>>, %arg8: memref<1x16x1xf32, #tpu.memory_space<vmem>>, %arg9: memref<16x768xbf16, #tpu.memory_space<vmem>>, %arg10: memref<1x768xf32, #tpu.memory_space<vmem>>, %arg11: memref<2x!tpu.dma_semaphore, #tpu.memory_space<semaphore_mem>>) attributes {dimension_semantics = [#tpu.dimension_semantics<parallel>], iteration_bounds = array<i64: 4>, scalar_prefetch = 0 : i64, scratch_operands = 3 : i64, tpu.core_type = #tpu.core_type<tc>, window_params = [{}, {}, {pipeline_mode = #tpu.pipeline_mode<synchronous>, transform_indices = @transform_2, window_bounds = array<i64: 3, 16, 144>}, {pipeline_mode = #tpu.pipeline_mode<synchronous>, transform_indices = @transform_3, window_bounds = array<i64: 16, 1>}, {pipeline_mode = #tpu.pipeline_mode<synchronous>, transform_indices = @transform_4, window_bounds = array<i64: 16, 1>}, {transform_indices = @transform_5, window_bounds = array<i64: 16, 512>}, {transform_indices = @transform_6, window_bounds = array<i64: 1, 16, 1>}, {transform_indices = @transform_7, window_bounds = array<i64: 1, 16, 1>}]} {
    %c512_i32 = arith.constant 512 : i32
    %0 = arith.muli %arg0, %c512_i32 : i32
    %c0_i32 = arith.constant 0 : i32
    %1 = arith.addi %c0_i32, %0 : i32
    %2 = tpu.assume_multiple %1, 128 : i32
    %c512_i32_0 = arith.constant 512 : i32
    %3 = arith.muli %arg0, %c512_i32_0 : i32
    %4 = tpu.assume_multiple %3, 128 : i32
    %c0_i32_1 = arith.constant 0 : i32
    %c0_i32_2 = arith.constant 0 : i32
    %5 = tpu.memref_slice %arg1[%c0_i32_2, %2] : memref<16x2304xbf16, #tpu.memory_space<any>> -> memref<16x768xbf16, #tpu.memory_space<any>>
    %6 = tpu.memref_slice %arg11[%c0_i32_1] : memref<2x!tpu.dma_semaphore, #tpu.memory_space<semaphore_mem>> -> memref<1x!tpu.dma_semaphore, #tpu.memory_space<semaphore_mem>>
    %7 = tpu.memref_squeeze %6 : memref<1x!tpu.dma_semaphore, #tpu.memory_space<semaphore_mem>> -> memref<!tpu.dma_semaphore, #tpu.memory_space<semaphore_mem>>
    tpu.enqueue_dma source(%5 : memref<16x768xbf16, #tpu.memory_space<any>>) target(%arg9 : memref<16x768xbf16, #tpu.memory_space<vmem>>) target_semaphore(%7 : memref<!tpu.dma_semaphore, #tpu.memory_space<semaphore_mem>>)
    %c1_i32 = arith.constant 1 : i32
    %c0_i32_3 = arith.constant 0 : i32
    %8 = tpu.memref_slice %arg2[%c0_i32_3, %4] : memref<1x2304xf32, #tpu.memory_space<any>> -> memref<1x768xf32, #tpu.memory_space<any>>
    %9 = tpu.memref_slice %arg11[%c1_i32] : memref<2x!tpu.dma_semaphore, #tpu.memory_space<semaphore_mem>> -> memref<1x!tpu.dma_semaphore, #tpu.memory_space<semaphore_mem>>
    %10 = tpu.memref_squeeze %9 : memref<1x!tpu.dma_semaphore, #tpu.memory_space<semaphore_mem>> -> memref<!tpu.dma_semaphore, #tpu.memory_space<semaphore_mem>>
    tpu.enqueue_dma source(%8 : memref<1x768xf32, #tpu.memory_space<any>>) target(%arg10 : memref<1x768xf32, #tpu.memory_space<vmem>>) target_semaphore(%10 : memref<!tpu.dma_semaphore, #tpu.memory_space<semaphore_mem>>)
    %c0_i32_4 = arith.constant 0 : i32
    %c0_i32_5 = arith.constant 0 : i32
    %11 = tpu.memref_slice %arg1[%c0_i32_5, %2] : memref<16x2304xbf16, #tpu.memory_space<any>> -> memref<16x768xbf16, #tpu.memory_space<any>>
    %12 = tpu.memref_slice %arg11[%c0_i32_4] : memref<2x!tpu.dma_semaphore, #tpu.memory_space<semaphore_mem>> -> memref<1x!tpu.dma_semaphore, #tpu.memory_space<semaphore_mem>>
    %13 = tpu.memref_squeeze %12 : memref<1x!tpu.dma_semaphore, #tpu.memory_space<semaphore_mem>> -> memref<!tpu.dma_semaphore, #tpu.memory_space<semaphore_mem>>
    tpu.wait_dma2 semaphore(%13 : memref<!tpu.dma_semaphore, #tpu.memory_space<semaphore_mem>>) src(%11 : memref<16x768xbf16, #tpu.memory_space<any>>) dst(%arg9 : memref<16x768xbf16, #tpu.memory_space<vmem>>)
    %c1_i32_6 = arith.constant 1 : i32
    %c0_i32_7 = arith.constant 0 : i32
    %14 = tpu.memref_slice %arg2[%c0_i32_7, %4] : memref<1x2304xf32, #tpu.memory_space<any>> -> memref<1x768xf32, #tpu.memory_space<any>>
    %15 = tpu.memref_slice %arg11[%c1_i32_6] : memref<2x!tpu.dma_semaphore, #tpu.memory_space<semaphore_mem>> -> memref<1x!tpu.dma_semaphore, #tpu.memory_space<semaphore_mem>>
    %16 = tpu.memref_squeeze %15 : memref<1x!tpu.dma_semaphore, #tpu.memory_space<semaphore_mem>> -> memref<!tpu.dma_semaphore, #tpu.memory_space<semaphore_mem>>
    tpu.wait_dma2 semaphore(%16 : memref<!tpu.dma_semaphore, #tpu.memory_space<semaphore_mem>>) src(%14 : memref<1x768xf32, #tpu.memory_space<any>>) dst(%arg10 : memref<1x768xf32, #tpu.memory_space<vmem>>)
    %c0 = arith.constant 0 : index
    %c0_8 = arith.constant 0 : index
    %17 = vector.load %arg9[%c0, %c0_8] : memref<16x768xbf16, #tpu.memory_space<vmem>>, vector<16x768xbf16>
    %18 = vector.extract_strided_slice %17 {offsets = [0, 17], sizes = [16, 512], strides = [1, 1]} : vector<16x768xbf16> to vector<16x512xbf16>
    %19 = vector.extract_strided_slice %17 {offsets = [0, 18], sizes = [16, 512], strides = [1, 1]} : vector<16x768xbf16> to vector<16x512xbf16>
    %20 = vector.extract_strided_slice %17 {offsets = [0, 19], sizes = [16, 512], strides = [1, 1]} : vector<16x768xbf16> to vector<16x512xbf16>
    %21 = vector.extract_strided_slice %17 {offsets = [0, 27], sizes = [16, 512], strides = [1, 1]} : vector<16x768xbf16> to vector<16x512xbf16>
    %22 = vector.extract_strided_slice %17 {offsets = [0, 28], sizes = [16, 512], strides = [1, 1]} : vector<16x768xbf16> to vector<16x512xbf16>
    %23 = vector.extract_strided_slice %17 {offsets = [0, 29], sizes = [16, 512], strides = [1, 1]} : vector<16x768xbf16> to vector<16x512xbf16>
    %24 = vector.extract_strided_slice %17 {offsets = [0, 37], sizes = [16, 512], strides = [1, 1]} : vector<16x768xbf16> to vector<16x512xbf16>
    %25 = vector.extract_strided_slice %17 {offsets = [0, 38], sizes = [16, 512], strides = [1, 1]} : vector<16x768xbf16> to vector<16x512xbf16>
    %26 = vector.extract_strided_slice %17 {offsets = [0, 39], sizes = [16, 512], strides = [1, 1]} : vector<16x768xbf16> to vector<16x512xbf16>
    %27 = tpu.concatenate %18, %19, %20, %21, %22, %23, %24, %25, %26 in 0 : vector<16x512xbf16>, vector<16x512xbf16>, vector<16x512xbf16>, vector<16x512xbf16>, vector<16x512xbf16>, vector<16x512xbf16>, vector<16x512xbf16>, vector<16x512xbf16>, vector<16x512xbf16> -> vector<144x512xbf16>
    %c0_9 = arith.constant 0 : index
    %c0_10 = arith.constant 0 : index
    %c0_11 = arith.constant 0 : index
    %28 = vector.load %arg3[%c0_9, %c0_10, %c0_11] : memref<3x16x144xbf16, #tpu.memory_space<vmem>>, vector<1x16x144xbf16>
    %29 = vector.shape_cast %28 : vector<1x16x144xbf16> to vector<16x144xbf16>
    %cst = arith.constant dense<0.000000e+00> : vector<16x512xf32>
    %30 = tpu.matmul %29, %27, %cst {dimension_numbers = #tpu.dot_dimension_numbers<[1], [0], [0], [1], [0, 0, 1, 1], [], []>} : vector<16x144xbf16>, vector<144x512xbf16>, vector<16x512xf32> -> vector<16x512xf32>
    %31 = vector.extract_strided_slice %17 {offsets = [0, 117], sizes = [16, 512], strides = [1, 1]} : vector<16x768xbf16> to vector<16x512xbf16>
    %32 = vector.extract_strided_slice %17 {offsets = [0, 118], sizes = [16, 512], strides = [1, 1]} : vector<16x768xbf16> to vector<16x512xbf16>
    %33 = vector.extract_strided_slice %17 {offsets = [0, 119], sizes = [16, 512], strides = [1, 1]} : vector<16x768xbf16> to vector<16x512xbf16>
    %34 = vector.extract_strided_slice %17 {offsets = [0, 127], sizes = [16, 512], strides = [1, 1]} : vector<16x768xbf16> to vector<16x512xbf16>
    %35 = vector.extract_strided_slice %17 {offsets = [0, 128], sizes = [16, 512], strides = [1, 1]} : vector<16x768xbf16> to vector<16x512xbf16>
    %36 = vector.extract_strided_slice %17 {offsets = [0, 129], sizes = [16, 512], strides = [1, 1]} : vector<16x768xbf16> to vector<16x512xbf16>
    %37 = vector.extract_strided_slice %17 {offsets = [0, 137], sizes = [16, 512], strides = [1, 1]} : vector<16x768xbf16> to vector<16x512xbf16>
    %38 = vector.extract_strided_slice %17 {offsets = [0, 138], sizes = [16, 512], strides = [1, 1]} : vector<16x768xbf16> to vector<16x512xbf16>
    %39 = vector.extract_strided_slice %17 {offsets = [0, 139], sizes = [16, 512], strides = [1, 1]} : vector<16x768xbf16> to vector<16x512xbf16>
    %40 = tpu.concatenate %31, %32, %33, %34, %35, %36, %37, %38, %39 in 0 : vector<16x512xbf16>, vector<16x512xbf16>, vector<16x512xbf16>, vector<16x512xbf16>, vector<16x512xbf16>, vector<16x512xbf16>, vector<16x512xbf16>, vector<16x512xbf16>, vector<16x512xbf16> -> vector<144x512xbf16>
    %c1 = arith.constant 1 : index
    %c0_12 = arith.constant 0 : index
    %c0_13 = arith.constant 0 : index
    %41 = vector.load %arg3[%c1, %c0_12, %c0_13] : memref<3x16x144xbf16, #tpu.memory_space<vmem>>, vector<1x16x144xbf16>
    %42 = vector.shape_cast %41 : vector<1x16x144xbf16> to vector<16x144xbf16>
    %cst_14 = arith.constant dense<0.000000e+00> : vector<16x512xf32>
    %43 = tpu.matmul %42, %40, %cst_14 {dimension_numbers = #tpu.dot_dimension_numbers<[1], [0], [0], [1], [0, 0, 1, 1], [], []>} : vector<16x144xbf16>, vector<144x512xbf16>, vector<16x512xf32> -> vector<16x512xf32>
    %44 = arith.addf %30, %43 : vector<16x512xf32>
    %45 = vector.extract_strided_slice %17 {offsets = [0, 217], sizes = [16, 512], strides = [1, 1]} : vector<16x768xbf16> to vector<16x512xbf16>
    %46 = vector.extract_strided_slice %17 {offsets = [0, 218], sizes = [16, 512], strides = [1, 1]} : vector<16x768xbf16> to vector<16x512xbf16>
    %47 = vector.extract_strided_slice %17 {offsets = [0, 219], sizes = [16, 512], strides = [1, 1]} : vector<16x768xbf16> to vector<16x512xbf16>
    %48 = vector.extract_strided_slice %17 {offsets = [0, 227], sizes = [16, 512], strides = [1, 1]} : vector<16x768xbf16> to vector<16x512xbf16>
    %49 = vector.extract_strided_slice %17 {offsets = [0, 228], sizes = [16, 512], strides = [1, 1]} : vector<16x768xbf16> to vector<16x512xbf16>
    %50 = vector.extract_strided_slice %17 {offsets = [0, 229], sizes = [16, 512], strides = [1, 1]} : vector<16x768xbf16> to vector<16x512xbf16>
    %51 = vector.extract_strided_slice %17 {offsets = [0, 237], sizes = [16, 512], strides = [1, 1]} : vector<16x768xbf16> to vector<16x512xbf16>
    %52 = vector.extract_strided_slice %17 {offsets = [0, 238], sizes = [16, 512], strides = [1, 1]} : vector<16x768xbf16> to vector<16x512xbf16>
    %53 = vector.extract_strided_slice %17 {offsets = [0, 239], sizes = [16, 512], strides = [1, 1]} : vector<16x768xbf16> to vector<16x512xbf16>
    %54 = tpu.concatenate %45, %46, %47, %48, %49, %50, %51, %52, %53 in 0 : vector<16x512xbf16>, vector<16x512xbf16>, vector<16x512xbf16>, vector<16x512xbf16>, vector<16x512xbf16>, vector<16x512xbf16>, vector<16x512xbf16>, vector<16x512xbf16>, vector<16x512xbf16> -> vector<144x512xbf16>
    %c2 = arith.constant 2 : index
    %c0_15 = arith.constant 0 : index
    %c0_16 = arith.constant 0 : index
    %55 = vector.load %arg3[%c2, %c0_15, %c0_16] : memref<3x16x144xbf16, #tpu.memory_space<vmem>>, vector<1x16x144xbf16>
    %56 = vector.shape_cast %55 : vector<1x16x144xbf16> to vector<16x144xbf16>
    %cst_17 = arith.constant dense<0.000000e+00> : vector<16x512xf32>
    %57 = tpu.matmul %56, %54, %cst_17 {dimension_numbers = #tpu.dot_dimension_numbers<[1], [0], [0], [1], [0, 0, 1, 1], [], []>} : vector<16x144xbf16>, vector<144x512xbf16>, vector<16x512xf32> -> vector<16x512xf32>
    %58 = arith.addf %44, %57 : vector<16x512xf32>
    %59 = arith.truncf %58 : vector<16x512xf32> to vector<16x512xbf16>
    %c0_18 = arith.constant 0 : index
    %c0_19 = arith.constant 0 : index
    %60 = vector.load %arg6[%c0_18, %c0_19] : memref<16x512xbf16, #tpu.memory_space<vmem>>, vector<16x512xbf16>
    tpu.vector_store %arg6[%c0_18, %c0_19], %59 {strides = array<i32>} : memref<16x512xbf16, #tpu.memory_space<vmem>>, vector<16x512xbf16>,
    %c0_20 = arith.constant 0 : index
    %c128 = arith.constant 128 : index
    %61 = vector.load %arg10[%c0_20, %c128] : memref<1x768xf32, #tpu.memory_space<vmem>>, vector<1x512xf32>
    %cst_21 = arith.constant 0.000000e+00 : f32
    %62 = vector.broadcast %cst_21 : f32 to vector<1x512xf32>
    %63 = arith.cmpf ogt, %61, %62 : vector<1x512xf32>
    %cst_22 = arith.constant 0.000000e+00 : f32
    %64 = vector.shape_cast %63 : vector<1x512xi1> to vector<1x512xi1>
    %65 = vector.broadcast %64 : vector<1x512xi1> to vector<16x512xi1>
    %66 = vector.broadcast %cst_22 : f32 to vector<16x512xf32>
    %67 = arith.select %65, %58, %66 : vector<16x512xi1>, vector<16x512xf32>
    %cst_23 = arith.constant 1.000000e+00 : f32
    %68 = vector.broadcast %cst_23 : f32 to vector<512x128xf32>
    %cst_24 = arith.constant dense<0.000000e+00> : vector<16x128xf32>
    %69 = tpu.matmul %67, %68, %cst_24 {dimension_numbers = #tpu.dot_dimension_numbers<[1], [0], [0], [1], [0, 0, 1, 1], [], []>} : vector<16x512xf32>, vector<512x128xf32>, vector<16x128xf32> -> vector<16x128xf32>
    %70 = vector.extract_strided_slice %69 {offsets = [0, 0], sizes = [16, 1], strides = [1, 1]} : vector<16x128xf32> to vector<16x1xf32>
    %c0_25 = arith.constant 0 : index
    %c0_26 = arith.constant 0 : index
    %c0_27 = arith.constant 0 : index
    %71 = vector.load %arg7[%c0_25, %c0_26, %c0_27] : memref<1x16x1xf32, #tpu.memory_space<vmem>>, vector<1x16x1xf32>
    %72 = vector.shape_cast %71 : vector<1x16x1xf32> to vector<16x1xf32>
    %73 = vector.shape_cast %70 : vector<16x1xf32> to vector<1x16x1xf32>
    tpu.vector_store %arg7[%c0_25, %c0_26, %c0_27], %73 {strides = array<i32>} : memref<1x16x1xf32, #tpu.memory_space<vmem>>, vector<1x16x1xf32>,
    %74 = arith.mulf %67, %58 : vector<16x512xf32>
    %cst_28 = arith.constant dense<0.000000e+00> : vector<16x128xf32>
    %75 = tpu.matmul %74, %68, %cst_28 {dimension_numbers = #tpu.dot_dimension_numbers<[1], [0], [0], [1], [0, 0, 1, 1], [], []>} : vector<16x512xf32>, vector<512x128xf32>, vector<16x128xf32> -> vector<16x128xf32>
    %76 = vector.extract_strided_slice %75 {offsets = [0, 0], sizes = [16, 1], strides = [1, 1]} : vector<16x128xf32> to vector<16x1xf32>
    %c0_29 = arith.constant 0 : index
    %c0_30 = arith.constant 0 : index
    %c0_31 = arith.constant 0 : index
    %77 = vector.load %arg8[%c0_29, %c0_30, %c0_31] : memref<1x16x1xf32, #tpu.memory_space<vmem>>, vector<1x16x1xf32>
    %78 = vector.shape_cast %77 : vector<1x16x1xf32> to vector<16x1xf32>
    %79 = vector.shape_cast %76 : vector<16x1xf32> to vector<1x16x1xf32>
    tpu.vector_store %arg8[%c0_29, %c0_30, %c0_31], %79 {strides = array<i32>} : memref<1x16x1xf32, #tpu.memory_space<vmem>>, vector<1x16x1xf32>,
    return
  }
  func.func @transform_2(%arg0: i32) -> (i32, i32, i32) {
    %c0_i32 = arith.constant 0 : i32
    %c0_i32_0 = arith.constant 0 : i32
    %c0_i32_1 = arith.constant 0 : i32
    %c0_i32_2 = arith.constant 0 : i32
    return %c0_i32, %c0_i32_0, %c0_i32_1 : i32, i32, i32
  }
  func.func @transform_3(%arg0: i32) -> (i32, i32) {
    %c0_i32 = arith.constant 0 : i32
    %c0_i32_0 = arith.constant 0 : i32
    %c0_i32_1 = arith.constant 0 : i32
    return %c0_i32, %c0_i32_0 : i32, i32
  }
  func.func @transform_4(%arg0: i32) -> (i32, i32) {
    %c0_i32 = arith.constant 0 : i32
    %c0_i32_0 = arith.constant 0 : i32
    %c0_i32_1 = arith.constant 0 : i32
    return %c0_i32, %c0_i32_0 : i32, i32
  }
  func.func @transform_5(%arg0: i32) -> (i32, i32) {
    %c1_i32 = arith.constant 1 : i32
    %0 = arith.addi %arg0, %c1_i32 : i32
    %c0_i32 = arith.constant 0 : i32
    %c0_i32_0 = arith.constant 0 : i32
    return %c0_i32, %0 : i32, i32
  }
  func.func @transform_6(%arg0: i32) -> (i32, i32, i32) {
    %c0_i32 = arith.constant 0 : i32
    %c0_i32_0 = arith.constant 0 : i32
    %c0_i32_1 = arith.constant 0 : i32
    return %arg0, %c0_i32, %c0_i32_0 : i32, i32, i32
  }
  func.func @transform_7(%arg0: i32) -> (i32, i32, i32) {
    %c0_i32 = arith.constant 0 : i32
    %c0_i32_0 = arith.constant 0 : i32
    %c0_i32_1 = arith.constant 0 : i32
    return %arg0, %c0_i32, %c0_i32_0 : i32, i32, i32
  }
}

module attributes {stable_mosaic.version = 11 : i64} {
  func.func @_conv_tap_kernel(%arg0: i32, %arg1: memref<16x3072xbf16, #tpu.memory_space<any>>, %arg2: memref<1x2304xf32, #tpu.memory_space<any>>, %arg3: memref<3x16x144xbf16, #tpu.memory_space<vmem>>, %arg4: memref<16x1xf32, #tpu.memory_space<vmem>>, %arg5: memref<16x1xf32, #tpu.memory_space<vmem>>, %arg6: memref<16x512xf32, #tpu.memory_space<vmem>>, %arg7: memref<1x16x1xf32, #tpu.memory_space<vmem>>, %arg8: memref<1x16x1xf32, #tpu.memory_space<vmem>>, %arg9: memref<16x768xbf16, #tpu.memory_space<vmem>>, %arg10: memref<1x768xf32, #tpu.memory_space<vmem>>, %arg11: memref<2x!tpu.dma_semaphore, #tpu.memory_space<semaphore_mem>>) attributes {dimension_semantics = [#tpu.dimension_semantics<parallel>], iteration_bounds = array<i64: 4>, scalar_prefetch = 0 : i64, scratch_operands = 3 : i64, tpu.core_type = #tpu.core_type<tc>, window_params = [{}, {}, {pipeline_mode = #tpu.pipeline_mode<synchronous>, transform_indices = @transform_2, window_bounds = array<i64: 3, 16, 144>}, {pipeline_mode = #tpu.pipeline_mode<synchronous>, transform_indices = @transform_3, window_bounds = array<i64: 16, 1>}, {pipeline_mode = #tpu.pipeline_mode<synchronous>, transform_indices = @transform_4, window_bounds = array<i64: 16, 1>}, {transform_indices = @transform_5, window_bounds = array<i64: 16, 512>}, {transform_indices = @transform_6, window_bounds = array<i64: 1, 16, 1>}, {transform_indices = @transform_7, window_bounds = array<i64: 1, 16, 1>}]} {
    %c512_i32 = arith.constant 512 : i32
    %0 = arith.muli %arg0, %c512_i32 : i32
    %c384_i32 = arith.constant 384 : i32
    %1 = arith.addi %c384_i32, %0 : i32
    %2 = tpu.assume_multiple %1, 128 : i32
    %c512_i32_0 = arith.constant 512 : i32
    %3 = arith.muli %arg0, %c512_i32_0 : i32
    %4 = tpu.assume_multiple %3, 128 : i32
    %c0_i32 = arith.constant 0 : i32
    %c0_i32_1 = arith.constant 0 : i32
    %5 = tpu.memref_slice %arg1[%c0_i32_1, %2] : memref<16x3072xbf16, #tpu.memory_space<any>> -> memref<16x768xbf16, #tpu.memory_space<any>>
    %6 = tpu.memref_slice %arg11[%c0_i32] : memref<2x!tpu.dma_semaphore, #tpu.memory_space<semaphore_mem>> -> memref<1x!tpu.dma_semaphore, #tpu.memory_space<semaphore_mem>>
    %7 = tpu.memref_squeeze %6 : memref<1x!tpu.dma_semaphore, #tpu.memory_space<semaphore_mem>> -> memref<!tpu.dma_semaphore, #tpu.memory_space<semaphore_mem>>
    tpu.enqueue_dma source(%5 : memref<16x768xbf16, #tpu.memory_space<any>>) target(%arg9 : memref<16x768xbf16, #tpu.memory_space<vmem>>) target_semaphore(%7 : memref<!tpu.dma_semaphore, #tpu.memory_space<semaphore_mem>>)
    %c1_i32 = arith.constant 1 : i32
    %c0_i32_2 = arith.constant 0 : i32
    %8 = tpu.memref_slice %arg2[%c0_i32_2, %4] : memref<1x2304xf32, #tpu.memory_space<any>> -> memref<1x768xf32, #tpu.memory_space<any>>
    %9 = tpu.memref_slice %arg11[%c1_i32] : memref<2x!tpu.dma_semaphore, #tpu.memory_space<semaphore_mem>> -> memref<1x!tpu.dma_semaphore, #tpu.memory_space<semaphore_mem>>
    %10 = tpu.memref_squeeze %9 : memref<1x!tpu.dma_semaphore, #tpu.memory_space<semaphore_mem>> -> memref<!tpu.dma_semaphore, #tpu.memory_space<semaphore_mem>>
    tpu.enqueue_dma source(%8 : memref<1x768xf32, #tpu.memory_space<any>>) target(%arg10 : memref<1x768xf32, #tpu.memory_space<vmem>>) target_semaphore(%10 : memref<!tpu.dma_semaphore, #tpu.memory_space<semaphore_mem>>)
    %c0_i32_3 = arith.constant 0 : i32
    %c0_i32_4 = arith.constant 0 : i32
    %11 = tpu.memref_slice %arg1[%c0_i32_4, %2] : memref<16x3072xbf16, #tpu.memory_space<any>> -> memref<16x768xbf16, #tpu.memory_space<any>>
    %12 = tpu.memref_slice %arg11[%c0_i32_3] : memref<2x!tpu.dma_semaphore, #tpu.memory_space<semaphore_mem>> -> memref<1x!tpu.dma_semaphore, #tpu.memory_space<semaphore_mem>>
    %13 = tpu.memref_squeeze %12 : memref<1x!tpu.dma_semaphore, #tpu.memory_space<semaphore_mem>> -> memref<!tpu.dma_semaphore, #tpu.memory_space<semaphore_mem>>
    tpu.wait_dma2 semaphore(%13 : memref<!tpu.dma_semaphore, #tpu.memory_space<semaphore_mem>>) src(%11 : memref<16x768xbf16, #tpu.memory_space<any>>) dst(%arg9 : memref<16x768xbf16, #tpu.memory_space<vmem>>)
    %c1_i32_5 = arith.constant 1 : i32
    %c0_i32_6 = arith.constant 0 : i32
    %14 = tpu.memref_slice %arg2[%c0_i32_6, %4] : memref<1x2304xf32, #tpu.memory_space<any>> -> memref<1x768xf32, #tpu.memory_space<any>>
    %15 = tpu.memref_slice %arg11[%c1_i32_5] : memref<2x!tpu.dma_semaphore, #tpu.memory_space<semaphore_mem>> -> memref<1x!tpu.dma_semaphore, #tpu.memory_space<semaphore_mem>>
    %16 = tpu.memref_squeeze %15 : memref<1x!tpu.dma_semaphore, #tpu.memory_space<semaphore_mem>> -> memref<!tpu.dma_semaphore, #tpu.memory_space<semaphore_mem>>
    tpu.wait_dma2 semaphore(%16 : memref<!tpu.dma_semaphore, #tpu.memory_space<semaphore_mem>>) src(%14 : memref<1x768xf32, #tpu.memory_space<any>>) dst(%arg10 : memref<1x768xf32, #tpu.memory_space<vmem>>)
    %c0 = arith.constant 0 : index
    %c0_7 = arith.constant 0 : index
    %17 = vector.load %arg9[%c0, %c0_7] : memref<16x768xbf16, #tpu.memory_space<vmem>>, vector<16x768xbf16>
    %18 = arith.extf %17 : vector<16x768xbf16> to vector<16x768xf32>
    %c0_8 = arith.constant 0 : index
    %c0_9 = arith.constant 0 : index
    %19 = vector.load %arg4[%c0_8, %c0_9] : memref<16x1xf32, #tpu.memory_space<vmem>>, vector<16x1xf32>
    %20 = vector.broadcast %19 : vector<16x1xf32> to vector<16x768xf32>
    %21 = arith.mulf %18, %20 : vector<16x768xf32>
    %c0_10 = arith.constant 0 : index
    %c0_11 = arith.constant 0 : index
    %22 = vector.load %arg5[%c0_10, %c0_11] : memref<16x1xf32, #tpu.memory_space<vmem>>, vector<16x1xf32>
    %23 = vector.broadcast %22 : vector<16x1xf32> to vector<16x768xf32>
    %24 = arith.addf %21, %23 : vector<16x768xf32>
    %cst = arith.constant 0.000000e+00 : f32
    %25 = vector.broadcast %cst : f32 to vector<16x768xf32>
    %26 = arith.maximumf %24, %25 : vector<16x768xf32>
    %c0_12 = arith.constant 0 : index
    %c0_13 = arith.constant 0 : index
    %27 = vector.load %arg10[%c0_12, %c0_13] : memref<1x768xf32, #tpu.memory_space<vmem>>, vector<1x768xf32>
    %cst_14 = arith.constant 0.000000e+00 : f32
    %28 = vector.broadcast %cst_14 : f32 to vector<1x768xf32>
    %29 = arith.cmpf ogt, %27, %28 : vector<1x768xf32>
    %cst_15 = arith.constant 0.000000e+00 : f32
    %30 = vector.shape_cast %29 : vector<1x768xi1> to vector<1x768xi1>
    %31 = vector.broadcast %30 : vector<1x768xi1> to vector<16x768xi1>
    %32 = vector.broadcast %cst_15 : f32 to vector<16x768xf32>
    %33 = arith.select %31, %26, %32 : vector<16x768xi1>, vector<16x768xf32>
    %34 = arith.truncf %33 : vector<16x768xf32> to vector<16x768xbf16>
    %35 = vector.extract_strided_slice %34 {offsets = [0, 17], sizes = [16, 512], strides = [1, 1]} : vector<16x768xbf16> to vector<16x512xbf16>
    %36 = vector.extract_strided_slice %34 {offsets = [0, 18], sizes = [16, 512], strides = [1, 1]} : vector<16x768xbf16> to vector<16x512xbf16>
    %37 = vector.extract_strided_slice %34 {offsets = [0, 19], sizes = [16, 512], strides = [1, 1]} : vector<16x768xbf16> to vector<16x512xbf16>
    %38 = vector.extract_strided_slice %34 {offsets = [0, 27], sizes = [16, 512], strides = [1, 1]} : vector<16x768xbf16> to vector<16x512xbf16>
    %39 = vector.extract_strided_slice %34 {offsets = [0, 28], sizes = [16, 512], strides = [1, 1]} : vector<16x768xbf16> to vector<16x512xbf16>
    %40 = vector.extract_strided_slice %34 {offsets = [0, 29], sizes = [16, 512], strides = [1, 1]} : vector<16x768xbf16> to vector<16x512xbf16>
    %41 = vector.extract_strided_slice %34 {offsets = [0, 37], sizes = [16, 512], strides = [1, 1]} : vector<16x768xbf16> to vector<16x512xbf16>
    %42 = vector.extract_strided_slice %34 {offsets = [0, 38], sizes = [16, 512], strides = [1, 1]} : vector<16x768xbf16> to vector<16x512xbf16>
    %43 = vector.extract_strided_slice %34 {offsets = [0, 39], sizes = [16, 512], strides = [1, 1]} : vector<16x768xbf16> to vector<16x512xbf16>
    %44 = tpu.concatenate %35, %36, %37, %38, %39, %40, %41, %42, %43 in 0 : vector<16x512xbf16>, vector<16x512xbf16>, vector<16x512xbf16>, vector<16x512xbf16>, vector<16x512xbf16>, vector<16x512xbf16>, vector<16x512xbf16>, vector<16x512xbf16>, vector<16x512xbf16> -> vector<144x512xbf16>
    %c0_16 = arith.constant 0 : index
    %c0_17 = arith.constant 0 : index
    %c0_18 = arith.constant 0 : index
    %45 = vector.load %arg3[%c0_16, %c0_17, %c0_18] : memref<3x16x144xbf16, #tpu.memory_space<vmem>>, vector<1x16x144xbf16>
    %46 = vector.shape_cast %45 : vector<1x16x144xbf16> to vector<16x144xbf16>
    %cst_19 = arith.constant dense<0.000000e+00> : vector<16x512xf32>
    %47 = tpu.matmul %46, %44, %cst_19 {dimension_numbers = #tpu.dot_dimension_numbers<[1], [0], [0], [1], [0, 0, 1, 1], [], []>} : vector<16x144xbf16>, vector<144x512xbf16>, vector<16x512xf32> -> vector<16x512xf32>
    %48 = vector.extract_strided_slice %34 {offsets = [0, 117], sizes = [16, 512], strides = [1, 1]} : vector<16x768xbf16> to vector<16x512xbf16>
    %49 = vector.extract_strided_slice %34 {offsets = [0, 118], sizes = [16, 512], strides = [1, 1]} : vector<16x768xbf16> to vector<16x512xbf16>
    %50 = vector.extract_strided_slice %34 {offsets = [0, 119], sizes = [16, 512], strides = [1, 1]} : vector<16x768xbf16> to vector<16x512xbf16>
    %51 = vector.extract_strided_slice %34 {offsets = [0, 127], sizes = [16, 512], strides = [1, 1]} : vector<16x768xbf16> to vector<16x512xbf16>
    %52 = vector.extract_strided_slice %34 {offsets = [0, 128], sizes = [16, 512], strides = [1, 1]} : vector<16x768xbf16> to vector<16x512xbf16>
    %53 = vector.extract_strided_slice %34 {offsets = [0, 129], sizes = [16, 512], strides = [1, 1]} : vector<16x768xbf16> to vector<16x512xbf16>
    %54 = vector.extract_strided_slice %34 {offsets = [0, 137], sizes = [16, 512], strides = [1, 1]} : vector<16x768xbf16> to vector<16x512xbf16>
    %55 = vector.extract_strided_slice %34 {offsets = [0, 138], sizes = [16, 512], strides = [1, 1]} : vector<16x768xbf16> to vector<16x512xbf16>
    %56 = vector.extract_strided_slice %34 {offsets = [0, 139], sizes = [16, 512], strides = [1, 1]} : vector<16x768xbf16> to vector<16x512xbf16>
    %57 = tpu.concatenate %48, %49, %50, %51, %52, %53, %54, %55, %56 in 0 : vector<16x512xbf16>, vector<16x512xbf16>, vector<16x512xbf16>, vector<16x512xbf16>, vector<16x512xbf16>, vector<16x512xbf16>, vector<16x512xbf16>, vector<16x512xbf16>, vector<16x512xbf16> -> vector<144x512xbf16>
    %c1 = arith.constant 1 : index
    %c0_20 = arith.constant 0 : index
    %c0_21 = arith.constant 0 : index
    %58 = vector.load %arg3[%c1, %c0_20, %c0_21] : memref<3x16x144xbf16, #tpu.memory_space<vmem>>, vector<1x16x144xbf16>
    %59 = vector.shape_cast %58 : vector<1x16x144xbf16> to vector<16x144xbf16>
    %cst_22 = arith.constant dense<0.000000e+00> : vector<16x512xf32>
    %60 = tpu.matmul %59, %57, %cst_22 {dimension_numbers = #tpu.dot_dimension_numbers<[1], [0], [0], [1], [0, 0, 1, 1], [], []>} : vector<16x144xbf16>, vector<144x512xbf16>, vector<16x512xf32> -> vector<16x512xf32>
    %61 = arith.addf %47, %60 : vector<16x512xf32>
    %62 = vector.extract_strided_slice %34 {offsets = [0, 217], sizes = [16, 512], strides = [1, 1]} : vector<16x768xbf16> to vector<16x512xbf16>
    %63 = vector.extract_strided_slice %34 {offsets = [0, 218], sizes = [16, 512], strides = [1, 1]} : vector<16x768xbf16> to vector<16x512xbf16>
    %64 = vector.extract_strided_slice %34 {offsets = [0, 219], sizes = [16, 512], strides = [1, 1]} : vector<16x768xbf16> to vector<16x512xbf16>
    %65 = vector.extract_strided_slice %34 {offsets = [0, 227], sizes = [16, 512], strides = [1, 1]} : vector<16x768xbf16> to vector<16x512xbf16>
    %66 = vector.extract_strided_slice %34 {offsets = [0, 228], sizes = [16, 512], strides = [1, 1]} : vector<16x768xbf16> to vector<16x512xbf16>
    %67 = vector.extract_strided_slice %34 {offsets = [0, 229], sizes = [16, 512], strides = [1, 1]} : vector<16x768xbf16> to vector<16x512xbf16>
    %68 = vector.extract_strided_slice %34 {offsets = [0, 237], sizes = [16, 512], strides = [1, 1]} : vector<16x768xbf16> to vector<16x512xbf16>
    %69 = vector.extract_strided_slice %34 {offsets = [0, 238], sizes = [16, 512], strides = [1, 1]} : vector<16x768xbf16> to vector<16x512xbf16>
    %70 = vector.extract_strided_slice %34 {offsets = [0, 239], sizes = [16, 512], strides = [1, 1]} : vector<16x768xbf16> to vector<16x512xbf16>
    %71 = tpu.concatenate %62, %63, %64, %65, %66, %67, %68, %69, %70 in 0 : vector<16x512xbf16>, vector<16x512xbf16>, vector<16x512xbf16>, vector<16x512xbf16>, vector<16x512xbf16>, vector<16x512xbf16>, vector<16x512xbf16>, vector<16x512xbf16>, vector<16x512xbf16> -> vector<144x512xbf16>
    %c2 = arith.constant 2 : index
    %c0_23 = arith.constant 0 : index
    %c0_24 = arith.constant 0 : index
    %72 = vector.load %arg3[%c2, %c0_23, %c0_24] : memref<3x16x144xbf16, #tpu.memory_space<vmem>>, vector<1x16x144xbf16>
    %73 = vector.shape_cast %72 : vector<1x16x144xbf16> to vector<16x144xbf16>
    %cst_25 = arith.constant dense<0.000000e+00> : vector<16x512xf32>
    %74 = tpu.matmul %73, %71, %cst_25 {dimension_numbers = #tpu.dot_dimension_numbers<[1], [0], [0], [1], [0, 0, 1, 1], [], []>} : vector<16x144xbf16>, vector<144x512xbf16>, vector<16x512xf32> -> vector<16x512xf32>
    %75 = arith.addf %61, %74 : vector<16x512xf32>
    %c0_26 = arith.constant 0 : index
    %c0_27 = arith.constant 0 : index
    %76 = vector.load %arg6[%c0_26, %c0_27] : memref<16x512xf32, #tpu.memory_space<vmem>>, vector<16x512xf32>
    tpu.vector_store %arg6[%c0_26, %c0_27], %75 {strides = array<i32>} : memref<16x512xf32, #tpu.memory_space<vmem>>, vector<16x512xf32>,
    %c0_28 = arith.constant 0 : index
    %c128 = arith.constant 128 : index
    %77 = vector.load %arg10[%c0_28, %c128] : memref<1x768xf32, #tpu.memory_space<vmem>>, vector<1x512xf32>
    %cst_29 = arith.constant 0.000000e+00 : f32
    %78 = vector.broadcast %cst_29 : f32 to vector<1x512xf32>
    %79 = arith.cmpf ogt, %77, %78 : vector<1x512xf32>
    %cst_30 = arith.constant 0.000000e+00 : f32
    %80 = vector.shape_cast %79 : vector<1x512xi1> to vector<1x512xi1>
    %81 = vector.broadcast %80 : vector<1x512xi1> to vector<16x512xi1>
    %82 = vector.broadcast %cst_30 : f32 to vector<16x512xf32>
    %83 = arith.select %81, %75, %82 : vector<16x512xi1>, vector<16x512xf32>
    %cst_31 = arith.constant 1.000000e+00 : f32
    %84 = vector.broadcast %cst_31 : f32 to vector<512x128xf32>
    %cst_32 = arith.constant dense<0.000000e+00> : vector<16x128xf32>
    %85 = tpu.matmul %83, %84, %cst_32 {dimension_numbers = #tpu.dot_dimension_numbers<[1], [0], [0], [1], [0, 0, 1, 1], [], []>} : vector<16x512xf32>, vector<512x128xf32>, vector<16x128xf32> -> vector<16x128xf32>
    %86 = vector.extract_strided_slice %85 {offsets = [0, 0], sizes = [16, 1], strides = [1, 1]} : vector<16x128xf32> to vector<16x1xf32>
    %c0_33 = arith.constant 0 : index
    %c0_34 = arith.constant 0 : index
    %c0_35 = arith.constant 0 : index
    %87 = vector.load %arg7[%c0_33, %c0_34, %c0_35] : memref<1x16x1xf32, #tpu.memory_space<vmem>>, vector<1x16x1xf32>
    %88 = vector.shape_cast %87 : vector<1x16x1xf32> to vector<16x1xf32>
    %89 = vector.shape_cast %86 : vector<16x1xf32> to vector<1x16x1xf32>
    tpu.vector_store %arg7[%c0_33, %c0_34, %c0_35], %89 {strides = array<i32>} : memref<1x16x1xf32, #tpu.memory_space<vmem>>, vector<1x16x1xf32>,
    %90 = arith.mulf %83, %75 : vector<16x512xf32>
    %cst_36 = arith.constant dense<0.000000e+00> : vector<16x128xf32>
    %91 = tpu.matmul %90, %84, %cst_36 {dimension_numbers = #tpu.dot_dimension_numbers<[1], [0], [0], [1], [0, 0, 1, 1], [], []>} : vector<16x512xf32>, vector<512x128xf32>, vector<16x128xf32> -> vector<16x128xf32>
    %92 = vector.extract_strided_slice %91 {offsets = [0, 0], sizes = [16, 1], strides = [1, 1]} : vector<16x128xf32> to vector<16x1xf32>
    %c0_37 = arith.constant 0 : index
    %c0_38 = arith.constant 0 : index
    %c0_39 = arith.constant 0 : index
    %93 = vector.load %arg8[%c0_37, %c0_38, %c0_39] : memref<1x16x1xf32, #tpu.memory_space<vmem>>, vector<1x16x1xf32>
    %94 = vector.shape_cast %93 : vector<1x16x1xf32> to vector<16x1xf32>
    %95 = vector.shape_cast %92 : vector<16x1xf32> to vector<1x16x1xf32>
    tpu.vector_store %arg8[%c0_37, %c0_38, %c0_39], %95 {strides = array<i32>} : memref<1x16x1xf32, #tpu.memory_space<vmem>>, vector<1x16x1xf32>,
    return
  }
  func.func @transform_2(%arg0: i32) -> (i32, i32, i32) {
    %c0_i32 = arith.constant 0 : i32
    %c0_i32_0 = arith.constant 0 : i32
    %c0_i32_1 = arith.constant 0 : i32
    %c0_i32_2 = arith.constant 0 : i32
    return %c0_i32, %c0_i32_0, %c0_i32_1 : i32, i32, i32
  }
  func.func @transform_3(%arg0: i32) -> (i32, i32) {
    %c0_i32 = arith.constant 0 : i32
    %c0_i32_0 = arith.constant 0 : i32
    %c0_i32_1 = arith.constant 0 : i32
    return %c0_i32, %c0_i32_0 : i32, i32
  }
  func.func @transform_4(%arg0: i32) -> (i32, i32) {
    %c0_i32 = arith.constant 0 : i32
    %c0_i32_0 = arith.constant 0 : i32
    %c0_i32_1 = arith.constant 0 : i32
    return %c0_i32, %c0_i32_0 : i32, i32
  }
  func.func @transform_5(%arg0: i32) -> (i32, i32) {
    %c0_i32 = arith.constant 0 : i32
    %0 = arith.addi %arg0, %c0_i32 : i32
    %c0_i32_0 = arith.constant 0 : i32
    %c0_i32_1 = arith.constant 0 : i32
    return %c0_i32_0, %0 : i32, i32
  }
  func.func @transform_6(%arg0: i32) -> (i32, i32, i32) {
    %c0_i32 = arith.constant 0 : i32
    %c0_i32_0 = arith.constant 0 : i32
    %c0_i32_1 = arith.constant 0 : i32
    return %arg0, %c0_i32, %c0_i32_0 : i32, i32, i32
  }
  func.func @transform_7(%arg0: i32) -> (i32, i32, i32) {
    %c0_i32 = arith.constant 0 : i32
    %c0_i32_0 = arith.constant 0 : i32
    %c0_i32_1 = arith.constant 0 : i32
    return %arg0, %c0_i32, %c0_i32_0 : i32, i32, i32
  }
}

module attributes {stable_mosaic.version = 11 : i64} {
  func.func @_bn_res_relu_kernel(%arg0: i32, %arg1: memref<16x2048xf32, #tpu.memory_space<vmem>>, %arg2: memref<16x1xf32, #tpu.memory_space<vmem>>, %arg3: memref<16x1xf32, #tpu.memory_space<vmem>>, %arg4: memref<16x2048xf32, #tpu.memory_space<vmem>>, %arg5: memref<16x2048xf32, #tpu.memory_space<vmem>>) attributes {dimension_semantics = [#tpu.dimension_semantics<parallel>], iteration_bounds = array<i64: 1>, scalar_prefetch = 0 : i64, scratch_operands = 0 : i64, tpu.core_type = #tpu.core_type<tc>, window_params = [{transform_indices = @transform_0, window_bounds = array<i64: 16, 2048>}, {pipeline_mode = #tpu.pipeline_mode<synchronous>, transform_indices = @transform_1, window_bounds = array<i64: 16, 1>}, {pipeline_mode = #tpu.pipeline_mode<synchronous>, transform_indices = @transform_2, window_bounds = array<i64: 16, 1>}, {transform_indices = @transform_3, window_bounds = array<i64: 16, 2048>}, {transform_indices = @transform_4, window_bounds = array<i64: 16, 2048>}]} {
    %c0 = arith.constant 0 : index
    %c0_0 = arith.constant 0 : index
    %0 = vector.load %arg1[%c0, %c0_0] : memref<16x2048xf32, #tpu.memory_space<vmem>>, vector<16x2048xf32>
    %c0_1 = arith.constant 0 : index
    %c0_2 = arith.constant 0 : index
    %1 = vector.load %arg2[%c0_1, %c0_2] : memref<16x1xf32, #tpu.memory_space<vmem>>, vector<16x1xf32>
    %2 = vector.broadcast %1 : vector<16x1xf32> to vector<16x2048xf32>
    %3 = arith.mulf %0, %2 : vector<16x2048xf32>
    %c0_3 = arith.constant 0 : index
    %c0_4 = arith.constant 0 : index
    %4 = vector.load %arg3[%c0_3, %c0_4] : memref<16x1xf32, #tpu.memory_space<vmem>>, vector<16x1xf32>
    %5 = vector.broadcast %4 : vector<16x1xf32> to vector<16x2048xf32>
    %6 = arith.addf %3, %5 : vector<16x2048xf32>
    %c0_5 = arith.constant 0 : index
    %c0_6 = arith.constant 0 : index
    %7 = vector.load %arg4[%c0_5, %c0_6] : memref<16x2048xf32, #tpu.memory_space<vmem>>, vector<16x2048xf32>
    %8 = arith.addf %6, %7 : vector<16x2048xf32>
    %cst = arith.constant 0.000000e+00 : f32
    %9 = vector.broadcast %cst : f32 to vector<16x2048xf32>
    %10 = arith.maximumf %8, %9 : vector<16x2048xf32>
    %c0_7 = arith.constant 0 : index
    %c0_8 = arith.constant 0 : index
    %11 = vector.load %arg5[%c0_7, %c0_8] : memref<16x2048xf32, #tpu.memory_space<vmem>>, vector<16x2048xf32>
    tpu.vector_store %arg5[%c0_7, %c0_8], %10 {strides = array<i32>} : memref<16x2048xf32, #tpu.memory_space<vmem>>, vector<16x2048xf32>,
    return
  }
  func.func @transform_0(%arg0: i32) -> (i32, i32) {
    %c0_i32 = arith.constant 0 : i32
    %c0_i32_0 = arith.constant 0 : i32
    return %c0_i32, %arg0 : i32, i32
  }
  func.func @transform_1(%arg0: i32) -> (i32, i32) {
    %c0_i32 = arith.constant 0 : i32
    %c0_i32_0 = arith.constant 0 : i32
    %c0_i32_1 = arith.constant 0 : i32
    return %c0_i32, %c0_i32_0 : i32, i32
  }
  func.func @transform_2(%arg0: i32) -> (i32, i32) {
    %c0_i32 = arith.constant 0 : i32
    %c0_i32_0 = arith.constant 0 : i32
    %c0_i32_1 = arith.constant 0 : i32
    return %c0_i32, %c0_i32_0 : i32, i32
  }
  func.func @transform_3(%arg0: i32) -> (i32, i32) {
    %c0_i32 = arith.constant 0 : i32
    %c0_i32_0 = arith.constant 0 : i32
    return %c0_i32, %arg0 : i32, i32
  }
  func.func @transform_4(%arg0: i32) -> (i32, i32) {
    %c0_i32 = arith.constant 0 : i32
    %c0_i32_0 = arith.constant 0 : i32
    return %c0_i32, %arg0 : i32, i32
  }
}

</mosaic_0001>

<bundles_post_ra>
// kernel: basic_block_forward.3
= control target key start
LH: loop header
LB: loop body
LE: loop exit
PB: predicated region body
PF: predicated region fallthrough
CT: control target
= control target key end

     0   :  { %s2217_s24 = smov 0   ;;  %s2219_s25 = smov 0   ;;  %s3082_s0 = inlined_call_operand.vmem [shape: bf16[16,2304], index: 0, kind: input, shape index: {}]   ;;  %s3083_s1 = inlined_call_operand.vmem [shape: f32[1,2304], index: 1, kind: input, shape index: {}]   ;;  %s3084_s2 = inlined_call_operand.vmem [shape: bf16[3,16,144], index: 2, kind: input, shape index: {}]   ;;  %s3085_s3 = inlined_call_operand.vmem [shape: f32[16,1], index: 3, kind: input, shape index: {}, may-alias: {3,4}]   ;;  %s3086_s4 = inlined_call_operand.vmem [shape: f32[16,1], index: 4, kind: input, shape index: {}, may-alias: {3,4}]   ;;  %s3087_s5 = inlined_call_operand.vmem [shape: bf16[16,3072], index: 5, kind: output, shape index: {0}]   ;;  %s3088_s6 = inlined_call_operand.vmem [shape: f32[4,16,1], index: 6, kind: output, shape index: {1}]   ;;  %s3089_s7 = inlined_call_operand.vmem [shape: f32[4,16,1], index: 7, kind: output, shape index: {2}]  }
   0x1   :  { %s2221_s26 = smov 0  }
   0x2 LB: > { %s2228_s3 = sadd.s32 4294967295, %s2154_s26   ;;  %s2230_s4 = sadd.s32 1, %s2154_s26   ;;  %s2154_s26 = sphi %s2221_s26, %s3093_s26   ;;  %s2150_s25 = sphi %s2219_s25, %s3092_s25   ;;  %s2146_s24 = sphi %s2217_s24, %s3091_s24  }
   0x3   : > { %s86_s27 = sadd.s32 1, %s2230_s4  ;;  %s90_s28 = sadd.s32 1, %s2150_s25 }
   0x4   : > { %s87_s29 = ssub.s32 %s2230_s4, %s86_s27  ;;  %p100_p0 = scmp.ne.s32.totalorder %s2150_s25, %s2146_s24 }
   0x5   : > { %p88_p1 = scmp.eq.s32.totalorder %s87_s29, 0  ;;  %p101_p2 = scmp.eq.s32.totalorder %s2228_s3, 3 }
   0x6   : > { %p1864_p3 = scmp.ge.s32.totalorder %s2154_s26, 1  ;;  %p186_p4 = scmp.lt.s32.totalorder %s2154_s26, 5 }
   0x7   : > { %s2238_s30 = scalar_select %p88_p1, %s2150_s25, %s90_s28  }
   0x8   : > { %p2240_p5 = por %p101_p2, %p100_p0  ;;  %p187_p6 = pnand %p1864_p3, %p186_p4 }
   0x9   : > { %s201_s9 = sand.u32 (!%p187_p6), 1, %s2146_s24   ;;  %p220_p7 = scmp.lt.s32.totalorder (!%p187_p6), %s2228_s3, 3 }
   0xa   : > { %190 = sbr.rel (%p187_p6) target bundleno = 983 (0x3d7), region = 32  ;;  %s1865_s10 = sshll.u32 (!%p187_p6), %s201_s9, 5 }
   0xb   : > { %s1870_s11 = sshll.u32 (!%p187_p6), %s2228_s3, 9  ;;  %s2260_s26 = scalar_lea.vmem (!%p187_p6), [#allocation5], %s1865_s10 }
   0xc   : > { %s232_s12 = sshra.s32 (!%p187_p6), %s1870_s11, 7 }
   0xd   : > { %s1871_s14 = sshll.u32 (!%p187_p6), %s232_s12, 2 }
   0xe   : > { %s235_s18 = scalar_lea.vmem (!%p187_p6), %s3082_s0, %s1871_s14 }
   0xf   : > { %s221_s13 = scalar_select %p220_p7, %s2228_s3, 3  ;;  %v271_v0 = vld [vmem:[%s235_s18] sm:$0xff]  ;;  %v273_v1 = vld [vmem:[%s235_s18 + $0x8] sm:$0xff]  ;;  %v275_v2 = vld [vmem:[%s235_s18 + $0x10] sm:$0xff] }
  0x10   : > { %v277_v3 = vld [vmem:[%s235_s18 + $0x48] sm:$0xff]  ;;  %v279_v4 = vld [vmem:[%s235_s18 + $0x50] sm:$0xff]  ;;  %v281_v5 = vld [vmem:[%s235_s18 + $0x58] sm:$0xff] }
  0x11   : > { %s1916_s15 = sshll.u32 %s221_s13, 4 }
  0x12   : > { %s2253_s21 = scalar_lea.vmem %s3088_s6, %s1916_s15  ;;  %s2258_s24 = scalar_lea.vmem %s3089_s7, %s1916_s15 }
  0x13   : > { %290 = vsyncadd [#allocation4], 768  ;;  %s291_s29 = scalar_lea.vmem %s3083_s1, %s232_s12 }
  0x14   : > { %v311_v6 = vld [vmem:[%s291_s29] sm:$0x3f] }
  0x15   : > { %312 = vst [vmem:[#allocation3] sm:$0x3f] %v311_v6 }
  0x16   : > { %338 = vsyncadd [#allocation4 + $0x1], 96 }
  0x17   : > { %2140 = dma.done.wait [#allocation4], 768 }
  0x18   : > { %2141 = vsyncadd [#allocation4], 4294966528  ;;  %v2265_v7 = vcombine.high %v273_v1, %v279_v4  ;;  %v2267_v8 = vcombine.high %v271_v0, %v277_v3 }
  0x19   : > { %2142 = dma.done.wait [#allocation4 + $0x1], 96 }
  0x1a   : > { %2143 = vsyncadd [#allocation4 + $0x1], 4294967200  ;;  %s2156_s9 = smov 107   ;;  %v2273_v9 = vcombine.low %v275_v2, %v281_v5  ;;  %v2275_v10 = vcombine.low %v273_v1, %v279_v4  ;;  %v2281_v11 = vcombine.high %v275_v2, %v281_v5  ;;  %s2157_s10 = smov 108   ;;  %v2316_v12 = vcombine.low %v271_v0, %v277_v3 }
  0x1b   : > { %469 = vrot.lane.b32.xlu1 %v2265_v7, %s2156_s9  ;;  %465 = vrot.lane.b32.xlu0 %v2267_v8, %s2156_s9  ;;  %s2158_s11 = smov 116   ;;  %s2159_s12 = smov 117   ;;  %vm473_vm0 = vcmask 875520   ;;  %vm458_vm1 = vcmask 883712   ;;  %vm443_vm2 = vcmask 949248   ;;  %vm428_vm3 = vcmask 957440  }
  0x1c   : > { %s2160_s13 = smov 118   ;;  %s2161_s14 = smov 126   ;;  %vm413_vm4 = vcmask 965632   ;;  %vm398_vm5 = vcmask 1031168   ;;  %vm383_vm6 = vcmask 1039360   ;;  %vm488_vm7 = vcmask 867328  }
  0x1d   : > { %s2162_s15 = smov 127   ;;  %s2163_s16 = smov 106   ;;  %vm685_vm8 = vcmask 130048   ;;  %vm612_vm9 = vcmask 89088   ;;  %vm874_vm10 = vcmask 908288   ;;  %vm1179_vm11 = vcmask 146432  }
  0x1e   : > { %s2164_s17 = smov 11   ;;  %s2165_s18 = smov 111   ;;  %vm1160_vm12 = vcmask 154624   ;;  %vm1141_vm13 = vcmask 220160   ;;  %vm1122_vm14 = vcmask 228352   ;;  %vm1103_vm15 = vcmask 236544  }
  0x1f   : > { %471 = vrot.lane.b32.xlu1 %v2273_v9, %s2156_s9  ;;  %467 = vrot.lane.b32.xlu0 %v2275_v10, %s2156_s9  ;;  %s2166_s22 = smov 18   ;;  %s2167_s23 = smov 19  }
  0x20   : > { %s2168_s27 = smov 27   ;;  %s2169_s28 = smov 28  }
  0x23   : > { %450 = vrot.lane.b32.xlu1 %v2267_v8, %s2157_s10  ;;  %504 = vrot.lane.b32.xlu0 %v2281_v11, %s2156_s9 }
  0x27   : > { %454 = vrot.lane.b32.xlu1 %v2265_v7, %s2157_s10  ;;  %452 = vrot.lane.b32.xlu0 %v2275_v10, %s2157_s10 }
  0x2b   : > { %501 = vrot.lane.b32.xlu1 %v2281_v11, %s2157_s10  ;;  %456 = vrot.lane.b32.xlu0 %v2273_v9, %s2157_s10 }
  0x2f   : > { %437 = vrot.lane.b32.xlu1 %v2275_v10, %s2158_s11  ;;  %435 = vrot.lane.b32.xlu0 %v2267_v8, %s2158_s11 }
  0x33   : > { %441 = vrot.lane.b32.xlu1 %v2273_v9, %s2158_s11  ;;  %439 = vrot.lane.b32.xlu0 %v2265_v7, %s2158_s11 }
  0x37   : > { %420 = vrot.lane.b32.xlu1 %v2267_v8, %s2159_s12  ;;  %498 = vrot.lane.b32.xlu0 %v2281_v11, %s2158_s11 }
  0x3b   : > { %424 = vrot.lane.b32.xlu1 %v2265_v7, %s2159_s12  ;;  %422 = vrot.lane.b32.xlu0 %v2275_v10, %s2159_s12 }
  0x3f   : > { %405 = vrot.lane.b32.xlu1 %v2267_v8, %s2160_s13  ;;  %426 = vrot.lane.b32.xlu0 %v2273_v9, %s2159_s12 }
  0x43   : > { %409 = vrot.lane.b32.xlu1 %v2265_v7, %s2160_s13  ;;  %407 = vrot.lane.b32.xlu0 %v2275_v10, %s2160_s13 }
  0x47   : > { %411 = vrot.lane.b32.xlu0 %v2273_v9, %s2160_s13  ;;  %403 = vrot.lane.b32.xlu1 %v2316_v12, %s2160_s13  ;;  %s2171_s13 = smov 37  }
  0x4b   : > { %390 = vrot.lane.b32.xlu0 %v2267_v8, %s2161_s14  ;;  %392 = vrot.lane.b32.xlu1 %v2275_v10, %s2161_s14 }
  0x4f   : > { %394 = vrot.lane.b32.xlu0 %v2265_v7, %s2161_s14  ;;  %396 = vrot.lane.b32.xlu1 %v2273_v9, %s2161_s14 }
  0x53   : > { %388 = vrot.lane.b32.xlu0 %v2316_v12, %s2161_s14  ;;  %375 = vrot.lane.b32.xlu1 %v2267_v8, %s2162_s15  ;;  %s2172_s14 = smov 38  }
  0x57   : > { %377 = vrot.lane.b32.xlu0 %v2275_v10, %s2162_s15  ;;  %379 = vrot.lane.b32.xlu1 %v2265_v7, %s2162_s15 }
  0x5b   : > { %381 = vrot.lane.b32.xlu0 %v2273_v9, %s2162_s15  ;;  %373 = vrot.lane.b32.xlu1 %v2316_v12, %s2162_s15  ;;  %s2173_s15 = smov 39  }
  0x5f   : > { %480 = vrot.lane.b32.xlu0 %v2267_v8, %s2163_s16  ;;  %482 = vrot.lane.b32.xlu1 %v2275_v10, %s2163_s16 }
  0x63   : > { %484 = vrot.lane.b32.xlu0 %v2265_v7, %s2163_s16  ;;  %486 = vrot.lane.b32.xlu1 %v2273_v9, %s2163_s16 }
  0x67   : > { %507 = vrot.lane.b32.xlu0 %v2281_v11, %s2163_s16  ;;  %463 = vrot.lane.b32.xlu1 %v2316_v12, %s2156_s9 }
  0x6b   : > { %448 = vrot.lane.b32.xlu0 %v2316_v12, %s2157_s10  ;;  %433 = vrot.lane.b32.xlu1 %v2316_v12, %s2158_s11 }
  0x6f   : > { %418 = vrot.lane.b32.xlu0 %v2316_v12, %s2159_s12  ;;  %s2170_s12 = smov 29  }
  0x73   : > { %478 = vrot.lane.b32.xlu0 %v2316_v12, %s2163_s16  ;;  %s2174_s16 = smov 17  }
  0x8d   : > { %v470_v13 = vpop.permute.xlu1 %469  ;;  %v2344_v14 = vpop.permute.xlu0 %465 }
  0x8e   : > { %592 = vrot.lane.b32.xlu1 %v2344_v14, %s2164_s17 }
  0x91   : > { %v2348_v15 = vpop.permute.xlu1 %471  ;;  %v468_v16 = vpop.permute.xlu0 %467 }
  0x92   : > { %v2355_v21 = vsel %vm473_vm0, %v468_v16, %v470_v13  ;;  %v2382_v31 = vsel %vm473_vm0, %v2344_v14, %v468_v16  ;;  %v2395_v35 = vsel %vm473_vm0, %v470_v13, %v2348_v15 }
  0x95   : > { %v2350_v17 = vpop.permute.xlu1 %450  ;;  %v505_v18 = vpop.permute.xlu0 %504 }
  0x96   : > { %582 = vrot.lane.b32.xlu0 %v2350_v17, %s2164_s17  ;;  %v506_v24 = vsel %vm473_vm0, %v2348_v15, %v505_v18 }
  0x99   : > { %v455_v19 = vpop.permute.xlu1 %454  ;;  %v453_v20 = vpop.permute.xlu0 %452 }
  0x9a   : > { %596 = vrot.lane.b32.xlu0 %v2355_v21, %s2164_s17  ;;  %v2368_v27 = vsel %vm458_vm1, %v2350_v17, %v453_v20  ;;  %v2404_v39 = vsel %vm458_vm1, %v453_v20, %v455_v19 }
  0x9d   : > { %v502_v22 = vpop.permute.xlu1 %501  ;;  %v2359_v23 = vpop.permute.xlu0 %456 }
  0x9e   : > { %600 = vrot.lane.b32.xlu0 %v506_v24, %s2164_s17  ;;  %v2378_v30 = vsel %vm458_vm1, %v455_v19, %v2359_v23  ;;  %v503_v43 = vsel %vm458_vm1, %v2359_v23, %v502_v22 }
  0xa1   : > { %v438_v25 = vpop.permute.xlu1 %437  ;;  %v2364_v26 = vpop.permute.xlu0 %435 }
  0xa2   : > { %584 = vrot.lane.b32.xlu0 %v2368_v27, %s2164_s17  ;;  %572 = vrot.lane.b32.xlu1 %v2364_v26, %s2164_s17  ;;  %v2421_v46 = vsel %vm443_vm2, %v2364_v26, %v438_v25 }
  0xa5   : > { %v2374_v28 = vpop.permute.xlu1 %441  ;;  %v440_v29 = vpop.permute.xlu0 %439 }
  0xa6   : > { %588 = vrot.lane.b32.xlu0 %v2378_v30, %s2164_s17  ;;  %594 = vrot.lane.b32.xlu1 %v2382_v31, %s2164_s17  ;;  %v2389_v32 = vsel %vm443_vm2, %v438_v25, %v440_v29  ;;  %v2434_v50 = vsel %vm443_vm2, %v440_v29, %v2374_v28 }
  0xa9   : > { %v2391_v33 = vpop.permute.xlu1 %420  ;;  %v499_v34 = vpop.permute.xlu0 %498 }
  0xaa   : > { %576 = vrot.lane.b32.xlu0 %v2389_v32, %s2164_s17  ;;  %598 = vrot.lane.b32.xlu1 %v2395_v35, %s2164_s17  ;;  %v500_v36 = vsel %vm443_vm2, %v2374_v28, %v499_v34 }
  0xad   : > { %v425_v37 = vpop.permute.xlu1 %424  ;;  %v423_v38 = vpop.permute.xlu0 %422 }
  0xae   : > { %580 = vrot.lane.b32.xlu0 %v500_v36, %s2164_s17  ;;  %586 = vrot.lane.b32.xlu1 %v2404_v39, %s2164_s17  ;;  %v2410_v40 = vsel %vm428_vm3, %v423_v38, %v425_v37  ;;  %v2446_v54 = vsel %vm428_vm3, %v2391_v33, %v423_v38  ;;  %v2121_v36 = vld [vmem:[%s3084_s2 + $0x14] ss:$8 sps:$4 sm:$0xff]  }
  0xaf   : > { %1883 = vmatprep.mubr.msk.bf16.mxu1 %vm685_vm8, %v2121_v36  ;;  %1882 = vmatprep.mubr.msk.bf16.mxu0 %vm685_vm8, %v2121_v36 }
  0xb1   : > { %v406_v41 = vpop.permute.xlu1 %405  ;;  %v2412_v42 = vpop.permute.xlu0 %426 }
  0xb2   : > { %566 = vrot.lane.b32.xlu0 %v2410_v40, %s2164_s17  ;;  %590 = vrot.lane.b32.xlu1 %v503_v43, %s2164_s17  ;;  %v2459_v58 = vsel %vm428_vm3, %v425_v37, %v2412_v42 }
  0xb5   : > { %v410_v44 = vpop.permute.xlu1 %409  ;;  %v408_v45 = vpop.permute.xlu0 %407 }
  0xb6   : > { %570 = vrot.lane.b32.xlu0 %v2412_v42, %s2164_s17  ;;  %574 = vrot.lane.b32.xlu1 %v2421_v46, %s2164_s17  ;;  %v2428_v47 = vsel %vm413_vm4, %v406_v41, %v408_v45  ;;  %v2473_v63 = vsel %vm413_vm4, %v408_v45, %v410_v44 }
  0xb9   : > { %v2430_v48 = vpop.permute.xlu0 %411  ;;  %v404_v49 = vpop.permute.xlu1 %403 }
  0xba   : > { %554 = vrot.lane.b32.xlu0 %v2428_v47, %s2164_s17  ;;  %578 = vrot.lane.b32.xlu1 %v2434_v50, %s2164_s17  ;;  %v2442_v51 = vsel %vm413_vm4, %v410_v44, %v2430_v48  ;;  %v2453_v55 = vsel %vm413_vm4, %v404_v49, %v406_v41 }
  0xbd   : > { %v391_v52 = vpop.permute.xlu0 %390  ;;  %v393_v53 = vpop.permute.xlu1 %392 }
  0xbe   : > { %558 = vrot.lane.b32.xlu0 %v2442_v51, %s2164_s17  ;;  %564 = vrot.lane.b32.xlu1 %v2446_v54, %s2164_s17  ;;  %v2493_v4 = vsel %vm398_vm5, %v391_v52, %v393_v53 }
  0xc1   : > { %v395_v56 = vpop.permute.xlu0 %394  ;;  %v2455_v57 = vpop.permute.xlu1 %396 }
  0xc2   : > { %568 = vrot.lane.b32.xlu1 %v2459_v58, %s2164_s17  ;;  %552 = vrot.lane.b32.xlu0 %v2453_v55, %s2164_s17  ;;  %v2466_v59 = vsel %vm398_vm5, %v393_v53, %v395_v56  ;;  %v2504_v13 = vsel %vm398_vm5, %v395_v56, %v2455_v57 }
  0xc5   : > { %v389_v60 = vpop.permute.xlu0 %388  ;;  %v376_v61 = vpop.permute.xlu1 %375 }
  0xc6   : > { %562 = vrot.lane.b32.xlu1 %v2391_v33, %s2164_s17  ;;  %546 = vrot.lane.b32.xlu0 %v2466_v59, %s2164_s17  ;;  %v2511_v16 = vsel %vm398_vm5, %v389_v60, %v391_v52 }
  0xc9   : > { %v378_v62 = vpop.permute.xlu0 %377  ;;  %v380_v1 = vpop.permute.xlu1 %379 }
  0xca   : > { %556 = vrot.lane.b32.xlu1 %v2473_v63, %s2164_s17  ;;  %550 = vrot.lane.b32.xlu0 %v2455_v57, %s2164_s17  ;;  %v2480_v0 = vsel %vm383_vm6, %v376_v61, %v378_v62  ;;  %v2520_v20 = vsel %vm383_vm6, %v378_v62, %v380_v1 }
  0xcd   : > { %v2482_v2 = vpop.permute.xlu0 %381  ;;  %v374_v5 = vpop.permute.xlu1 %373 }
  0xce   : > { %560 = vrot.lane.b32.xlu1 %v2430_v48, %s2164_s17  ;;  %534 = vrot.lane.b32.xlu0 %v2480_v0, %s2164_s17  ;;  %v2490_v3 = vsel %vm383_vm6, %v380_v1, %v2482_v2  ;;  %v2500_v6 = vsel %vm383_vm6, %v374_v5, %v376_v61 }
  0xd1   : > { %v2517_v18 = vpop.permute.xlu0 %480  ;;  %v483_v19 = vpop.permute.xlu1 %482 }
  0xd2   : > { %544 = vrot.lane.b32.xlu1 %v2493_v4, %s2164_s17  ;;  %538 = vrot.lane.b32.xlu0 %v2490_v3, %s2164_s17  ;;  %v2528_v22 = vsel %vm488_vm7, %v2517_v18, %v483_v19 }
  0xd5   : > { %v485_v24 = vpop.permute.xlu0 %484  ;;  %v2530_v25 = vpop.permute.xlu1 %486 }
  0xd6   : > { %548 = vrot.lane.b32.xlu1 %v2504_v13, %s2164_s17  ;;  %532 = vrot.lane.b32.xlu0 %v2500_v6, %s2164_s17  ;;  %v2538_v29 = vsel %vm488_vm7, %v485_v24, %v2530_v25  ;;  %v2553_v34 = vsel %vm488_vm7, %v483_v19, %v485_v24 }
  0xd9   : > { %v508_v37 = vpop.permute.xlu0 %507  ;;  %v464_v41 = vpop.permute.xlu1 %463 }
  0xda   : > { %542 = vrot.lane.b32.xlu1 %v2511_v16, %s2164_s17  ;;  %526 = vrot.lane.b32.xlu0 %v2275_v10, %s2164_s17 }
  0xdd   : > { %v449_v38 = vpop.permute.xlu0 %448 }
  0xde   : > { %536 = vrot.lane.b32.xlu1 %v2520_v20, %s2164_s17  ;;  %530 = vrot.lane.b32.xlu0 %v2273_v9, %s2164_s17 }
  0xe1   : > { %v419_v43 = vpop.permute.xlu0 %418 }
  0xe2   : > { %540 = vrot.lane.b32.xlu1 %v2482_v2, %s2164_s17  ;;  %604 = vrot.lane.b32.xlu0 %v2528_v22, %s2164_s17 }
  0xe6   : > { %524 = vrot.lane.b32.xlu1 %v2267_v8, %s2164_s17  ;;  %608 = vrot.lane.b32.xlu0 %v2538_v29, %s2164_s17 }
  0xea   : > { %528 = vrot.lane.b32.xlu1 %v2265_v7, %s2164_s17  ;;  %602 = vrot.lane.b32.xlu0 %v2517_v18, %s2164_s17 }
  0xee   : > { %522 = vrot.lane.b32.xlu1 %v2316_v12, %s2164_s17  ;;  %858 = vrot.lane.b32.xlu0 %v2355_v21, %s2165_s18  ;;  %v509_v21 = vsel %vm488_vm7, %v2530_v25, %v508_v37 }
  0xf2   : > { %606 = vrot.lane.b32.xlu1 %v2553_v34, %s2164_s17  ;;  %862 = vrot.lane.b32.xlu0 %v2348_v15, %s2165_s18  ;;  %v459_v15 = vsel %vm458_vm1, %v449_v38, %v2350_v17  ;;  %vm1065_vm1 = vcmask 310272  }
  0xf6   : > { %610 = vrot.lane.b32.xlu1 %v509_v21, %s2164_s17  ;;  %846 = vrot.lane.b32.xlu0 %v2368_v27, %s2165_s18  ;;  %v474_v27 = vsel %vm473_vm0, %v464_v41, %v2344_v14  ;;  %v434_v14 = vpop.permute.xlu1 %433  ;;  %vm1084_vm0 = vcmask 302080  }
  0xf7   : > { %v444_v44 = vsel %vm443_vm2, %v434_v14, %v2364_v26  ;;  %vm1046_vm2 = vcmask 318464  }
  0xfa   : > { %856 = vrot.lane.b32.xlu1 %v2382_v31, %s2165_s18  ;;  %850 = vrot.lane.b32.xlu0 %v2378_v30, %s2165_s18  ;;  %v2583_v31 = vpop.permute.xlu0 %478 }
  0xfe   : > { %860 = vrot.lane.b32.xlu1 %v2395_v35, %s2165_s18  ;;  %844 = vrot.lane.b32.xlu0 %v459_v15, %s2165_s18  ;;  %v429_v35 = vsel %vm428_vm3, %v419_v43, %v2391_v33  ;;  %vm1198_vm3 = vcmask 138240  }
 0x102   : > { %838 = vrot.lane.b32.xlu0 %v2389_v32, %s2165_s18  ;;  %854 = vrot.lane.b32.xlu1 %v474_v27, %s2165_s18  ;;  %v593_v32 = vpop.permute.xlu1 %592 }
 0x106   : > { %842 = vrot.lane.b32.xlu0 %v2374_v28, %s2165_s18  ;;  %848 = vrot.lane.b32.xlu1 %v2404_v39, %s2165_s18 }
 0x108   : > { %v583_v17 = vpop.permute.xlu0 %582 }
 0x10a   : > { %826 = vrot.lane.b32.xlu0 %v2446_v54, %s2165_s18  ;;  %852 = vrot.lane.b32.xlu1 %v2359_v23, %s2165_s18 }
 0x10c   : > { %v597_v30 = vpop.permute.xlu0 %596 }
 0x10e   : > { %830 = vrot.lane.b32.xlu0 %v2459_v58, %s2165_s18  ;;  %836 = vrot.lane.b32.xlu1 %v2421_v46, %s2165_s18 }
 0x110   : > { %v601_v28 = vpop.permute.xlu0 %600 }
 0x112   : > { %824 = vrot.lane.b32.xlu0 %v429_v35, %s2165_s18  ;;  %840 = vrot.lane.b32.xlu1 %v2434_v50, %s2165_s18 }
 0x114   : > { %v585_v39 = vpop.permute.xlu0 %584  ;;  %v573_v23 = vpop.permute.xlu1 %572 }
 0x115   : > { %v637_v56 = vsel %vm612_vm9, %v583_v17, %v585_v39 }
 0x116   : > { %818 = vrot.lane.b32.xlu0 %v2473_v63, %s2165_s18  ;;  %834 = vrot.lane.b32.xlu1 %v444_v44, %s2165_s18 }
 0x118   : > { %v589_v45 = vpop.permute.xlu0 %588  ;;  %v595_v46 = vpop.permute.xlu1 %594 }
 0x119   : > { %v642_v33 = vsel %vm612_vm9, %v595_v46, %v597_v30  ;;  %v641_v49 = vsel %vm612_vm9, %v593_v32, %v595_v46 }
 0x11a   : > { %822 = vrot.lane.b32.xlu0 %v2430_v48, %s2165_s18  ;;  %828 = vrot.lane.b32.xlu1 %v2410_v40, %s2165_s18 }
 0x11b   : > { %689 = vmatprep.subr.bf16.mxu0 %v642_v33 }
 0x11c   : > { %690 = vmatpush1.bf16.msra.mxu0 %v641_v49  ;;  %v577_v26 = vpop.permute.xlu0 %576  ;;  %v599_v50 = vpop.permute.xlu1 %598 }
 0x11d   : > { %v644_v52 = vsel %vm612_vm9, %v599_v50, %v601_v28  ;;  %v643_v53 = vsel %vm612_vm9, %v597_v30, %v599_v50 }
 0x11e   : > { %806 = vrot.lane.b32.xlu0 %v2493_v4, %s2165_s18  ;;  %832 = vrot.lane.b32.xlu1 %v2412_v42, %s2165_s18 }
 0x11f   : > { %732 = vmatprep.subr.bf16.mxu1 %v644_v52 }
 0x120   : > { %733 = vmatpush1.bf16.msra.mxu1 %v643_v53  ;;  %v581_v48 = vpop.permute.xlu0 %580  ;;  %v587_v54 = vpop.permute.xlu1 %586 }
 0x121   : > { %v638_v40 = vsel %vm612_vm9, %v585_v39, %v587_v54  ;;  %v639_v61 = vsel %vm612_vm9, %v587_v54, %v589_v45 }
 0x122   : > { %810 = vrot.lane.b32.xlu0 %v2504_v13, %s2165_s18  ;;  %816 = vrot.lane.b32.xlu1 %v2428_v47, %s2165_s18 }
 0x123   : > { %691 = vmatprep.subr.bf16.mxu0 %v638_v40 }
 0x124   : > { %692 = vmatpush1.bf16.msra.mxu0 %v637_v56  ;;  %v567_v58 = vpop.permute.xlu0 %566  ;;  %v591_v60 = vpop.permute.xlu1 %590 }
 0x125   : > { %v640_v42 = vsel %vm612_vm9, %v589_v45, %v591_v60 }
 0x126   : > { %804 = vrot.lane.b32.xlu0 %v2511_v16, %s2165_s18  ;;  %820 = vrot.lane.b32.xlu1 %v2442_v51, %s2165_s18 }
 0x127   : > { %734 = vmatprep.subr.bf16.mxu1 %v640_v42 }
 0x128   : > { %735 = vmatpush1.bf16.msra.mxu1 %v639_v61  ;;  %v571_v62 = vpop.permute.xlu0 %570  ;;  %v575_v47 = vpop.permute.xlu1 %574 }
 0x129   : > { %v634_v63 = vsel %vm612_vm9, %v575_v47, %v577_v26  ;;  %v633_v1 = vsel %vm612_vm9, %v573_v23, %v575_v47 }
 0x12a   : > { %798 = vrot.lane.b32.xlu0 %v2520_v20, %s2165_s18  ;;  %814 = vrot.lane.b32.xlu1 %v2453_v55, %s2165_s18 }
 0x12b   : > { %693 = vmatprep.subr.bf16.mxu0 %v634_v63 }
 0x12c   : > { %694 = vmatpush1.bf16.msra.mxu0 %v633_v1  ;;  %v555_v4 = vpop.permute.xlu0 %554  ;;  %v579_v51 = vpop.permute.xlu1 %578  ;;  %v2122_v1 = vld [vmem:[%s3084_s2 + $0x4] ss:$8 sps:$4 sm:$0xff]  }
 0x12d   : > { %v636_v5 = vsel %vm612_vm9, %v579_v51, %v581_v48  ;;  %v635_v13 = vsel %vm612_vm9, %v577_v26, %v579_v51  ;;  %v2119_v51 = vld [vmem:[%s3084_s2 + $0x10] ss:$8 sps:$4 sm:$0xff]  }
 0x12e   : > { %802 = vrot.lane.b32.xlu0 %v2482_v2, %s2165_s18  ;;  %808 = vrot.lane.b32.xlu1 %v2466_v59, %s2165_s18 }
 0x12f   : > { %736 = vmatprep.subr.bf16.mxu1 %v636_v5 }
 0x130   : > { %737 = vmatpush1.bf16.msra.mxu1 %v635_v13  ;;  %v559_v16 = vpop.permute.xlu0 %558  ;;  %v565_v19 = vpop.permute.xlu1 %564 }
 0x131   : > { %v630_v55 = vsel %vm612_vm9, %v565_v19, %v567_v58 }
 0x132   : > { %786 = vrot.lane.b32.xlu0 %v2267_v8, %s2165_s18  ;;  %812 = vrot.lane.b32.xlu1 %v2455_v57, %s2165_s18 }
 0x133   : > { %695 = vmatprep.subr.bf16.mxu0 %v630_v55 }
 0x134   : > { %v553_v20 = vpop.permute.xlu0 %552  ;;  %v569_v24 = vpop.permute.xlu1 %568 }
 0x135   : > { %v632_v2 = vsel %vm612_vm9, %v569_v24, %v571_v62  ;;  %v631_v36 = vsel %vm612_vm9, %v567_v58, %v569_v24 }
 0x136   : > { %790 = vrot.lane.b32.xlu0 %v2265_v7, %s2165_s18  ;;  %796 = vrot.lane.b32.xlu1 %v2480_v0, %s2165_s18  ;;  %v625_v0 = vsel %vm612_vm9, %v553_v20, %v555_v4 }
 0x137   : > { %738 = vmatprep.subr.bf16.mxu1 %v632_v2 }
 0x138   : > { %739 = vmatpush1.bf16.msra.mxu1 %v631_v36  ;;  %v547_v59 = vpop.permute.xlu0 %546  ;;  %v563_v37 = vpop.permute.xlu1 %562 }
 0x139   : > { %v629_v21 = vsel %vm612_vm9, %v563_v37, %v565_v19 }
 0x13a   : > { %784 = vrot.lane.b32.xlu0 %v2316_v12, %s2165_s18  ;;  %800 = vrot.lane.b32.xlu1 %v2490_v3, %s2165_s18 }
 0x13b   : > { %696 = vmatpush1.bf16.msra.mxu0 %v629_v21 }
 0x13c   : > { %v551_v57 = vpop.permute.xlu0 %550  ;;  %v557_v38 = vpop.permute.xlu1 %556 }
 0x13d   : > { %v626_v15 = vsel %vm612_vm9, %v555_v4, %v557_v38  ;;  %v627_v3 = vsel %vm612_vm9, %v557_v38, %v559_v16 }
 0x13e   : > { %868 = vrot.lane.b32.xlu0 %v2553_v34, %s2165_s18  ;;  %794 = vrot.lane.b32.xlu1 %v2500_v6, %s2165_s18 }
 0x13f   : > { %697 = vmatprep.subr.bf16.mxu0 %v626_v15 }
 0x140   : > { %698 = vmatpush1.bf16.msra.mxu0 %v625_v0  ;;  %v535_v41 = vpop.permute.xlu0 %534  ;;  %v561_v12 = vpop.permute.xlu1 %560 }
 0x141   : > { %v628_v43 = vsel %vm612_vm9, %v559_v16, %v561_v12 }
 0x142   : > { %872 = vrot.lane.b32.xlu0 %v2530_v25, %s2165_s18  ;;  %788 = vrot.lane.b32.xlu1 %v2275_v10, %s2165_s18 }
 0x143   : > { %740 = vmatprep.subr.bf16.mxu1 %v628_v43 }
 0x144   : > { %741 = vmatpush1.bf16.msra.mxu1 %v627_v3  ;;  %v539_v34 = vpop.permute.xlu0 %538  ;;  %v545_v6 = vpop.permute.xlu1 %544 }
 0x145   : > { %v622_v27 = vsel %vm612_vm9, %v545_v6, %v547_v59 }
 0x146   : > { %792 = vrot.lane.b32.xlu1 %v2273_v9, %s2165_s18  ;;  %699 = vmatprep.subr.bf16.mxu0 %v622_v27 }
 0x147   : > { %1171 = vrot.lane.b32.xlu0 %v2275_v10, %s2166_s22 }
 0x148   : > { %v533_v25 = vpop.permute.xlu0 %532  ;;  %v549_v17 = vpop.permute.xlu1 %548 }
 0x149   : > { %v624_v14 = vsel %vm612_vm9, %v549_v17, %v551_v57  ;;  %v623_v30 = vsel %vm612_vm9, %v547_v59, %v549_v17  ;;  %v617_v45 = vsel %vm612_vm9, %v533_v25, %v535_v41 }
 0x14a   : > { %866 = vrot.lane.b32.xlu1 %v2528_v22, %s2165_s18  ;;  %742 = vmatprep.subr.bf16.mxu1 %v624_v14  ;;  %v489_v22 = vsel %vm488_vm7, %v2583_v31, %v2517_v18 }
 0x14b   : > { %743 = vmatpush1.bf16.msra.mxu1 %v623_v30  ;;  %1175 = vrot.lane.b32.xlu0 %v2273_v9, %s2166_s22 }
 0x14c   : > { %v527_v32 = vpop.permute.xlu0 %526  ;;  %v543_v28 = vpop.permute.xlu1 %542 }
 0x14d   : > { %v621_v35 = vsel %vm612_vm9, %v543_v28, %v545_v6 }
 0x14e   : > { %870 = vrot.lane.b32.xlu1 %v2538_v29, %s2165_s18  ;;  %700 = vmatpush1.bf16.msra.mxu0 %v621_v35 }
 0x14f   : > { %1169 = vrot.lane.b32.xlu0 %v2267_v8, %s2166_s22 }
 0x150   : > { %v531_v39 = vpop.permute.xlu0 %530  ;;  %v537_v23 = vpop.permute.xlu1 %536 }
 0x151   : > { %v618_v44 = vsel %vm612_vm9, %v535_v41, %v537_v23  ;;  %v619_v18 = vsel %vm612_vm9, %v537_v23, %v539_v34 }
 0x152   : > { %864 = vrot.lane.b32.xlu1 %v489_v22, %s2165_s18  ;;  %701 = vmatprep.subr.bf16.mxu0 %v618_v44 }
 0x153   : > { %702 = vmatpush1.bf16.msra.mxu0 %v617_v45  ;;  %1154 = vrot.lane.b32.xlu0 %v2265_v7, %s2167_s23 }
 0x154   : > { %v605_v29 = vpop.permute.xlu0 %604  ;;  %v541_v46 = vpop.permute.xlu1 %540 }
 0x155   : > { %v620_v33 = vsel %vm612_vm9, %v539_v34, %v541_v46 }
 0x156   : > { %1173 = vrot.lane.b32.xlu1 %v2265_v7, %s2166_s22  ;;  %744 = vmatprep.subr.bf16.mxu1 %v620_v33 }
 0x157   : > { %745 = vmatpush1.bf16.msra.mxu1 %v619_v18  ;;  %1158 = vrot.lane.b32.xlu0 %v2281_v11, %s2167_s23 }
 0x158   : > { %v609_v31 = vpop.permute.xlu0 %608  ;;  %v525_v49 = vpop.permute.xlu1 %524 }
 0x159   : > { %v614_v26 = vsel %vm612_vm9, %v525_v49, %v527_v32 }
 0x15a   : > { %1177 = vrot.lane.b32.xlu1 %v2281_v11, %s2166_s22  ;;  %703 = vmatprep.subr.bf16.mxu0 %v614_v26 }
 0x15b   : > { %1133 = vrot.lane.b32.xlu0 %v2275_v10, %s2168_s27 }
 0x15c   : > { %v603_v50 = vpop.permute.xlu0 %602  ;;  %v529_v52 = vpop.permute.xlu1 %528 }
 0x15d   : > { %v616_v53 = vsel %vm612_vm9, %v529_v52, %v531_v39  ;;  %v615_v48 = vsel %vm612_vm9, %v527_v32, %v529_v52  ;;  %v645_v61 = vsel %vm612_vm9, %v603_v50, %v605_v29 }
 0x15e   : > { %1152 = vrot.lane.b32.xlu1 %v2275_v10, %s2167_s23  ;;  %746 = vmatprep.subr.bf16.mxu1 %v616_v53 }
 0x15f   : > { %747 = vmatpush1.bf16.msra.mxu1 %v615_v48  ;;  %1137 = vrot.lane.b32.xlu0 %v2273_v9, %s2168_s27 }
 0x160   : > { %v859_v54 = vpop.permute.xlu0 %858  ;;  %v523_v40 = vpop.permute.xlu1 %522 }
 0x161   : > { %v613_v56 = vsel %vm612_vm9, %v523_v40, %v525_v49 }
 0x162   : > { %1156 = vrot.lane.b32.xlu1 %v2273_v9, %s2167_s23  ;;  %704 = vmatpush1.bf16.msra.mxu0 %v613_v56 }
 0x163   : > { %1131 = vrot.lane.b32.xlu0 %v2267_v8, %s2168_s27 }
 0x164   : > { %v863_v58 = vpop.permute.xlu0 %862  ;;  %v607_v60 = vpop.permute.xlu1 %606 }
 0x165   : > { %v646_v42 = vsel %vm612_vm9, %v605_v29, %v607_v60  ;;  %v647_v4 = vsel %vm612_vm9, %v607_v60, %v609_v31 }
 0x166   : > { %1150 = vrot.lane.b32.xlu1 %v2267_v8, %s2167_s23  ;;  %719 = vmatprep.subr.bf16.mxu0 %v646_v42 }
 0x167   : > { %720 = vmatpush2.bf16.msra.mxu0 %v645_v61  ;;  %1116 = vrot.lane.b32.xlu0 %v2265_v7, %s2169_s28 }
 0x168   : > { %v847_v62 = vpop.permute.xlu0 %846  ;;  %v611_v47 = vpop.permute.xlu1 %610 }
 0x169   : > { %v648_v63 = vsel %vm612_vm9, %v609_v31, %v611_v47  ;;  %vm1525_vm9 = vcmask 7168  }
 0x16a   : > { %1135 = vrot.lane.b32.xlu1 %v2265_v7, %s2168_s27  ;;  %762 = vmatprep.subr.bf16.mxu1 %v648_v63 }
 0x16b   : > { %763 = vmatpush2.bf16.msra.mxu1 %v647_v4  ;;  %1120 = vrot.lane.b32.xlu0 %v2281_v11, %s2169_s28 }
 0x16c   : > { %v851_v5 = vpop.permute.xlu0 %850  ;;  %v857_v13 = vpop.permute.xlu1 %856  ;;  %722 = vmatmul.mubr.bf16.vlgmr.msra.gmra.mxu0 %v2119_v51 }
 0x16d   : > { %v904_v16 = vsel %vm874_vm10, %v857_v13, %v859_v54  ;;  %1886 = vmatprep.mubr.msk.bf16.mxu0 %vm685_vm8, %v2122_v1 }
 0x16e   : > { %1139 = vrot.lane.b32.xlu1 %v2281_v11, %s2168_s27  ;;  %950 = vmatprep.subr.bf16.mxu0 %v904_v16 }
 0x16f   : > { %1095 = vrot.lane.b32.xlu0 %v2275_v10, %s2170_s12  ;;  %765 = vmatmul.mubr.bf16.vlgmr.msra.gmra.mxu1 %v2119_v51 }
 0x170   : > { %v845_v19 = vpop.permute.xlu0 %844  ;;  %v861_v55 = vpop.permute.xlu1 %860  ;;  %1887 = vmatprep.mubr.msk.bf16.mxu1 %vm685_vm8, %v2122_v1 }
 0x171   : > { %v905_v20 = vsel %vm874_vm10, %v859_v54, %v861_v55  ;;  %v906_v24 = vsel %vm874_vm10, %v861_v55, %v863_v58  ;;  %v899_v38 = vsel %vm874_vm10, %v845_v19, %v847_v62 }
 0x172   : > { %1114 = vrot.lane.b32.xlu1 %v2275_v10, %s2169_s28  ;;  %993 = vmatprep.subr.bf16.mxu1 %v906_v24 }
 0x173   : > { %994 = vmatpush1.bf16.msra.mxu1 %v905_v20  ;;  %1099 = vrot.lane.b32.xlu0 %v2273_v9, %s2170_s12 }
 0x174   : > { %v839_v2 = vpop.permute.xlu0 %838  ;;  %v855_v36 = vpop.permute.xlu1 %854 }
 0x175   : > { %v903_v59 = vsel %vm874_vm10, %v855_v36, %v857_v13 }
 0x176   : > { %1118 = vrot.lane.b32.xlu1 %v2273_v9, %s2169_s28  ;;  %951 = vmatpush1.bf16.msra.mxu0 %v903_v59 }
 0x177   : > { %1093 = vrot.lane.b32.xlu0 %v2267_v8, %s2170_s12 }
 0x178   : > { %v843_v37 = vpop.permute.xlu0 %842  ;;  %v849_v21 = vpop.permute.xlu1 %848 }
 0x179   : > { %v900_v57 = vsel %vm874_vm10, %v847_v62, %v849_v21  ;;  %v901_v12 = vsel %vm874_vm10, %v849_v21, %v851_v5 }
 0x17a   : > { %1112 = vrot.lane.b32.xlu1 %v2267_v8, %s2169_s28  ;;  %952 = vmatprep.subr.bf16.mxu0 %v900_v57 }
 0x17b   : > { %953 = vmatpush1.bf16.msra.mxu0 %v899_v38  ;;  %1078 = vrot.lane.b32.xlu0 %v2265_v7, %s2171_s13 }
 0x17c   : > { %v827_v15 = vpop.permute.xlu0 %826  ;;  %v853_v0 = vpop.permute.xlu1 %852 }
 0x17d   : > { %v902_v41 = vsel %vm874_vm10, %v851_v5, %v853_v0 }
 0x17e   : > { %1097 = vrot.lane.b32.xlu1 %v2265_v7, %s2170_s12  ;;  %995 = vmatprep.subr.bf16.mxu1 %v902_v41  ;;  %v2124_v41 = vld [vmem:[%s3084_s2] ss:$8 sps:$4 sm:$0xff]  }
 0x17f   : > { %996 = vmatpush1.bf16.msra.mxu1 %v901_v12  ;;  %1082 = vrot.lane.b32.xlu0 %v2281_v11, %s2171_s13 }
 0x180   : > { %v831_v43 = vpop.permute.xlu0 %830  ;;  %v837_v3 = vpop.permute.xlu1 %836 }
 0x181   : > { %v896_v34 = vsel %vm874_vm10, %v837_v3, %v839_v2 }
 0x182   : > { %1101 = vrot.lane.b32.xlu1 %v2281_v11, %s2170_s12  ;;  %954 = vmatprep.subr.bf16.mxu0 %v896_v34 }
 0x183   : > { %1057 = vrot.lane.b32.xlu0 %v2275_v10, %s2172_s14 }
 0x184   : > { %v825_v6 = vpop.permute.xlu0 %824  ;;  %v841_v27 = vpop.permute.xlu1 %840 }
 0x185   : > { %v897_v25 = vsel %vm874_vm10, %v839_v2, %v841_v27  ;;  %v898_v17 = vsel %vm874_vm10, %v841_v27, %v843_v37  ;;  %v891_v23 = vsel %vm874_vm10, %v825_v6, %v827_v15 }
 0x186   : > { %1076 = vrot.lane.b32.xlu1 %v2275_v10, %s2171_s13  ;;  %997 = vmatprep.subr.bf16.mxu1 %v898_v17 }
 0x187   : > { %998 = vmatpush1.bf16.msra.mxu1 %v897_v25  ;;  %1061 = vrot.lane.b32.xlu0 %v2273_v9, %s2172_s14 }
 0x188   : > { %v819_v14 = vpop.permute.xlu0 %818  ;;  %v835_v30 = vpop.permute.xlu1 %834 }
 0x189   : > { %v895_v32 = vsel %vm874_vm10, %v835_v30, %v837_v3  ;;  %v2125_v3 = vld [vmem:[%s3084_s2 + $0x24] ss:$8 sps:$4 sm:$0xff]  }
 0x18a   : > { %1080 = vrot.lane.b32.xlu1 %v2273_v9, %s2171_s13  ;;  %955 = vmatpush1.bf16.msra.mxu0 %v895_v32 }
 0x18b   : > { %1055 = vrot.lane.b32.xlu0 %v2267_v8, %s2172_s14 }
 0x18c   : > { %v823_v28 = vpop.permute.xlu0 %822  ;;  %v829_v35 = vpop.permute.xlu1 %828 }
 0x18d   : > { %v892_v39 = vsel %vm874_vm10, %v827_v15, %v829_v35  ;;  %v893_v29 = vsel %vm874_vm10, %v829_v35, %v831_v43 }
 0x18e   : > { %1074 = vrot.lane.b32.xlu1 %v2267_v8, %s2171_s13  ;;  %956 = vmatprep.subr.bf16.mxu0 %v892_v39 }
 0x18f   : > { %957 = vmatpush1.bf16.msra.mxu0 %v891_v23  ;;  %1040 = vrot.lane.b32.xlu0 %v2265_v7, %s2173_s15 }
 0x190   : > { %v807_v22 = vpop.permute.xlu0 %806  ;;  %v833_v44 = vpop.permute.xlu1 %832 }
 0x191   : > { %v894_v45 = vsel %vm874_vm10, %v831_v43, %v833_v44 }
 0x192   : > { %1059 = vrot.lane.b32.xlu1 %v2265_v7, %s2172_s14  ;;  %999 = vmatprep.subr.bf16.mxu1 %v894_v45 }
 0x193   : > { %1000 = vmatpush1.bf16.msra.mxu1 %v893_v29  ;;  %1044 = vrot.lane.b32.xlu0 %v2281_v11, %s2173_s15 }
 0x194   : > { %v811_v46 = vpop.permute.xlu0 %810  ;;  %v817_v33 = vpop.permute.xlu1 %816 }
 0x195   : > { %v888_v18 = vsel %vm874_vm10, %v817_v33, %v819_v14 }
 0x196   : > { %1063 = vrot.lane.b32.xlu1 %v2281_v11, %s2172_s14  ;;  %958 = vmatprep.subr.bf16.mxu0 %v888_v18 }
 0x197   : > { %1190 = vrot.lane.b32.xlu0 %v2275_v10, %s2174_s16 }
 0x198   : > { %v805_v31 = vpop.permute.xlu0 %804  ;;  %v821_v49 = vpop.permute.xlu1 %820 }
 0x199   : > { %v889_v26 = vsel %vm874_vm10, %v819_v14, %v821_v49  ;;  %v890_v50 = vsel %vm874_vm10, %v821_v49, %v823_v28  ;;  %v883_v56 = vsel %vm874_vm10, %v805_v31, %v807_v22 }
 0x19a   : > { %1038 = vrot.lane.b32.xlu1 %v2275_v10, %s2173_s15  ;;  %1001 = vmatprep.subr.bf16.mxu1 %v890_v50 }
 0x19b   : > { %1002 = vmatpush1.bf16.msra.mxu1 %v889_v26  ;;  %1194 = vrot.lane.b32.xlu0 %v2273_v9, %s2174_s16 }
 0x19c   : > { %v799_v52 = vpop.permute.xlu0 %798  ;;  %v815_v53 = vpop.permute.xlu1 %814 }
 0x19d   : > { %v887_v48 = vsel %vm874_vm10, %v815_v53, %v817_v33 }
 0x19e   : > { %1042 = vrot.lane.b32.xlu1 %v2273_v9, %s2173_s15  ;;  %959 = vmatpush1.bf16.msra.mxu0 %v887_v48 }
 0x19f   : > { %1188 = vrot.lane.b32.xlu0 %v2267_v8, %s2174_s16 }
 0x1a0   : > { %v803_v54 = vpop.permute.xlu0 %802  ;;  %v809_v40 = vpop.permute.xlu1 %808 }
 0x1a1   : > { %v884_v10 = vsel %vm874_vm10, %v807_v22, %v809_v40  ;;  %v885_v9 = vsel %vm874_vm10, %v809_v40, %v811_v46 }
 0x1a2   : > { %1036 = vrot.lane.b32.xlu1 %v2267_v8, %s2173_s15  ;;  %960 = vmatprep.subr.bf16.mxu0 %v884_v10 }
 0x1a3   : > { %961 = vmatpush1.bf16.msra.mxu0 %v883_v56 }
 0x1a4   : > { %v787_v58 = vpop.permute.xlu0 %786  ;;  %v813_v60 = vpop.permute.xlu1 %812 }
 0x1a5   : > { %v886_v42 = vsel %vm874_vm10, %v811_v46, %v813_v60 }
 0x1a6   : > { %1192 = vrot.lane.b32.xlu1 %v2265_v7, %s2174_s16  ;;  %1003 = vmatprep.subr.bf16.mxu1 %v886_v42 }
 0x1a7   : > { %1004 = vmatpush1.bf16.msra.mxu1 %v885_v9 }
 0x1a8   : > { %v791_v61 = vpop.permute.xlu0 %790  ;;  %v797_v62 = vpop.permute.xlu1 %796 }
 0x1a9   : > { %v880_v47 = vsel %vm874_vm10, %v797_v62, %v799_v52 }
 0x1aa   : > { %1196 = vrot.lane.b32.xlu1 %v2281_v11, %s2174_s16  ;;  %962 = vmatprep.subr.bf16.mxu0 %v880_v47 }
 0x1ac   : > { %v785_v8 = vpop.permute.xlu0 %784  ;;  %v801_v63 = vpop.permute.xlu1 %800 }
 0x1ad   : > { %v881_v1 = vsel %vm874_vm10, %v799_v52, %v801_v63  ;;  %v882_v4 = vsel %vm874_vm10, %v801_v63, %v803_v54  ;;  %v875_v11 = vsel %vm874_vm10, %v785_v8, %v787_v58 }
 0x1ae   : > { %1005 = vmatprep.subr.bf16.mxu1 %v882_v4 }
 0x1af   : > { %1006 = vmatpush1.bf16.msra.mxu1 %v881_v1 }
 0x1b0   : > { %v869_v51 = vpop.permute.xlu0 %868  ;;  %v795_v7 = vpop.permute.xlu1 %794 }
 0x1b1   : > { %v879_v5 = vsel %vm874_vm10, %v795_v7, %v797_v62 }
 0x1b2   : > { %963 = vmatpush1.bf16.msra.mxu0 %v879_v5 }
 0x1b4   : > { %v789_v13 = vpop.permute.xlu1 %788  ;;  %v873_v16 = vpop.permute.xlu0 %872 }
 0x1b5   : > { %v876_v19 = vsel %vm874_vm10, %v787_v58, %v789_v13  ;;  %v877_v2 = vsel %vm874_vm10, %v789_v13, %v791_v61 }
 0x1b6   : > { %964 = vmatprep.subr.bf16.mxu0 %v876_v19 }
 0x1b7   : > { %965 = vmatpush1.bf16.msra.mxu0 %v875_v11 }
 0x1b8   : > { %v793_v55 = vpop.permute.xlu1 %792 }
 0x1b9   : > { %v878_v20 = vsel %vm874_vm10, %v791_v61, %v793_v55  ;;  %v1172_v24 = vpop.permute.xlu0 %1171 }
 0x1ba   : > { %1007 = vmatprep.subr.bf16.mxu1 %v878_v20 }
 0x1bb   : > { %1008 = vmatpush1.bf16.msra.mxu1 %v877_v2 }
 0x1bc   : > { %v867_v36 = vpop.permute.xlu1 %866 }
 0x1bd   : > { %v908_v59 = vsel %vm874_vm10, %v867_v36, %v869_v51  ;;  %v1176_v37 = vpop.permute.xlu0 %1175 }
 0x1be   : > { %980 = vmatprep.subr.bf16.mxu0 %v908_v59 }
 0x1c0   : > { %v871_v21 = vpop.permute.xlu1 %870 }
 0x1c1   : > { %v909_v57 = vsel %vm874_vm10, %v869_v51, %v871_v21  ;;  %v910_v38 = vsel %vm874_vm10, %v871_v21, %v873_v16  ;;  %v1170_v15 = vpop.permute.xlu0 %1169 }
 0x1c2   : > { %1023 = vmatprep.subr.bf16.mxu1 %v910_v38  ;;  %v1180_v25 = vsel %vm1179_vm11, %v1170_v15, %v1172_v24 }
 0x1c3   : > { %1024 = vmatpush2.bf16.msra.mxu1 %v909_v57 }
 0x1c4   : > { %v865_v0 = vpop.permute.xlu1 %864 }
 0x1c5   : > { %v907_v12 = vsel %vm874_vm10, %v865_v0, %v867_v36  ;;  %v1155_v43 = vpop.permute.xlu0 %1154 }
 0x1c6   : > { %981 = vmatpush2.bf16.msra.mxu0 %v907_v12  ;;  %1026 = vmatmul.mubr.bf16.vlgmr.msra.gmra.mxu1 %v2124_v41 }
 0x1c7   : > { %1893 = vmatprep.mubr.msk.bf16.mxu1 %vm685_vm8, %v2125_v3 }
 0x1c8   : > { %v1174_v34 = vpop.permute.xlu1 %1173 }
 0x1c9   : > { %v1181_v6 = vsel %vm1179_vm11, %v1172_v24, %v1174_v34  ;;  %983 = vmatmul.mubr.bf16.vlgmr.msra.gmra.mxu0 %v2124_v41  ;;  %v1159_v27 = vpop.permute.xlu0 %1158  ;;  %v1182_v32 = vsel %vm1179_vm11, %v1174_v34, %v1176_v37 }
 0x1ca   : > { %1222 = vmatprep.subr.bf16.mxu0 %v1181_v6  ;;  %1892 = vmatprep.mubr.msk.bf16.mxu0 %vm685_vm8, %v2125_v3 }
 0x1cb   : > { %1223 = vmatpush1.bf16.msra.mxu0 %v1180_v25 }
 0x1cc   : > { %v1178_v17 = vpop.permute.xlu1 %1177 }
 0x1cd   : > { %v1183_v14 = vsel %vm1179_vm11, %v1176_v37, %v1178_v17  ;;  %v1134_v30 = vpop.permute.xlu0 %1133 }
 0x1ce   : > { %1265 = vmatprep.subr.bf16.mxu1 %v1183_v14 }
 0x1cf   : > { %1266 = vmatpush1.bf16.msra.mxu1 %v1182_v32 }
 0x1d0   : > { %v1153_v28 = vpop.permute.xlu1 %1152 }
 0x1d1   : > { %v1162_v35 = vsel %vm1160_vm12, %v1153_v28, %v1155_v43  ;;  %v1138_v39 = vpop.permute.xlu0 %1137 }
 0x1d2   : > { %1224 = vmatprep.subr.bf16.mxu0 %v1162_v35 }
 0x1d4   : > { %v1157_v23 = vpop.permute.xlu1 %1156 }
 0x1d5   : > { %v1163_v22 = vsel %vm1160_vm12, %v1155_v43, %v1157_v23  ;;  %v1164_v44 = vsel %vm1160_vm12, %v1157_v23, %v1159_v27  ;;  %v1132_v45 = vpop.permute.xlu0 %1131 }
 0x1d6   : > { %1267 = vmatprep.subr.bf16.mxu1 %v1164_v44  ;;  %v1142_v26 = vsel %vm1141_vm13, %v1132_v45, %v1134_v30 }
 0x1d7   : > { %1268 = vmatpush1.bf16.msra.mxu1 %v1163_v22  ;;  %v2175_v22 = vmov 1.0  }
 0x1d8   : > { %v1151_v29 = vpop.permute.xlu1 %1150 }
 0x1d9   : > { %v1161_v46 = vsel %vm1160_vm12, %v1151_v29, %v1153_v28  ;;  %v1117_v33 = vpop.permute.xlu0 %1116 }
 0x1da   : > { %1225 = vmatpush1.bf16.msra.mxu0 %v1161_v46 }
 0x1dc   : > { %v1136_v18 = vpop.permute.xlu1 %1135 }
 0x1dd   : > { %v1143_v31 = vsel %vm1141_vm13, %v1134_v30, %v1136_v18  ;;  %v1121_v49 = vpop.permute.xlu0 %1120  ;;  %v1144_v48 = vsel %vm1141_vm13, %v1136_v18, %v1138_v39 }
 0x1de   : > { %1226 = vmatprep.subr.bf16.mxu0 %v1143_v31 }
 0x1df   : > { %1227 = vmatpush1.bf16.msra.mxu0 %v1142_v26 }
 0x1e0   : > { %v1140_v50 = vpop.permute.xlu1 %1139 }
 0x1e1   : > { %v1145_v52 = vsel %vm1141_vm13, %v1138_v39, %v1140_v50  ;;  %v1096_v53 = vpop.permute.xlu0 %1095  ;;  %v2127_v39 = vld [vmem:[%s3084_s2 + $0x20] ss:$8 sps:$4 sm:$0xff]  }
 0x1e2   : > { %1269 = vmatprep.subr.bf16.mxu1 %v1145_v52 }
 0x1e3   : > { %1270 = vmatpush1.bf16.msra.mxu1 %v1144_v48 }
 0x1e4   : > { %v1115_v54 = vpop.permute.xlu1 %1114 }
 0x1e5   : > { %v1124_v40 = vsel %vm1122_vm14, %v1115_v54, %v1117_v33  ;;  %v1100_v10 = vpop.permute.xlu0 %1099 }
 0x1e6   : > { %1228 = vmatprep.subr.bf16.mxu0 %v1124_v40  ;;  %v1344_v40 = vld [vmem:[#allocation3 + $0x1] sm:$0xf] }
 0x1e7   : > { %vm1345_vm4 = vcmp.gt.f32.partialorder %v1344_v40, 0.0 }
 0x1e8   : > { %v1119_v56 = vpop.permute.xlu1 %1118 }
 0x1e9   : > { %v1125_v58 = vsel %vm1122_vm14, %v1117_v33, %v1119_v56  ;;  %v1126_v60 = vsel %vm1122_vm14, %v1119_v56, %v1121_v49  ;;  %v1094_v42 = vpop.permute.xlu0 %1093 }
 0x1ea   : > { %1271 = vmatprep.subr.bf16.mxu1 %v1126_v60  ;;  %v1104_v1 = vsel %vm1103_vm15, %v1094_v42, %v1096_v53 }
 0x1eb   : > { %1272 = vmatpush1.bf16.msra.mxu1 %v1125_v58 }
 0x1ec   : > { %v1113_v9 = vpop.permute.xlu1 %1112 }
 0x1ed   : > { %v1123_v61 = vsel %vm1122_vm14, %v1113_v9, %v1115_v54  ;;  %v1079_v62 = vpop.permute.xlu0 %1078  ;;  %v2176_v9 = vmov 0  }
 0x1ee   : > { %1229 = vmatpush1.bf16.msra.mxu0 %v1123_v61  ;;  %v1346_v61 = vsel %vm1345_vm4, 1, %v2176_v9 }
 0x1f0   : > { %v1098_v47 = vpop.permute.xlu1 %1097 }
 0x1f1   : > { %v1105_v8 = vsel %vm1103_vm15, %v1096_v53, %v1098_v47  ;;  %v1083_v63 = vpop.permute.xlu0 %1082  ;;  %v1106_v5 = vsel %vm1103_vm15, %v1098_v47, %v1100_v10  ;;  %v1347_v53 = vlaneseq }
 0x1f2   : > { %1230 = vmatprep.subr.bf16.mxu0 %v1105_v8 }
 0x1f3   : > { %1231 = vmatpush1.bf16.msra.mxu0 %v1104_v1 }
 0x1f4   : > { %v1102_v4 = vpop.permute.xlu1 %1101 }
 0x1f5   : > { %v1107_v51 = vsel %vm1103_vm15, %v1100_v10, %v1102_v4  ;;  %v1058_v7 = vpop.permute.xlu0 %1057  ;;  %v1348_v10 = vshrl.u32 %v1347_v53, 7 }
 0x1f6   : > { %1273 = vmatprep.subr.bf16.mxu1 %v1107_v51 }
 0x1f7   : > { %1274 = vmatpush1.bf16.msra.mxu1 %v1106_v5  ;;  %v1353_v60 = vsub.s32 1, %v1348_v10  ;;  %v1349_v42 = vsub.s32 0, %v1348_v10 }
 0x1f8   : > { %v1077_v13 = vpop.permute.xlu1 %1076 }
 0x1f9   : > { %v1086_v16 = vsel %vm1084_vm0, %v1077_v13, %v1079_v62  ;;  %v1062_v19 = vpop.permute.xlu0 %1061  ;;  %v2908_v8 = vrot.slane %v1346_v61, %v1353_v60  ;;  %v2910_v4 = vrot.slane %v1346_v61, %v1349_v42 }
 0x1fa   : > { %1232 = vmatprep.subr.bf16.mxu0 %v1086_v16 }
 0x1fb   : > { %vm1364_vm5 = vcmp.eq.s32.totalorder %v2908_v8, 1  ;;  %vm1363_vm6 = vcmp.eq.s32.totalorder %v2910_v4, 1 }
 0x1fc   : > { %v1081_v11 = vpop.permute.xlu1 %1080 }
 0x1fd   : > { %v1087_v55 = vsel %vm1084_vm0, %v1079_v62, %v1081_v11  ;;  %v1088_v20 = vsel %vm1084_vm0, %v1081_v11, %v1083_v63  ;;  %v1056_v24 = vpop.permute.xlu0 %1055  ;;  %v1361_v63 = vsub.s32 3, %v1348_v10 }
 0x1fe   : > { %1275 = vmatprep.subr.bf16.mxu1 %v1088_v20  ;;  %v1066_v38 = vsel %vm1065_vm1, %v1056_v24, %v1058_v7 }
 0x1ff   : > { %1276 = vmatpush1.bf16.msra.mxu1 %v1087_v55  ;;  %v2913_v16 = vrot.slane %v1346_v61, %v1361_v63 }
 0x200   : > { %v1075_v2 = vpop.permute.xlu1 %1074 }
 0x201   : > { %v1085_v36 = vsel %vm1084_vm0, %v1075_v2, %v1077_v13  ;;  %v1041_v59 = vpop.permute.xlu0 %1040  ;;  %vm1366_vm7 = vcmp.eq.s32.totalorder %v2913_v16, 1 }
 0x202   : > { %1233 = vmatpush1.bf16.msra.mxu0 %v1085_v36 }
 0x204   : > { %v1060_v37 = vpop.permute.xlu1 %1059 }
 0x205   : > { %v1067_v21 = vsel %vm1065_vm1, %v1058_v7, %v1060_v37  ;;  %v1045_v57 = vpop.permute.xlu0 %1044  ;;  %v1068_v41 = vsel %vm1065_vm1, %v1060_v37, %v1062_v19 }
 0x206   : > { %1234 = vmatprep.subr.bf16.mxu0 %v1067_v21 }
 0x207   : > { %1235 = vmatpush1.bf16.msra.mxu0 %v1066_v38 }
 0x208   : > { %v1064_v15 = vpop.permute.xlu1 %1063 }
 0x209   : > { %v1069_v0 = vsel %vm1065_vm1, %v1062_v19, %v1064_v15  ;;  %v1191_v12 = vpop.permute.xlu0 %1190  ;;  %v1357_v19 = vsub.s32 2, %v1348_v10 }
 0x20a   : > { %1277 = vmatprep.subr.bf16.mxu1 %v1069_v0 }
 0x20b   : > { %1278 = vmatpush1.bf16.msra.mxu1 %v1068_v41  ;;  %v2925_v15 = vrot.slane %v1346_v61, %v1357_v19 }
 0x20c   : > { %v1039_v43 = vpop.permute.xlu1 %1038 }
 0x20d   : > { %v1048_v3 = vsel %vm1046_vm2, %v1039_v43, %v1041_v59  ;;  %v1195_v27 = vpop.permute.xlu0 %1194  ;;  %vm1365_vm8 = vcmp.eq.s32.totalorder %v2925_v15, 1 }
 0x20e   : > { %1236 = vmatprep.subr.bf16.mxu0 %v1048_v3 }
 0x210   : > { %v1043_v34 = vpop.permute.xlu1 %1042 }
 0x211   : > { %v1049_v6 = vsel %vm1046_vm2, %v1041_v59, %v1043_v34  ;;  %v1050_v25 = vsel %vm1046_vm2, %v1043_v34, %v1045_v57  ;;  %v1189_v30 = vpop.permute.xlu0 %1188 }
 0x212   : > { %1279 = vmatprep.subr.bf16.mxu1 %v1050_v25  ;;  %v1199_v35 = vsel %vm1198_vm3, %v1189_v30, %v1191_v12 }
 0x213   : > { %1280 = vmatpush1.bf16.msra.mxu1 %v1049_v6 }
 0x214   : > { %v1037_v17 = vpop.permute.xlu1 %1036 }
 0x215   : > { %v1047_v14 = vsel %vm1046_vm2, %v1037_v17, %v1039_v43 }
 0x216   : > { %1237 = vmatpush1.bf16.msra.mxu0 %v1047_v14 }
 0x218   : > { %v1193_v32 = vpop.permute.xlu1 %1192 }
 0x219   : > { %v1200_v28 = vsel %vm1198_vm3, %v1191_v12, %v1193_v32  ;;  %v1201_v45 = vsel %vm1198_vm3, %v1193_v32, %v1195_v27 }
 0x21a   : > { %1252 = vmatprep.subr.bf16.mxu0 %v1200_v28 }
 0x21b   : > { %1253 = vmatpush2.bf16.msra.mxu0 %v1199_v35 }
 0x21c   : > { %v1197_v23 = vpop.permute.xlu1 %1196  ;;  %1922 = vmatprep.subr.mxu0 %v2175_v22 }
 0x21d   : > { %v1202_v44 = vsel %vm1198_vm3, %v1195_v27, %v1197_v23 }
 0x21e   : > { %1255 = vmatmul.mubr.bf16.vlgmr.msra.gmra.mxu0 %v2127_v39  ;;  %1295 = vmatprep.subr.bf16.mxu1 %v1202_v44 }
 0x21f   : > { %1296 = vmatpush2.bf16.msra.mxu1 %v1201_v45  ;;  %1923 = vmatpush3.msra.mxu0 %v2175_v22 }
 0x220   : > { %1924 = vmatprep.subr.mxu0 %v2175_v22  ;;  %1960 = vmatprep.subr.mxu1 %v2175_v22 }
 0x221   : > { %1925 = vmatpush3.msra.mxu0 %v2175_v22 }
 0x222   : > { %1298 = vmatmul.mubr.bf16.vlgmr.msra.gmra.mxu1 %v2127_v39  ;;  %1926 = vmatprep.subr.mxu0 %v2175_v22 }
 0x223   : > { %1927 = vmatpush3.msra.mxu0 %v2175_v22  ;;  %1961 = vmatpush3.msra.mxu1 %v2175_v22 }
 0x224   : > { %1928 = vmatprep.subr.mxu0 %v2175_v22  ;;  %1962 = vmatprep.subr.mxu1 %v2175_v22 }
 0x225   : > { %1929 = vmatpush3.msra.mxu0 %v2175_v22  ;;  %1963 = vmatpush3.msra.mxu1 %v2175_v22 }
 0x226   : > { %1930 = vmatprep.subr.mxu0 %v2175_v22  ;;  %1964 = vmatprep.subr.mxu1 %v2175_v22 }
 0x227   : > { %1931 = vmatpush3.msra.mxu0 %v2175_v22  ;;  %1965 = vmatpush3.msra.mxu1 %v2175_v22 }
 0x228   : > { %1932 = vmatprep.subr.mxu0 %v2175_v22  ;;  %1966 = vmatprep.subr.mxu1 %v2175_v22 }
 0x229   : > { %1933 = vmatpush3.msra.mxu0 %v2175_v22  ;;  %1967 = vmatpush3.msra.mxu1 %v2175_v22 }
 0x22a   : > { %1934 = vmatprep.subr.mxu0 %v2175_v22  ;;  %1968 = vmatprep.subr.mxu1 %v2175_v22 }
 0x22b   : > { %1935 = vmatpush3.msra.mxu0 %v2175_v22  ;;  %1969 = vmatpush3.msra.mxu1 %v2175_v22 }
 0x22c   : > { %1936 = vmatprep.subr.mxu0 %v2175_v22  ;;  %1970 = vmatprep.subr.mxu1 %v2175_v22  ;;  %v723_v29 = vpop.f32.mrf.mxu0 }
 0x22d   : > { %1937 = vmatpush3.msra.mxu0 %v2175_v22  ;;  %1971 = vmatpush3.msra.mxu1 %v2175_v22 }
 0x22e   : > { %1938 = vmatprep.subr.mxu0 %v2175_v22  ;;  %1972 = vmatprep.subr.mxu1 %v2175_v22  ;;  %v725_v33 = vpop.f32.mrf.mxu0 }
 0x22f   : > { %1939 = vmatpush3.msra.mxu0 %v2175_v22  ;;  %1973 = vmatpush3.msra.mxu1 %v2175_v22  ;;  %v766_v46 = vpop.f32.mrf.mxu1 }
 0x230   : > { %1940 = vmatprep.subr.mxu0 %v2175_v22  ;;  %1974 = vmatprep.subr.mxu1 %v2175_v22  ;;  %v727_v31 = vpop.f32.mrf.mxu0 }
 0x231   : > { %1941 = vmatpush3.msra.mxu0 %v2175_v22  ;;  %1975 = vmatpush3.msra.mxu1 %v2175_v22  ;;  %v768_v18 = vpop.f32.mrf.mxu1 }
 0x232   : > { %1942 = vmatprep.subr.mxu0 %v2175_v22  ;;  %1976 = vmatprep.subr.mxu1 %v2175_v22  ;;  %v729_v26 = vpop.f32.mrf.mxu0 }
 0x233   : > { %1943 = vmatpush3.msra.mxu0 %v2175_v22  ;;  %1977 = vmatpush3.msra.mxu1 %v2175_v22  ;;  %v770_v49 = vpop.f32.mrf.mxu1 }
 0x234   : > { %1944 = vmatprep.subr.mxu0 %v2175_v22  ;;  %1978 = vmatprep.subr.mxu1 %v2175_v22 }
 0x235   : > { %1945 = vmatpush3.msra.mxu0 %v2175_v22  ;;  %1979 = vmatpush3.msra.mxu1 %v2175_v22  ;;  %v772_v50 = vpop.f32.mrf.mxu1 }
 0x236   : > { %1946 = vmatprep.subr.mxu0 %v2175_v22  ;;  %1980 = vmatprep.subr.mxu1 %v2175_v22 }
 0x237   : > { %1947 = vmatpush3.msra.mxu0 %v2175_v22  ;;  %1981 = vmatpush3.msra.mxu1 %v2175_v22 }
 0x238   : > { %1948 = vmatprep.subr.mxu0 %v2175_v22  ;;  %1982 = vmatprep.subr.mxu1 %v2175_v22 }
 0x239   : > { %1949 = vmatpush3.msra.mxu0 %v2175_v22  ;;  %1983 = vmatpush3.msra.mxu1 %v2175_v22 }
 0x23a   : > { %1950 = vmatprep.subr.mxu0 %v2175_v22  ;;  %1984 = vmatprep.subr.mxu1 %v2175_v22 }
 0x23b   : > { %1951 = vmatpush3.msra.mxu0 %v2175_v22  ;;  %1985 = vmatpush3.msra.mxu1 %v2175_v22 }
 0x23c   : > { %1952 = vmatprep.subr.mxu0 %v2175_v22  ;;  %1986 = vmatprep.subr.mxu1 %v2175_v22 }
 0x23d   : > { %1953 = vmatpush3.msra.mxu0 %v2175_v22  ;;  %1987 = vmatpush3.msra.mxu1 %v2175_v22 }
 0x23e   : > { %1988 = vmatprep.subr.mxu1 %v2175_v22  ;;  %1998 = vmatprep.subr.mxu0 %v2175_v22 }
 0x23f   : > { %1989 = vmatpush3.msra.mxu1 %v2175_v22 }
 0x240   : > { %1990 = vmatprep.subr.mxu1 %v2175_v22 }
 0x241   : > { %1991 = vmatpush3.msra.mxu1 %v2175_v22 }
 0x242   : > { %2036 = vmatprep.subr.mxu1 %v2175_v22 }
 0x286   : > { %v1027_v48 = vpop.f32.mrf.mxu1 }
 0x287   : > { %v1028_v20 = vadd.f32 %v1027_v48, %v766_v46 }
 0x288   : > { %v1029_v56 = vpop.f32.mrf.mxu1 }
 0x289   : > { %v984_v52 = vpop.f32.mrf.mxu0  ;;  %v1030_v36 = vadd.f32 %v1029_v56, %v768_v18 }
 0x28a   : > { %v1031_v62 = vpop.f32.mrf.mxu1  ;;  %v985_v51 = vadd.f32 %v984_v52, %v723_v29 }
 0x28b   : > { %v986_v54 = vpop.f32.mrf.mxu0  ;;  %v1032_v3 = vadd.f32 %v1031_v62, %v770_v49 }
 0x28c   : > { %v987_v7 = vadd.f32 %v986_v54, %v725_v33  ;;  %v1033_v5 = vpop.f32.mrf.mxu1 }
 0x28d   : > { %v988_v58 = vpop.f32.mrf.mxu0  ;;  %v1034_v27 = vadd.f32 %v1033_v5, %v772_v50 }
 0x28e   : > { %v989_v59 = vadd.f32 %v988_v58, %v727_v31 }
 0x28f   : > { %v990_v47 = vpop.f32.mrf.mxu0 }
 0x290   : > { %v991_v37 = vadd.f32 %v990_v47, %v729_v26 }
 0x2de   : > { %v1256_v1 = vpop.f32.mrf.mxu0 }
 0x2df   : > { %v2915_v11 = vadd.f32 %v1256_v1, %v985_v51 }
 0x2e0   : > { %v1258_v13 = vpop.f32.mrf.mxu0 }
 0x2e1   : > { %v1309_v55 = vadd.f32 %v1258_v13, %v987_v7  ;;  %v1367_v44 = vsel %vm1363_vm6, %v2915_v11, 0.0 }
 0x2e2   : > { %v1260_v24 = vpop.f32.mrf.mxu0  ;;  %v1299_v2 = vpop.f32.mrf.mxu1  ;;  %v1528_v29 = vmul.f32 %v1367_v44, %v2915_v11 }
 0x2e3   : > { %v1918_v21 = vpack.c.bf16 %v1309_v55, %v2915_v11  ;;  %1898 = vmatprep.mubr.msk.f32.mxu0 %vm1364_vm5, %v1309_v55  ;;  %v2928_v0 = vadd.f32 %v1260_v24, %v989_v59  ;;  %v2930_v41 = vadd.f32 %v1299_v2, %v1028_v20  ;;  %v1368_v6 = vsel %vm1364_vm5, %v1309_v55, 0.0 }
 0x2e4   : > { %v1262_v57 = vpop.f32.mrf.mxu0  ;;  %v1301_v38 = vpop.f32.mrf.mxu1  ;;  %1899 = vmatmul.mubr.msk.f32.vlgmr.msra.gmra.mxu0 %vm1363_vm6, %v2915_v11  ;;  %v1529_v28 = vmul.f32 %v1368_v6, %v1309_v55 }
 0x2e5   : > { %1340 = vst [vmem:[%s2260_s26] sm:$0xff] %v1918_v21  ;;  %v2932_v12 = vadd.f32 %v1262_v57, %v991_v37  ;;  %v1311_v43 = vadd.f32 %v1301_v38, %v1030_v36  ;;  %1999 = vmatpush3.msra.mxu0 %v2175_v22  ;;  %v1369_v46 = vsel %vm1365_vm8, %v2930_v41, 0.0  ;;  %v1371_v18 = vsel %vm1363_vm6, %v2928_v0, 0.0 }
 0x2e6   : > { %2000 = vmatprep.subr.mxu0 %v2175_v22  ;;  %v1303_v34 = vpop.f32.mrf.mxu1  ;;  %v1530_v49 = vmul.f32 %v1369_v46, %v2930_v41  ;;  %v1532_v26 = vmul.f32 %v1371_v18, %v2928_v0 }
 0x2e7   : > { %v1920_v25 = vpack.c.bf16 %v2932_v12, %v2928_v0  ;;  %v1919_v17 = vpack.c.bf16 %v1311_v43, %v2930_v41  ;;  %2001 = vmatpush3.msra.mxu0 %v2175_v22  ;;  %1900 = vmatprep.mubr.msk.f32.mxu0 %vm1364_vm5, %v2932_v12  ;;  %v2951_v30 = vadd.f32 %v1303_v34, %v1032_v3  ;;  %v1370_v39 = vsel %vm1366_vm7, %v1311_v43, 0.0 }
 0x2e8   : > { %1902 = vmatprep.mubr.msk.f32.mxu1 %vm1366_vm7, %v1311_v43  ;;  %2002 = vmatprep.subr.mxu0 %v2175_v22  ;;  %v1305_v14 = vpop.f32.mrf.mxu1  ;;  %v1531_v23 = vmul.f32 %v1370_v39, %v1311_v43  ;;  %v1372_v45 = vsel %vm1364_vm5, %v2932_v12, 0.0 }
 0x2e9   : > { %1342 = vst [vmem:[%s2260_s26 + $0x10] sm:$0xff] %v1920_v25  ;;  %1341 = vst [vmem:[%s2260_s26 + $0x8] sm:$0xff] %v1919_v17  ;;  %v2953_v32 = vadd.f32 %v1305_v14, %v1034_v27  ;;  %1901 = vmatmul.mubr.msk.f32.gmra.mxu0 %vm1363_vm6, %v2928_v0  ;;  %1903 = vmatmul.mubr.msk.f32.vlgmr.msra.gmra.mxu1 %vm1365_vm8, %v2930_v41  ;;  %v1533_v33 = vmul.f32 %v1372_v45, %v2932_v12  ;;  %v1373_v52 = vsel %vm1365_vm8, %v2951_v30, 0.0 }
 0x2ea   : > { %2003 = vmatpush3.msra.mxu0 %v2175_v22  ;;  %2037 = vmatpush3.msra.mxu1 %v2175_v22  ;;  %v1534_v53 = vmul.f32 %v1373_v52, %v2951_v30 }
 0x2eb   : > { %v1921_v35 = vpack.c.bf16 %v2953_v32, %v2951_v30  ;;  %2004 = vmatprep.subr.mxu0 %v2175_v22  ;;  %1600 = vmatprep.mubr.f32.mxu0 %v1529_v28  ;;  %v1374_v31 = vsel %vm1366_vm7, %v2953_v32, 0.0 }
 0x2ec   : > { %2038 = vmatprep.subr.mxu1 %v2175_v22  ;;  %2005 = vmatpush3.msra.mxu0 %v2175_v22  ;;  %v1535_v50 = vmul.f32 %v1374_v31, %v2953_v32  ;;  %v1721_v36 = vld [vmem:[%s2260_s26] sm:$0xff] (%p2240_p5) }
 0x2ed   : > { %1343 = vst [vmem:[%s2260_s26 + $0x18] sm:$0xff] %v1921_v35  ;;  %2039 = vmatpush3.msra.mxu1 %v2175_v22  ;;  %1904 = vmatprep.mubr.msk.f32.mxu1 %vm1366_vm7, %v2953_v32 }
 0x2ee   : > { %2006 = vmatprep.subr.mxu0 %v2175_v22  ;;  %2040 = vmatprep.subr.mxu1 %v2175_v22 }
 0x2ef   : > { %1905 = vmatmul.mubr.msk.f32.gmra.mxu1 %vm1365_vm8, %v2951_v30  ;;  %2007 = vmatpush3.msra.mxu0 %v2175_v22 }
 0x2f0   : > { %2041 = vmatpush3.msra.mxu1 %v2175_v22  ;;  %2008 = vmatprep.subr.mxu0 %v2175_v22  ;;  %v1723_v59 = vld [vmem:[%s2260_s26 + $0x8] sm:$0xff] (%p2240_p5)  ;;  %v1725_v37 = vld [vmem:[%s2260_s26 + $0x10] sm:$0xff] (%p2240_p5) }
 0x2f1   : > { %2042 = vmatprep.subr.mxu1 %v2175_v22  ;;  %1675 = vmatprep.mubr.f32.mxu1 %v1531_v23 }
 0x2f2   : > { %2009 = vmatpush3.msra.mxu0 %v2175_v22  ;;  %2043 = vmatpush3.msra.mxu1 %v2175_v22 }
 0x2f3   : > { %2010 = vmatprep.subr.mxu0 %v2175_v22  ;;  %2044 = vmatprep.subr.mxu1 %v2175_v22 }
 0x2f4   : > { %2011 = vmatpush3.msra.mxu0 %v2175_v22  ;;  %2045 = vmatpush3.msra.mxu1 %v2175_v22  ;;  %v1727_v21 = vld [vmem:[%s2260_s26 + $0x18] sm:$0xff] (%p2240_p5) }
 0x2f5   : > { %2012 = vmatprep.subr.mxu0 %v2175_v22  ;;  %2046 = vmatprep.subr.mxu1 %v2175_v22 }
 0x2f6   : > { %2013 = vmatpush3.msra.mxu0 %v2175_v22  ;;  %2047 = vmatpush3.msra.mxu1 %v2175_v22 }
 0x2f7   : > { %2014 = vmatprep.subr.mxu0 %v2175_v22  ;;  %2048 = vmatprep.subr.mxu1 %v2175_v22 }
 0x2f8   : > { %2015 = vmatpush3.msra.mxu0 %v2175_v22  ;;  %2049 = vmatpush3.msra.mxu1 %v2175_v22 }
 0x2f9   : > { %2016 = vmatprep.subr.mxu0 %v2175_v22  ;;  %2050 = vmatprep.subr.mxu1 %v2175_v22 }
 0x2fa   : > { %2017 = vmatpush3.msra.mxu0 %v2175_v22  ;;  %2051 = vmatpush3.msra.mxu1 %v2175_v22 }
 0x2fb   : > { %2018 = vmatprep.subr.mxu0 %v2175_v22  ;;  %2052 = vmatprep.subr.mxu1 %v2175_v22 }
 0x2fc   : > { %2019 = vmatpush3.msra.mxu0 %v2175_v22  ;;  %2053 = vmatpush3.msra.mxu1 %v2175_v22 }
 0x2fd   : > { %2020 = vmatprep.subr.mxu0 %v2175_v22  ;;  %2054 = vmatprep.subr.mxu1 %v2175_v22 }
 0x2fe   : > { %2021 = vmatpush3.msra.mxu0 %v2175_v22  ;;  %2055 = vmatpush3.msra.mxu1 %v2175_v22 }
 0x2ff   : > { %2022 = vmatprep.subr.mxu0 %v2175_v22  ;;  %2056 = vmatprep.subr.mxu1 %v2175_v22 }
 0x300   : > { %2023 = vmatpush3.msra.mxu0 %v2175_v22  ;;  %2057 = vmatpush3.msra.mxu1 %v2175_v22 }
 0x301   : > { %2024 = vmatprep.subr.mxu0 %v2175_v22  ;;  %2058 = vmatprep.subr.mxu1 %v2175_v22 }
 0x302   : > { %2025 = vmatpush3.msra.mxu0 %v2175_v22  ;;  %2059 = vmatpush3.msra.mxu1 %v2175_v22 }
 0x303   : > { %2026 = vmatprep.subr.mxu0 %v2175_v22  ;;  %2060 = vmatprep.subr.mxu1 %v2175_v22 }
 0x304   : > { %2027 = vmatpush3.msra.mxu0 %v2175_v22  ;;  %2061 = vmatpush3.msra.mxu1 %v2175_v22 }
 0x305   : > { %2028 = vmatprep.subr.mxu0 %v2175_v22  ;;  %2062 = vmatprep.subr.mxu1 %v2175_v22 }
 0x306   : > { %2029 = vmatpush3.msra.mxu0 %v2175_v22  ;;  %2063 = vmatpush3.msra.mxu1 %v2175_v22 }
 0x307   : > { %1601 = vmatmul.mubr.f32.vlgmr.msra.gmra.mxu0 %v1528_v29  ;;  %2064 = vmatprep.subr.mxu1 %v2175_v22 }
 0x308   : > { %1605 = vmatprep.mubr.f32.mxu0 %v1533_v33  ;;  %2065 = vmatpush3.msra.mxu1 %v2175_v22 }
 0x309   : > { %2066 = vmatprep.subr.mxu1 %v2175_v22 }
 0x30a   : > { %2067 = vmatpush3.msra.mxu1 %v2175_v22 }
 0x30b   : > { %1606 = vmatmul.mubr.f32.gmra.mxu0 %v1532_v26  ;;  %1676 = vmatmul.mubr.f32.vlgmr.msra.gmra.mxu1 %v1530_v49 }
 0x30c   : > { %1680 = vmatprep.mubr.f32.mxu1 %v1535_v50 }
 0x30f   : > { %1681 = vmatmul.mubr.f32.gmra.mxu1 %v1534_v53 }
 0x3a4   : > { %v1954_v48 = vpop.f32.mrf.mxu0 }
 0x3a6   : > { %v1955_v54 = vpop.f32.mrf.mxu0 }
 0x3a7   : > { %v1956_v22 = vadd.f32 %v1955_v54, %v1954_v48 }
 0x3a9   : > { %v1992_v40 = vpop.f32.mrf.mxu1  ;;  %v1957_v10 = vpop.f32.mrf.mxu0 }
 0x3ab   : > { %v1993_v56 = vpop.f32.mrf.mxu1  ;;  %v1958_v42 = vpop.f32.mrf.mxu0 }
 0x3ac   : > { %v1994_v58 = vadd.f32 %v1993_v56, %v1992_v40  ;;  %v1959_v62 = vadd.f32 %v1958_v42, %v1957_v10 }
 0x3ae   : > { %v1517_v60 = vadd.f32 %v1994_v58, %v1956_v22 }
 0x3af   : > { %v1995_v9 = vpop.f32.mrf.mxu1 }
 0x3b0   : > { %1526 = vst.msk [vmem:[%s2253_s21] sm:$0xff] %vm1525_vm9, %v1517_v60 }
 0x3b1   : > { %v1996_v61 = vpop.f32.mrf.mxu1 }
 0x3b2   : > { %v1997_v47 = vadd.f32 %v1996_v61, %v1995_v9 }
 0x3b4   : > { %v1522_v8 = vadd.f32 %v1997_v47, %v1959_v62 }
 0x3b6   : > { %1527 = vst.msk [vmem:[%s2253_s21 + $0x8] sm:$0xff] %vm1525_vm9, %v1522_v8  ;;  %s1907_s21 = sshll.u32 (%p2240_p5), %s2228_s3, 4 }
 0x3b7   : > { %s1801_s29 = scalar_lea.vmem (%p2240_p5), %s3087_s5, %s1907_s21 }
 0x3b8   : > { %1908 = vst [vmem:[%s1801_s29 + $0x10] sm:$0xff] (%p2240_p5), %v1721_v36  ;;  %1909 = vst [vmem:[%s1801_s29 + $0x18] sm:$0xff] (%p2240_p5), %v1723_v59 }
 0x3b9   : > { %1910 = vst [vmem:[%s1801_s29 + $0x70] sm:$0xff] (%p2240_p5), %v1725_v37  ;;  %1911 = vst [vmem:[%s1801_s29 + $0x78] sm:$0xff] (%p2240_p5), %v1727_v21 }
 0x3c7   : > { %v2030_v63 = vpop.f32.mrf.mxu0 }
 0x3c9   : > { %v2031_v1 = vpop.f32.mrf.mxu0 }
 0x3ca   : > { %v2032_v5 = vadd.f32 %v2031_v1, %v2030_v63 }
 0x3cb   : > { %v2033_v4 = vpop.f32.mrf.mxu0  ;;  %v2068_v51 = vpop.f32.mrf.mxu1 }
 0x3cd   : > { %v2069_v7 = vpop.f32.mrf.mxu1  ;;  %v2034_v16 = vpop.f32.mrf.mxu0 }
 0x3ce   : > { %v2070_v13 = vadd.f32 %v2069_v7, %v2068_v51  ;;  %v2035_v20 = vadd.f32 %v2034_v16, %v2033_v4 }
 0x3cf   : > { %v2071_v19 = vpop.f32.mrf.mxu1 }
 0x3d0   : > { %v1678_v11 = vadd.f32 %v2070_v13, %v2032_v5 }
 0x3d1   : > { %v2072_v55 = vpop.f32.mrf.mxu1 }
 0x3d2   : > { %1686 = vst.msk [vmem:[%s2258_s24] sm:$0xff] %vm1525_vm9, %v1678_v11  ;;  %v2073_v24 = vadd.f32 %v2072_v55, %v2071_v19  ;;  %1704 = sbr.rel (!%p2240_p5) target bundleno = 983 (0x3d7), region = 100 }
 0x3d4   : > { %v1683_v2 = vadd.f32 %v2073_v24, %v2035_v20 }
 0x3d6   : > { %1687 = vst.msk [vmem:[%s2258_s24 + $0x8] sm:$0xff] %vm1525_vm9, %v1683_v2 }
 0x3d7 PF: > { %p15_p8 = scmp.ge.s32.totalorder %s2230_s4, 6   ;;  %s3091_s24 = smov %s2150_s25 }
 0x3d8   : > { %s3092_s25 = smov %s2238_s30  ;;  %s3093_s26 = smov %s2230_s4 }
 0x3d9   :  { %17 = sbr.rel (!%p15_p8) target bundleno = 2 (0x2), region = 194 }
 0x3de   :  { %1766 = vsyncmov [#allocation4] }
 0x3e1   :  { %s1767_s3 = vpop.sfrf %1766 }
 0x3e2   :  { %p1914_p9 = scmp.ne.s32.totalorder %s1767_s3, 0 }
 0x3e4   :  { %1771 = shalt.err (%p1914_p9)  }
 0x3e5   :  { %1773 = vsyncmov [#allocation4 + $0x1] }
 0x3e8   :  { %s1774_s8 = vpop.sfrf %1773 }
 0x3e9   :  { %p1915_p10 = scmp.ne.s32.totalorder %s1774_s8, 0 }
 0x3eb   :  { %1778 = shalt.err (%p1915_p10)  }

// kernel: basic_block_forward.5
= control target key start
LH: loop header
LB: loop body
LE: loop exit
PB: predicated region body
PF: predicated region fallthrough
CT: control target
= control target key end

     0   :  { %v272_v0 = vmov 0   ;;  %s598_s2 = inlined_call_operand.vmem [shape: f32[16,1], index: 2, kind: input, shape index: {}]   ;;  %s599_s1 = inlined_call_operand.vmem [shape: f32[16,1], index: 1, kind: input, shape index: {}]   ;;  %s600_s0 = inlined_call_operand.vmem [shape: f32[16,2048], index: 0, kind: input, shape index: {}]   ;;  %s601_s3 = inlined_call_operand.vmem [shape: f32[16,2048], index: 3, kind: input, shape index: {}]   ;;  %s602_s4 = inlined_call_operand.vmem [shape: f32[16,2048], index: 4, kind: output, shape index: {}]  }
   0x1   :  { %271 = vset.pattern.permute.xlu1 %v272_v0  ;;  %270 = vset.pattern.permute.xlu0 %v272_v0  ;;  %v93_v1 = vld [vmem:[%s598_s2] sm:$0xff]  ;;  %v94_v3 = vld [vmem:[%s598_s2 + $0x8] sm:$0xff]  ;;  %v19_v7 = vld [vmem:[%s600_s0 + $0x10] sm:$0xff] }
   0x2   :  { %v49_v2 = vld [vmem:[%s599_s1] sm:$0xff]  ;;  %97 = vperm.xlu1 %271, %v93_v1   ;;  %v50_v4 = vld [vmem:[%s599_s1 + $0x8] sm:$0xff]  ;;  %v20_v8 = vld [vmem:[%s600_s0 + $0x18] sm:$0xff] }
   0x3   :  { %53 = vperm.xlu0 %270, %v49_v2   ;;  %v17_v5 = vld [vmem:[%s600_s0] sm:$0xff]  ;;  %v18_v6 = vld [vmem:[%s600_s0 + $0x8] sm:$0xff]  ;;  %v23_v11 = vld [vmem:[%s600_s0 + $0x30] sm:$0xff] }
   0x4   :  { %v21_v9 = vld [vmem:[%s600_s0 + $0x20] sm:$0xff]  ;;  %v22_v10 = vld [vmem:[%s600_s0 + $0x28] sm:$0xff]  ;;  %v24_v12 = vld [vmem:[%s600_s0 + $0x38] sm:$0xff] }
   0x5   :  { %v25_v13 = vld [vmem:[%s600_s0 + $0x40] sm:$0xff]  ;;  %v26_v14 = vld [vmem:[%s600_s0 + $0x48] sm:$0xff]  ;;  %v27_v16 = vld [vmem:[%s600_s0 + $0x50] sm:$0xff] }
   0x6   :  { %102 = vperm.xlu1 %271, %v94_v3   ;;  %v28_v17 = vld [vmem:[%s600_s0 + $0x58] sm:$0xff]  ;;  %v29_v18 = vld [vmem:[%s600_s0 + $0x60] sm:$0xff]  ;;  %v30_v19 = vld [vmem:[%s600_s0 + $0x68] sm:$0xff] }
   0x7   :  { %58 = vperm.xlu0 %270, %v50_v4   ;;  %v31_v20 = vld [vmem:[%s600_s0 + $0x70] sm:$0xff]  ;;  %v32_v21 = vld [vmem:[%s600_s0 + $0x78] sm:$0xff]  ;;  %v137_v35 = vld [vmem:[%s601_s3] sm:$0xff] }
   0x8   :  { %v138_v40 = vld [vmem:[%s601_s3 + $0x8] sm:$0xff]  ;;  %v139_v41 = vld [vmem:[%s601_s3 + $0x10] sm:$0xff]  ;;  %v140_v42 = vld [vmem:[%s601_s3 + $0x18] sm:$0xff] }
   0x9   :  { %v141_v47 = vld [vmem:[%s601_s3 + $0x20] sm:$0xff]  ;;  %v142_v48 = vld [vmem:[%s601_s3 + $0x28] sm:$0xff]  ;;  %v143_v49 = vld [vmem:[%s601_s3 + $0x30] sm:$0xff] }
   0xa   :  { %v144_v54 = vld [vmem:[%s601_s3 + $0x38] sm:$0xff]  ;;  %v145_v55 = vld [vmem:[%s601_s3 + $0x40] sm:$0xff]  ;;  %v146_v56 = vld [vmem:[%s601_s3 + $0x48] sm:$0xff] }
   0xb   :  { %v147_v61 = vld [vmem:[%s601_s3 + $0x50] sm:$0xff]  ;;  %v148_v62 = vld [vmem:[%s601_s3 + $0x58] sm:$0xff]  ;;  %v149_v63 = vld [vmem:[%s601_s3 + $0x60] sm:$0xff] }
   0xc   :  { %v150_v4 = vld [vmem:[%s601_s3 + $0x68] sm:$0xff] }
  0x7d   :  { %v98_v34 = vpop.permute.xlu1 %97 }
  0x7e   :  { %v54_v15 = vpop.permute.xlu0 %53 }
  0x7f   :  { %v61_v22 = vmul.f32 %v54_v15, %v17_v5  ;;  %v62_v23 = vmul.f32 %v54_v15, %v18_v6  ;;  %v63_v24 = vmul.f32 %v54_v15, %v19_v7  ;;  %v64_v25 = vmul.f32 %v54_v15, %v20_v8  ;;  %v151_v5 = vld [vmem:[%s601_s3 + $0x70] sm:$0xff]  ;;  %v152_v6 = vld [vmem:[%s601_s3 + $0x78] sm:$0xff] }
  0x80   :  { %v65_v26 = vmul.f32 %v54_v15, %v21_v9  ;;  %v66_v27 = vmul.f32 %v54_v15, %v22_v10  ;;  %v67_v28 = vmul.f32 %v54_v15, %v23_v11  ;;  %v68_v29 = vmul.f32 %v54_v15, %v24_v12 }
  0x81   :  { %v69_v30 = vmul.f32 %v54_v15, %v25_v13  ;;  %v70_v31 = vmul.f32 %v54_v15, %v26_v14  ;;  %v71_v32 = vmul.f32 %v54_v15, %v27_v16  ;;  %v72_v33 = vmul.f32 %v54_v15, %v28_v17 }
  0x82   :  { %v73_v36 = vmul.f32 %v54_v15, %v29_v18  ;;  %v74_v37 = vmul.f32 %v54_v15, %v30_v19  ;;  %v75_v38 = vmul.f32 %v54_v15, %v31_v20  ;;  %v76_v39 = vmul.f32 %v54_v15, %v32_v21 }
  0x83   :  { %v105_v43 = vadd.f32 %v98_v34, %v61_v22  ;;  %v106_v44 = vadd.f32 %v98_v34, %v62_v23  ;;  %v107_v45 = vadd.f32 %v98_v34, %v63_v24  ;;  %v108_v46 = vadd.f32 %v98_v34, %v64_v25  ;;  %v33_v23 = vld [vmem:[%s600_s0 + $0x80] sm:$0xff]  ;;  %v34_v24 = vld [vmem:[%s600_s0 + $0x88] sm:$0xff]  ;;  %v35_v25 = vld [vmem:[%s600_s0 + $0x90] sm:$0xff] }
  0x84   :  { %v109_v50 = vadd.f32 %v98_v34, %v65_v26  ;;  %v110_v51 = vadd.f32 %v98_v34, %v66_v27  ;;  %v111_v52 = vadd.f32 %v98_v34, %v67_v28  ;;  %v112_v53 = vadd.f32 %v98_v34, %v68_v29  ;;  %v36_v26 = vld [vmem:[%s600_s0 + $0x98] sm:$0xff] }
  0x85   :  { %v113_v57 = vadd.f32 %v98_v34, %v69_v30  ;;  %v114_v58 = vadd.f32 %v98_v34, %v70_v31  ;;  %v115_v59 = vadd.f32 %v98_v34, %v71_v32  ;;  %v116_v60 = vadd.f32 %v98_v34, %v72_v33  ;;  %v37_v31 = vld [vmem:[%s600_s0 + $0xa0] sm:$0xff]  ;;  %v38_v32 = vld [vmem:[%s600_s0 + $0xa8] sm:$0xff]  ;;  %v39_v33 = vld [vmem:[%s600_s0 + $0xb0] sm:$0xff] }
  0x86   :  { %v117_v0 = vadd.f32 %v98_v34, %v73_v36  ;;  %v118_v1 = vadd.f32 %v98_v34, %v74_v37  ;;  %v119_v2 = vadd.f32 %v98_v34, %v75_v38  ;;  %v120_v3 = vadd.f32 %v98_v34, %v76_v39  ;;  %v59_v38 = vpop.permute.xlu0 %58  ;;  %v40_v39 = vld [vmem:[%s600_s0 + $0xb8] sm:$0xff] }
  0x87   :  { %v169_v7 = vadd.f32 %v137_v35, %v105_v43  ;;  %v170_v8 = vadd.f32 %v138_v40, %v106_v44  ;;  %v171_v9 = vadd.f32 %v139_v41, %v107_v45  ;;  %v172_v10 = vadd.f32 %v140_v42, %v108_v46  ;;  %v41_v40 = vld [vmem:[%s600_s0 + $0xc0] sm:$0xff]  ;;  %v42_v45 = vld [vmem:[%s600_s0 + $0xc8] sm:$0xff]  ;;  %v43_v46 = vld [vmem:[%s600_s0 + $0xd0] sm:$0xff] }
  0x88   :  { %v173_v11 = vadd.f32 %v141_v47, %v109_v50  ;;  %v174_v12 = vadd.f32 %v142_v48, %v110_v51  ;;  %v175_v13 = vadd.f32 %v143_v49, %v111_v52  ;;  %v176_v14 = vadd.f32 %v144_v54, %v112_v53  ;;  %v44_v51 = vld [vmem:[%s600_s0 + $0xd8] sm:$0xff]  ;;  %v45_v52 = vld [vmem:[%s600_s0 + $0xe0] sm:$0xff]  ;;  %v46_v53 = vld [vmem:[%s600_s0 + $0xe8] sm:$0xff] }
  0x89   :  { %v177_v15 = vadd.f32 %v145_v55, %v113_v57  ;;  %v178_v16 = vadd.f32 %v146_v56, %v114_v58  ;;  %v179_v17 = vadd.f32 %v147_v61, %v115_v59  ;;  %v180_v18 = vadd.f32 %v148_v62, %v116_v60  ;;  %v47_v54 = vld [vmem:[%s600_s0 + $0xf0] sm:$0xff]  ;;  %v48_v55 = vld [vmem:[%s600_s0 + $0xf8] sm:$0xff] }
  0x8a   :  { %v181_v19 = vadd.f32 %v149_v63, %v117_v0  ;;  %v182_v20 = vadd.f32 %v150_v4, %v118_v1  ;;  %v183_v21 = vadd.f32 %v151_v5, %v119_v2  ;;  %v184_v22 = vadd.f32 %v152_v6, %v120_v3  ;;  %v103_v4 = vpop.permute.xlu1 %102  ;;  %v153_v5 = vld [vmem:[%s601_s3 + $0x80] sm:$0xff] }
  0x8b   :  { %v201_v27 = vmax.f32 %v169_v7, 0.0  ;;  %v202_v28 = vmax.f32 %v170_v8, 0.0  ;;  %v203_v29 = vmax.f32 %v171_v9, 0.0  ;;  %v204_v30 = vmax.f32 %v172_v10, 0.0  ;;  %v154_v10 = vld [vmem:[%s601_s3 + $0x88] sm:$0xff] }
  0x8c   :  { %v205_v34 = vmax.f32 %v173_v11, 0.0  ;;  %v206_v35 = vmax.f32 %v174_v12, 0.0  ;;  %v207_v36 = vmax.f32 %v175_v13, 0.0  ;;  %v208_v37 = vmax.f32 %v176_v14, 0.0  ;;  %v155_v11 = vld [vmem:[%s601_s3 + $0x90] sm:$0xff]  ;;  %v156_v12 = vld [vmem:[%s601_s3 + $0x98] sm:$0xff] }
  0x8d   :  { %v209_v41 = vmax.f32 %v177_v15, 0.0  ;;  %v210_v42 = vmax.f32 %v178_v16, 0.0  ;;  %v211_v43 = vmax.f32 %v179_v17, 0.0  ;;  %v212_v44 = vmax.f32 %v180_v18, 0.0  ;;  %233 = vst [vmem:[%s602_s4] sm:$0xff] %v201_v27  ;;  %234 = vst [vmem:[%s602_s4 + $0x8] sm:$0xff] %v202_v28  ;;  %v157_v17 = vld [vmem:[%s601_s3 + $0xa0] sm:$0xff] }
  0x8e   :  { %235 = vst [vmem:[%s602_s4 + $0x10] sm:$0xff] %v203_v29  ;;  %236 = vst [vmem:[%s602_s4 + $0x18] sm:$0xff] %v204_v30  ;;  %v213_v47 = vmax.f32 %v181_v19, 0.0  ;;  %v214_v48 = vmax.f32 %v182_v20, 0.0  ;;  %v215_v49 = vmax.f32 %v183_v21, 0.0  ;;  %v216_v50 = vmax.f32 %v184_v22, 0.0 }
  0x8f   :  { %237 = vst [vmem:[%s602_s4 + $0x20] sm:$0xff] %v205_v34  ;;  %238 = vst [vmem:[%s602_s4 + $0x28] sm:$0xff] %v206_v35  ;;  %v77_v56 = vmul.f32 %v59_v38, %v33_v23  ;;  %v78_v57 = vmul.f32 %v59_v38, %v34_v24  ;;  %v79_v58 = vmul.f32 %v59_v38, %v35_v25  ;;  %v158_v18 = vld [vmem:[%s601_s3 + $0xa8] sm:$0xff]  ;;  %v159_v19 = vld [vmem:[%s601_s3 + $0xb0] sm:$0xff] }
  0x90   :  { %239 = vst [vmem:[%s602_s4 + $0x30] sm:$0xff] %v207_v36  ;;  %240 = vst [vmem:[%s602_s4 + $0x38] sm:$0xff] %v208_v37  ;;  %v80_v59 = vmul.f32 %v59_v38, %v36_v26  ;;  %v81_v60 = vmul.f32 %v59_v38, %v37_v31  ;;  %v82_v61 = vmul.f32 %v59_v38, %v38_v32  ;;  %v160_v24 = vld [vmem:[%s601_s3 + $0xb8] sm:$0xff]  ;;  %v161_v25 = vld [vmem:[%s601_s3 + $0xc0] sm:$0xff] }
  0x91   :  { %241 = vst [vmem:[%s602_s4 + $0x40] sm:$0xff] %v209_v41  ;;  %242 = vst [vmem:[%s602_s4 + $0x48] sm:$0xff] %v210_v42  ;;  %v83_v62 = vmul.f32 %v59_v38, %v39_v33  ;;  %v84_v63 = vmul.f32 %v59_v38, %v40_v39  ;;  %v85_v0 = vmul.f32 %v59_v38, %v41_v40  ;;  %v162_v26 = vld [vmem:[%s601_s3 + $0xc8] sm:$0xff]  ;;  %v163_v31 = vld [vmem:[%s601_s3 + $0xd0] sm:$0xff] }
  0x92   :  { %243 = vst [vmem:[%s602_s4 + $0x50] sm:$0xff] %v211_v43  ;;  %244 = vst [vmem:[%s602_s4 + $0x58] sm:$0xff] %v212_v44  ;;  %v86_v1 = vmul.f32 %v59_v38, %v42_v45  ;;  %v87_v2 = vmul.f32 %v59_v38, %v43_v46  ;;  %v88_v3 = vmul.f32 %v59_v38, %v44_v51  ;;  %v164_v32 = vld [vmem:[%s601_s3 + $0xd8] sm:$0xff]  ;;  %v165_v33 = vld [vmem:[%s601_s3 + $0xe0] sm:$0xff] }
  0x93   :  { %245 = vst [vmem:[%s602_s4 + $0x60] sm:$0xff] %v213_v47  ;;  %246 = vst [vmem:[%s602_s4 + $0x68] sm:$0xff] %v214_v48  ;;  %v89_v6 = vmul.f32 %v59_v38, %v45_v52  ;;  %v90_v7 = vmul.f32 %v59_v38, %v46_v53  ;;  %v91_v8 = vmul.f32 %v59_v38, %v47_v54  ;;  %v167_v39 = vld [vmem:[%s601_s3 + $0xf0] sm:$0xff]  ;;  %v168_v40 = vld [vmem:[%s601_s3 + $0xf8] sm:$0xff] }
  0x94   :  { %247 = vst [vmem:[%s602_s4 + $0x70] sm:$0xff] %v215_v49  ;;  %248 = vst [vmem:[%s602_s4 + $0x78] sm:$0xff] %v216_v50  ;;  %v92_v9 = vmul.f32 %v59_v38, %v48_v55  ;;  %v121_v13 = vadd.f32 %v103_v4, %v77_v56  ;;  %v122_v14 = vadd.f32 %v103_v4, %v78_v57  ;;  %v166_v38 = vld [vmem:[%s601_s3 + $0xe8] sm:$0xff] }
  0x95   :  { %v123_v15 = vadd.f32 %v103_v4, %v79_v58  ;;  %v124_v16 = vadd.f32 %v103_v4, %v80_v59  ;;  %v125_v20 = vadd.f32 %v103_v4, %v81_v60  ;;  %v126_v21 = vadd.f32 %v103_v4, %v82_v61 }
  0x96   :  { %v127_v22 = vadd.f32 %v103_v4, %v83_v62  ;;  %v128_v23 = vadd.f32 %v103_v4, %v84_v63  ;;  %v129_v27 = vadd.f32 %v103_v4, %v85_v0  ;;  %v130_v28 = vadd.f32 %v103_v4, %v86_v1 }
  0x97   :  { %v131_v29 = vadd.f32 %v103_v4, %v87_v2  ;;  %v132_v30 = vadd.f32 %v103_v4, %v88_v3  ;;  %v133_v34 = vadd.f32 %v103_v4, %v89_v6  ;;  %v134_v35 = vadd.f32 %v103_v4, %v90_v7 }
  0x98   :  { %v135_v36 = vadd.f32 %v103_v4, %v91_v8  ;;  %v136_v37 = vadd.f32 %v103_v4, %v92_v9  ;;  %v185_v41 = vadd.f32 %v153_v5, %v121_v13  ;;  %v186_v42 = vadd.f32 %v154_v10, %v122_v14 }
  0x99   :  { %v187_v43 = vadd.f32 %v155_v11, %v123_v15  ;;  %v188_v44 = vadd.f32 %v156_v12, %v124_v16  ;;  %v189_v45 = vadd.f32 %v157_v17, %v125_v20  ;;  %v190_v46 = vadd.f32 %v158_v18, %v126_v21 }
  0x9a   :  { %v191_v47 = vadd.f32 %v159_v19, %v127_v22  ;;  %v192_v48 = vadd.f32 %v160_v24, %v128_v23  ;;  %v193_v49 = vadd.f32 %v161_v25, %v129_v27  ;;  %v194_v50 = vadd.f32 %v162_v26, %v130_v28 }
  0x9b   :  { %v195_v51 = vadd.f32 %v163_v31, %v131_v29  ;;  %v196_v52 = vadd.f32 %v164_v32, %v132_v30  ;;  %v197_v53 = vadd.f32 %v165_v33, %v133_v34  ;;  %v198_v54 = vadd.f32 %v166_v38, %v134_v35 }
  0x9c   :  { %v199_v55 = vadd.f32 %v167_v39, %v135_v36  ;;  %v200_v56 = vadd.f32 %v168_v40, %v136_v37  ;;  %v217_v57 = vmax.f32 %v185_v41, 0.0  ;;  %v218_v58 = vmax.f32 %v186_v42, 0.0 }
  0x9d   :  { %v219_v59 = vmax.f32 %v187_v43, 0.0  ;;  %v220_v60 = vmax.f32 %v188_v44, 0.0  ;;  %v221_v61 = vmax.f32 %v189_v45, 0.0  ;;  %v222_v62 = vmax.f32 %v190_v46, 0.0 }
  0x9e   :  { %v223_v63 = vmax.f32 %v191_v47, 0.0  ;;  %v224_v0 = vmax.f32 %v192_v48, 0.0  ;;  %v225_v1 = vmax.f32 %v193_v49, 0.0  ;;  %v226_v2 = vmax.f32 %v194_v50, 0.0  ;;  %249 = vst [vmem:[%s602_s4 + $0x80] sm:$0xff] %v217_v57  ;;  %250 = vst [vmem:[%s602_s4 + $0x88] sm:$0xff] %v218_v58 }
  0x9f   :  { %v227_v3 = vmax.f32 %v195_v51, 0.0  ;;  %v228_v4 = vmax.f32 %v196_v52, 0.0  ;;  %251 = vst [vmem:[%s602_s4 + $0x90] sm:$0xff] %v219_v59  ;;  %252 = vst [vmem:[%s602_s4 + $0x98] sm:$0xff] %v220_v60  ;;  %v229_v5 = vmax.f32 %v197_v53, 0.0  ;;  %v230_v6 = vmax.f32 %v198_v54, 0.0 }
  0xa0   :  { %v231_v7 = vmax.f32 %v199_v55, 0.0  ;;  %v232_v8 = vmax.f32 %v200_v56, 0.0  ;;  %253 = vst [vmem:[%s602_s4 + $0xa0] sm:$0xff] %v221_v61  ;;  %254 = vst [vmem:[%s602_s4 + $0xa8] sm:$0xff] %v222_v62 }
  0xa1   :  { %255 = vst [vmem:[%s602_s4 + $0xb0] sm:$0xff] %v223_v63  ;;  %256 = vst [vmem:[%s602_s4 + $0xb8] sm:$0xff] %v224_v0 }
  0xa2   :  { %257 = vst [vmem:[%s602_s4 + $0xc0] sm:$0xff] %v225_v1  ;;  %258 = vst [vmem:[%s602_s4 + $0xc8] sm:$0xff] %v226_v2 }
  0xa3   :  { %259 = vst [vmem:[%s602_s4 + $0xd0] sm:$0xff] %v227_v3  ;;  %260 = vst [vmem:[%s602_s4 + $0xd8] sm:$0xff] %v228_v4 }
  0xa4   :  { %261 = vst [vmem:[%s602_s4 + $0xe0] sm:$0xff] %v229_v5  ;;  %262 = vst [vmem:[%s602_s4 + $0xe8] sm:$0xff] %v230_v6 }
  0xa5   :  { %263 = vst [vmem:[%s602_s4 + $0xf0] sm:$0xff] %v231_v7  ;;  %264 = vst [vmem:[%s602_s4 + $0xf8] sm:$0xff] %v232_v8 }

// kernel: basic_block_forward.4
= control target key start
LH: loop header
LB: loop body
LE: loop exit
PB: predicated region body
PF: predicated region fallthrough
CT: control target
= control target key end

     0   :  { %s2282_s24 = smov 0   ;;  %s2284_s25 = smov 0   ;;  %s3439_s0 = inlined_call_operand.vmem [shape: bf16[16,3072], index: 0, kind: input, shape index: {}]   ;;  %s3440_s1 = inlined_call_operand.vmem [shape: f32[1,2304], index: 1, kind: input, shape index: {}]   ;;  %s3441_s2 = inlined_call_operand.vmem [shape: bf16[3,16,144], index: 2, kind: input, shape index: {}]   ;;  %s3442_s3 = inlined_call_operand.vmem [shape: f32[16,1], index: 3, kind: input, shape index: {}]   ;;  %s3443_s4 = inlined_call_operand.vmem [shape: f32[16,1], index: 4, kind: input, shape index: {}]   ;;  %s3444_s5 = inlined_call_operand.vmem [shape: f32[16,2048], index: 5, kind: output, shape index: {0}]   ;;  %s3445_s6 = inlined_call_operand.vmem [shape: f32[4,16,1], index: 6, kind: output, shape index: {1}]   ;;  %s3446_s7 = inlined_call_operand.vmem [shape: f32[4,16,1], index: 7, kind: output, shape index: {2}]  }
   0x1   :  { %s2286_s26 = smov 0  }
   0x2 LB: > { %s2293_s27 = sadd.s32 4294967295, %s2227_s26   ;;  %s2295_s28 = sadd.s32 1, %s2227_s26   ;;  %s2227_s26 = sphi %s2286_s26, %s3505_s26   ;;  %s2223_s25 = sphi %s2284_s25, %s3504_s25   ;;  %s2219_s24 = sphi %s2282_s24, %s3503_s24  }
   0x3   : > { %s85_s29 = ssub.s32 %s2227_s26, %s2295_s28  ;;  %s88_s30 = sadd.s32 1, %s2223_s25 }
   0x4   : > { %p86_p0 = scmp.eq.s32.totalorder %s85_s29, 0  ;;  %p98_p1 = scmp.ne.s32.totalorder %s2223_s25, %s2219_s24 }
   0x5   : > { %p99_p2 = scmp.eq.s32.totalorder %s2293_s27, 3  ;;  %p1959_p3 = scmp.ge.s32.totalorder %s2227_s26, 1 }
   0x6   : > { %s2302_s8 = scalar_select %p86_p0, %s2223_s25, %s88_s30  }
   0x7   : > { %p2304_p4 = por %p99_p2, %p98_p1  ;;  %p184_p5 = scmp.lt.s32.totalorder %s2227_s26, 5 }
   0x9   : > { %p185_p6 = pnand %p1959_p3, %p184_p5 }
   0xb   : > { %188 = sbr.rel (%p185_p6) target bundleno = 1164 (0x48c), region = 32 }
  0x10   : > { %s199_s10 = sand.u32 1, %s2219_s24   ;;  %p217_p7 = scmp.lt.s32.totalorder %s2293_s27, 3 }
  0x11   : > { %s1960_s11 = sshll.u32 %s199_s10, 6  ;;  %s1965_s12 = sshll.u32 %s2293_s27, 9 }
  0x12   : > { %s229_s13 = sadd.s32 384, %s1965_s12  ;;  %s2334_s30 = scalar_lea.vmem [#allocation5], %s1960_s11 }
  0x13   : > { %s218_s14 = scalar_select %p217_p7, %s2293_s27, 3 }
  0x14   : > { %s230_s15 = sshra.s32 %s229_s13, 7 }
  0x15   : > { %s1998_s16 = sshll.u32 %s218_s14, 4  ;;  %s1966_s17 = sshll.u32 %s230_s15, 2 }
  0x16   : > { %s2314_s20 = scalar_lea.vmem %s3445_s6, %s1998_s16  ;;  %s2319_s23 = scalar_lea.vmem %s3446_s7, %s1998_s16 }
  0x17   : > { %s233_s29 = scalar_lea.vmem %s3439_s0, %s1966_s17 }
  0x18   : > { %v2324_v0 = vld [vmem:[%s233_s29] sm:$0xff]  ;;  %v271_v1 = vld [vmem:[%s233_s29 + $0x8] sm:$0xff]  ;;  %v2326_v2 = vld [vmem:[%s233_s29 + $0x10] sm:$0xff] }
  0x19   : > { %v2328_v3 = vld [vmem:[%s233_s29 + $0x60] sm:$0xff]  ;;  %v2330_v4 = vld [vmem:[%s233_s29 + $0x68] sm:$0xff]  ;;  %v2332_v5 = vld [vmem:[%s233_s29 + $0x70] sm:$0xff] }
  0x1a   : > { %288 = vsyncadd [#allocation4], 768  ;;  %s289_s10 = sshra.s32 %s1965_s12, 7 }
  0x1b   : > { %s291_s15 = scalar_lea.vmem %s3440_s1, %s289_s10 }
  0x1c   : > { %v311_v6 = vld [vmem:[%s291_s15] sm:$0x3f] }
  0x1d   : > { %312 = vst [vmem:[#allocation3] sm:$0x3f] %v311_v6 }
  0x1e   : > { %338 = vsyncadd [#allocation4 + $0x1], 96 }
  0x1f   : > { %2213 = dma.done.wait [#allocation4], 768 }
  0x20   : > { %2214 = vsyncadd [#allocation4], 4294966528 }
  0x21   : > { %2215 = dma.done.wait [#allocation4 + $0x1], 96 }
  0x22   : > { %2216 = vsyncadd [#allocation4 + $0x1], 4294967200  ;;  %v3451_v7 = vmov 0   ;;  %v388_v8 = vld [vmem:[%s3443_s4] sm:$0xff]  ;;  %v389_v10 = vld [vmem:[%s3443_s4 + $0x8] sm:$0xff]  ;;  %v427_v12 = vlaneseq  ;;  %v353_v15 = vunpack.c.h.bf16 %v2324_v0  ;;  %v354_v16 = vunpack.c.l.bf16 %v271_v1  ;;  %s2230_s24 = smov 107  }
  0x23   : > { %2191 = vset.pattern.permute.xlu1 %v3451_v7  ;;  %2190 = vset.pattern.permute.xlu0 %v3451_v7  ;;  %v364_v9 = vld [vmem:[%s3442_s3] sm:$0xff]  ;;  %v365_v11 = vld [vmem:[%s3442_s3 + $0x8] sm:$0xff]  ;;  %v355_v19 = vunpack.c.h.bf16 %v271_v1  ;;  %v356_v24 = vunpack.c.l.bf16 %v2326_v2  ;;  %v359_v26 = vunpack.c.h.bf16 %v2328_v3  ;;  %v357_v31 = vunpack.c.h.bf16 %v2326_v2  ;;  %s2231_s26 = smov 108   ;;  %s2232_s29 = smov 116  }
  0x24   : > { %392 = vperm.xlu1 %2191, %v388_v8   ;;  %368 = vperm.xlu0 %2190, %v364_v9   ;;  %v424_v13 = vld [vmem:[#allocation3] sm:$0x3f]  ;;  %v2353_v14 = vshrl.u32 %v427_v12, 7  ;;  %v360_v33 = vunpack.c.l.bf16 %v2330_v4  ;;  %v361_v34 = vunpack.c.h.bf16 %v2330_v4  ;;  %v362_v37 = vunpack.c.l.bf16 %v2332_v5  ;;  %s2233_s10 = smov 117   ;;  %s2234_s13 = smov 118  }
  0x25   : > { %vm425_vm0 = vcmp.gt.f32.partialorder %v424_v13, 0.0  ;;  %v363_v38 = vunpack.c.h.bf16 %v2332_v5  ;;  %s2235_s14 = smov 126   ;;  %s2236_s15 = smov 127   ;;  %vm580_vm7 = vcmask 875520   ;;  %vm565_vm8 = vcmask 883712  }
  0x26   : > { %3466 = vst [vmem:[#allocation10_spill] sm:$0xff] %v2353_v14  ;;  %v3448_v17 = vsub.s32 1, %v2353_v14  ;;  %v2358_v18 = vsel %vm425_vm0, 1, %v3451_v7  ;;  %v3449_v22 = vsub.s32 2, %v2353_v14  ;;  %v3450_v27 = vsub.s32 3, %v2353_v14  ;;  %s2237_s11 = smov 106  }
  0x27   : > { %v445_v28 = vsub.s32 4, %v2353_v14  ;;  %v449_v29 = vsub.s32 5, %v2353_v14  ;;  %s2238_s16 = smov 11   ;;  %s2239_s12 = smov 111   ;;  %vm550_vm9 = vcmask 949248   ;;  %vm535_vm10 = vcmask 957440  }
  0x28   : > { %397 = vperm.xlu1 %2191, %v389_v10   ;;  %373 = vperm.xlu0 %2190, %v365_v11   ;;  %v434_v30 = vrot.slane %v2358_v18, %v3448_v17  ;;  %v438_v39 = vrot.slane %v2358_v18, %v3449_v22  ;;  %v442_v43 = vrot.slane %v2358_v18, %v3450_v27  ;;  %vm520_vm11 = vcmask 965632   ;;  %s2240_s19 = smov 39  }
  0x29   : > { %v446_v44 = vrot.slane %v2358_v18, %v445_v28  ;;  %v450_v45 = vrot.slane %v2358_v18, %v449_v29  ;;  %vm505_vm12 = vcmask 1031168   ;;  %vm490_vm13 = vcmask 1039360  }
  0x2a   : > { %vm452_vm1 = vcmp.eq.s32.totalorder %v434_v30, 1  ;;  %vm453_vm2 = vcmp.eq.s32.totalorder %v438_v39, 1  ;;  %vm454_vm3 = vcmp.eq.s32.totalorder %v442_v43, 1  ;;  %vm595_vm14 = vcmask 867328  }
  0x2b   : > { %vm455_vm4 = vcmp.eq.s32.totalorder %v446_v44, 1  ;;  %vm456_vm5 = vcmp.eq.s32.totalorder %v450_v45, 1  ;;  %vm790_vm15 = vcmask 130048   ;;  %vm717_vm0 = vcmask 89088  }
  0x9f   : > { %v2360_v20 = vpop.permute.xlu0 %368  ;;  %v2364_v23 = vpop.permute.xlu1 %392 }
  0xa0   : > { %v377_v21 = vmul.f32 %v2360_v20, %v353_v15  ;;  %v378_v25 = vmul.f32 %v2360_v20, %v354_v16  ;;  %v379_v32 = vmul.f32 %v2360_v20, %v355_v19  ;;  %v380_v40 = vmul.f32 %v2360_v20, %v356_v24 }
  0xa1   : > { %v381_v46 = vmul.f32 %v2360_v20, %v357_v31  ;;  %v358_v31 = vunpack.c.l.bf16 %v2328_v3  ;;  %v3447_v3 = vsub.s32 0, %v2353_v14 }
  0xa2   : > { %v401_v36 = vadd.f32 %v2364_v23, %v377_v21  ;;  %v402_v41 = vadd.f32 %v2364_v23, %v378_v25  ;;  %v403_v47 = vadd.f32 %v2364_v23, %v379_v32  ;;  %v404_v55 = vadd.f32 %v2364_v23, %v380_v40 }
  0xa3   : > { %v2379_v35 = vpop.permute.xlu0 %373  ;;  %v2397_v48 = vpop.permute.xlu1 %397  ;;  %v405_v62 = vadd.f32 %v2364_v23, %v381_v46  ;;  %v352_v32 = vunpack.c.l.bf16 %v2324_v0 }
  0xa4   : > { %v383_v42 = vmul.f32 %v2379_v35, %v359_v26  ;;  %v384_v49 = vmul.f32 %v2379_v35, %v360_v33  ;;  %v385_v50 = vmul.f32 %v2379_v35, %v361_v34  ;;  %v413_v51 = vmax.f32 %v401_v36, 0.0 }
  0xa5   : > { %v386_v52 = vmul.f32 %v2379_v35, %v362_v37  ;;  %v387_v53 = vmul.f32 %v2379_v35, %v363_v38  ;;  %v414_v56 = vmax.f32 %v402_v41, 0.0  ;;  %v415_v2 = vmax.f32 %v403_v47, 0.0 }
  0xa6   : > { %v407_v54 = vadd.f32 %v2397_v48, %v383_v42  ;;  %v408_v57 = vadd.f32 %v2397_v48, %v384_v49  ;;  %v409_v58 = vadd.f32 %v2397_v48, %v385_v50  ;;  %v458_v4 = vsel %vm452_vm1, %v413_v51, 0.0 }
  0xa7   : > { %v410_v59 = vadd.f32 %v2397_v48, %v386_v52  ;;  %v411_v60 = vadd.f32 %v2397_v48, %v387_v53  ;;  %v416_v8 = vmax.f32 %v404_v55, 0.0  ;;  %v459_v9 = vsel %vm453_vm2, %v414_v56, 0.0 }
  0xa8   : > { %v419_v61 = vmax.f32 %v407_v54, 0.0  ;;  %v420_v63 = vmax.f32 %v408_v57, 0.0  ;;  %v421_v1 = vmax.f32 %v409_v58, 0.0  ;;  %v417_v19 = vmax.f32 %v405_v62, 0.0 }
  0xa9   : > { %v422_v5 = vmax.f32 %v410_v59, 0.0  ;;  %v423_v12 = vmax.f32 %v411_v60, 0.0  ;;  %v460_v21 = vsel %vm454_vm3, %v415_v2, 0.0  ;;  %v461_v24 = vsel %vm455_vm4, %v416_v8, 0.0 }
  0xaa   : > { %v464_v6 = vsel %vm452_vm1, %v419_v61, 0.0  ;;  %v465_v10 = vsel %vm453_vm2, %v420_v63, 0.0  ;;  %v466_v13 = vsel %vm454_vm3, %v421_v1, 0.0  ;;  %v462_v29 = vsel %vm456_vm5, %v417_v19, 0.0 }
  0xab   : > { %v2412_v11 = vpack.c.bf16 %v464_v6, %v458_v4  ;;  %v2415_v15 = vpack.c.bf16 %v465_v10, %v459_v9  ;;  %v467_v16 = vsel %vm455_vm4, %v422_v5, 0.0  ;;  %v2422_v25 = vpack.c.bf16 %v466_v13, %v460_v21 }
  0xac   : > { %v468_v26 = vsel %vm456_vm5, %v423_v12, 0.0  ;;  %v2424_v28 = vpack.c.bf16 %v467_v16, %v461_v24  ;;  %v382_v33 = vmul.f32 %v2379_v35, %v358_v31  ;;  %v376_v34 = vmul.f32 %v2360_v20, %v352_v32 }
  0xad   : > { %3467 = vst [vmem:[#allocation11_spill] sm:$0xff] %v2415_v15  ;;  %572 = vrot.lane.b32.xlu0 %v2412_v11, %s2230_s24  ;;  %574 = vrot.lane.b32.xlu1 %v2415_v15, %s2230_s24  ;;  %v2430_v30 = vpack.c.bf16 %v468_v26, %v462_v29  ;;  %v430_v35 = vrot.slane %v2358_v18, %v3447_v3  ;;  %vm979_vm1 = vcmask 908288   ;;  %vm1255_vm2 = vcmask 318464  }
  0xae   : > { %3468 = vst [vmem:[#allocation12_spill] sm:$0xff] %v2424_v28  ;;  %v406_v36 = vadd.f32 %v2397_v48, %v382_v33  ;;  %v400_v0 = vadd.f32 %v2364_v23, %v376_v34 }
  0xaf   : > { %3469 = vst [vmem:[#allocation13_spill] sm:$0xff] %v2430_v30  ;;  %vm451_vm6 = vcmp.eq.s32.totalorder %v430_v35, 1 }
  0xb0   : > { %v418_v37 = vmax.f32 %v406_v36, 0.0  ;;  %v412_v20 = vmax.f32 %v400_v0, 0.0 }
  0xb1   : > { %576 = vrot.lane.b32.xlu0 %v2422_v25, %s2230_s24  ;;  %578 = vrot.lane.b32.xlu1 %v2424_v28, %s2230_s24 }
  0xb2   : > { %v463_v38 = vsel %vm451_vm6, %v418_v37, 0.0  ;;  %v457_v23 = vsel %vm451_vm6, %v412_v20, 0.0 }
  0xb3   : > { %v2478_v39 = vpack.c.bf16 %v463_v38, %v457_v23 }
  0xb5   : > { %609 = vrot.lane.b32.xlu0 %v2430_v30, %s2230_s24  ;;  %557 = vrot.lane.b32.xlu1 %v2412_v11, %s2231_s26 }
  0xb9   : > { %559 = vrot.lane.b32.xlu0 %v2415_v15, %s2231_s26  ;;  %561 = vrot.lane.b32.xlu1 %v2422_v25, %s2231_s26 }
  0xbd   : > { %563 = vrot.lane.b32.xlu0 %v2424_v28, %s2231_s26  ;;  %606 = vrot.lane.b32.xlu1 %v2430_v30, %s2231_s26 }
  0xc1   : > { %542 = vrot.lane.b32.xlu0 %v2412_v11, %s2232_s29  ;;  %544 = vrot.lane.b32.xlu1 %v2415_v15, %s2232_s29 }
  0xc5   : > { %546 = vrot.lane.b32.xlu0 %v2422_v25, %s2232_s29  ;;  %548 = vrot.lane.b32.xlu1 %v2424_v28, %s2232_s29 }
  0xc9   : > { %603 = vrot.lane.b32.xlu0 %v2430_v30, %s2232_s29  ;;  %527 = vrot.lane.b32.xlu1 %v2412_v11, %s2233_s10 }
  0xcd   : > { %529 = vrot.lane.b32.xlu0 %v2415_v15, %s2233_s10  ;;  %531 = vrot.lane.b32.xlu1 %v2422_v25, %s2233_s10 }
  0xd1   : > { %533 = vrot.lane.b32.xlu0 %v2424_v28, %s2233_s10  ;;  %512 = vrot.lane.b32.xlu1 %v2412_v11, %s2234_s13 }
  0xd5   : > { %514 = vrot.lane.b32.xlu0 %v2415_v15, %s2234_s13  ;;  %516 = vrot.lane.b32.xlu1 %v2422_v25, %s2234_s13 }
  0xd9   : > { %518 = vrot.lane.b32.xlu0 %v2424_v28, %s2234_s13  ;;  %510 = vrot.lane.b32.xlu1 %v2478_v39, %s2234_s13 }
  0xdd   : > { %497 = vrot.lane.b32.xlu0 %v2412_v11, %s2235_s14  ;;  %499 = vrot.lane.b32.xlu1 %v2415_v15, %s2235_s14 }
  0xe1   : > { %501 = vrot.lane.b32.xlu0 %v2422_v25, %s2235_s14  ;;  %503 = vrot.lane.b32.xlu1 %v2424_v28, %s2235_s14 }
  0xe5   : > { %495 = vrot.lane.b32.xlu0 %v2478_v39, %s2235_s14  ;;  %482 = vrot.lane.b32.xlu1 %v2412_v11, %s2236_s15 }
  0xe9   : > { %484 = vrot.lane.b32.xlu0 %v2415_v15, %s2236_s15  ;;  %486 = vrot.lane.b32.xlu1 %v2422_v25, %s2236_s15 }
  0xed   : > { %488 = vrot.lane.b32.xlu0 %v2424_v28, %s2236_s15  ;;  %480 = vrot.lane.b32.xlu1 %v2478_v39, %s2236_s15 }
  0xf1   : > { %587 = vrot.lane.b32.xlu0 %v2412_v11, %s2237_s11  ;;  %589 = vrot.lane.b32.xlu1 %v2415_v15, %s2237_s11 }
  0xf5   : > { %591 = vrot.lane.b32.xlu0 %v2422_v25, %s2237_s11  ;;  %593 = vrot.lane.b32.xlu1 %v2424_v28, %s2237_s11 }
  0xf9   : > { %612 = vrot.lane.b32.xlu0 %v2430_v30, %s2237_s11  ;;  %570 = vrot.lane.b32.xlu1 %v2478_v39, %s2230_s24 }
  0xfd   : > { %555 = vrot.lane.b32.xlu0 %v2478_v39, %s2231_s26  ;;  %540 = vrot.lane.b32.xlu1 %v2478_v39, %s2232_s29 }
 0x101   : > { %525 = vrot.lane.b32.xlu0 %v2478_v39, %s2233_s10  ;;  %1150 = vrot.lane.b32.xlu1 %v2430_v30, %s2233_s10 }
 0x105   : > { %585 = vrot.lane.b32.xlu0 %v2478_v39, %s2237_s11  ;;  %631 = vrot.lane.b32.xlu1 %v2415_v15, %s2238_s16 }
 0x109   : > { %629 = vrot.lane.b32.xlu0 %v2412_v11, %s2238_s16  ;;  %635 = vrot.lane.b32.xlu1 %v2424_v28, %s2238_s16 }
 0x10d   : > { %633 = vrot.lane.b32.xlu0 %v2422_v25, %s2238_s16  ;;  %1147 = vrot.lane.b32.xlu1 %v2430_v30, %s2234_s13 }
 0x111   : > { %627 = vrot.lane.b32.xlu0 %v2478_v39, %s2238_s16  ;;  %1144 = vrot.lane.b32.xlu1 %v2430_v30, %s2235_s14 }
 0x115   : > { %1141 = vrot.lane.b32.xlu1 %v2430_v30, %s2236_s15 }
 0x11f   : > { %v2530_v18 = vpop.permute.xlu0 %572  ;;  %v575_v40 = vpop.permute.xlu1 %574 }
 0x120   : > { %697 = vrot.lane.b32.xlu1 %v2530_v18, %s2238_s16  ;;  %v2612_v12 = vsel %vm580_vm7, %v2530_v18, %v575_v40 }
 0x123   : > { %v577_v41 = vpop.permute.xlu0 %576  ;;  %v579_v42 = vpop.permute.xlu1 %578 }
 0x124   : > { %v2604_v10 = vsel %vm580_vm7, %v575_v40, %v577_v41  ;;  %v2623_v19 = vsel %vm580_vm7, %v577_v41, %v579_v42 }
 0x127   : > { %v2534_v43 = vpop.permute.xlu0 %609  ;;  %v2536_v44 = vpop.permute.xlu1 %557 }
 0x128   : > { %687 = vrot.lane.b32.xlu0 %v2536_v44, %s2238_s16  ;;  %v2616_v13 = vsel %vm580_vm7, %v579_v42, %v2534_v43 }
 0x12b   : > { %v560_v45 = vpop.permute.xlu0 %559  ;;  %v562_v46 = vpop.permute.xlu1 %561 }
 0x12c   : > { %v2627_v21 = vsel %vm565_vm8, %v2536_v44, %v560_v45  ;;  %v2634_v24 = vsel %vm565_vm8, %v560_v45, %v562_v46 }
 0x12f   : > { %v564_v47 = vpop.permute.xlu0 %563  ;;  %v2540_v48 = vpop.permute.xlu1 %606 }
 0x130   : > { %v2637_v26 = vsel %vm565_vm8, %v562_v46, %v564_v47  ;;  %v2645_v31 = vsel %vm565_vm8, %v564_v47, %v2540_v48 }
 0x133   : > { %v2542_v49 = vpop.permute.xlu0 %542  ;;  %v545_v50 = vpop.permute.xlu1 %544 }
 0x134   : > { %677 = vrot.lane.b32.xlu1 %v2542_v49, %s2238_s16  ;;  %v2657_v34 = vsel %vm550_vm9, %v2542_v49, %v545_v50 }
 0x137   : > { %v2546_v51 = vpop.permute.xlu0 %546  ;;  %v549_v52 = vpop.permute.xlu1 %548 }
 0x138   : > { %v2649_v32 = vsel %vm550_vm9, %v545_v50, %v2546_v51  ;;  %v2669_v0 = vsel %vm550_vm9, %v2546_v51, %v549_v52 }
 0x13b   : > { %v2548_v53 = vpop.permute.xlu0 %603  ;;  %v2550_v54 = vpop.permute.xlu1 %527 }
 0x13c   : > { %667 = vrot.lane.b32.xlu1 %v2550_v54, %s2238_s16  ;;  %v2661_v36 = vsel %vm550_vm9, %v549_v52, %v2548_v53 }
 0x13f   : > { %v2554_v55 = vpop.permute.xlu0 %529  ;;  %v2556_v56 = vpop.permute.xlu1 %531 }
 0x140   : > { %v2674_v35 = vsel %vm535_vm10, %v2554_v55, %v2556_v56  ;;  %v2683_v20 = vsel %vm535_vm10, %v2550_v54, %v2554_v55 }
 0x143   : > { %v2558_v57 = vpop.permute.xlu0 %533  ;;  %v2560_v58 = vpop.permute.xlu1 %512 }
 0x144   : > { %675 = vrot.lane.b32.xlu0 %v2558_v57, %s2238_s16  ;;  %v2699_v40 = vsel %vm535_vm10, %v2556_v56, %v2558_v57 }
 0x147   : > { %v2564_v59 = vpop.permute.xlu0 %514  ;;  %v2566_v60 = vpop.permute.xlu1 %516 }
 0x148   : > { %v2688_v38 = vsel %vm520_vm11, %v2560_v58, %v2564_v59 }
 0x149   : > { %3472 = vst [vmem:[#allocation16_spill] sm:$0xff] %v2688_v38 }
 0x14b   : > { %v2568_v61 = vpop.permute.xlu0 %518  ;;  %v2570_v62 = vpop.permute.xlu1 %510 }
 0x14c   : > { %3470 = vst [vmem:[#allocation14_spill] sm:$0xff] %v2568_v61  ;;  %665 = vrot.lane.b32.xlu1 %v2568_v61, %s2238_s16  ;;  %v2704_v41 = vsel %vm520_vm11, %v2566_v60, %v2568_v61  ;;  %v2718_v45 = vsel %vm520_vm11, %v2570_v62, %v2560_v58 }
 0x14f   : > { %v2574_v63 = vpop.permute.xlu0 %497  ;;  %v2576_v1 = vpop.permute.xlu1 %499 }
 0x153   : > { %v2578_v2 = vpop.permute.xlu0 %501  ;;  %v2580_v4 = vpop.permute.xlu1 %503 }
 0x154   : > { %3471 = vst [vmem:[#allocation15_spill] sm:$0xff] %v2580_v4  ;;  %655 = vrot.lane.b32.xlu0 %v2580_v4, %s2238_s16  ;;  %v2732_v50 = vsel %vm505_vm12, %v2576_v1, %v2578_v2 }
 0x157   : > { %v2584_v5 = vpop.permute.xlu0 %495  ;;  %v483_v16 = vpop.permute.xlu1 %482 }
 0x158   : > { %v2754_v58 = vsel %vm505_vm12, %v2584_v5, %v2574_v63 }
 0x15b   : > { %v2586_v6 = vpop.permute.xlu0 %484  ;;  %v487_v29 = vpop.permute.xlu1 %486 }
 0x15c   : > { %v2745_v55 = vsel %vm490_vm13, %v483_v16, %v2586_v6 }
 0x15d   : > { %3473 = vst [vmem:[#allocation17_spill] sm:$0xff] %v2745_v55 }
 0x15f   : > { %v2588_v8 = vpop.permute.xlu0 %488  ;;  %v481_v33 = vpop.permute.xlu1 %480 }
 0x160   : > { %645 = vrot.lane.b32.xlu1 %v2588_v8, %s2238_s16 }
 0x163   : > { %v2592_v9 = vpop.permute.xlu0 %587  ;;  %v590_v37 = vpop.permute.xlu1 %589 }
 0x164   : > { %967 = vrot.lane.b32.xlu1 %v579_v42, %s2239_s12  ;;  %707 = vrot.lane.b32.xlu0 %v2592_v9, %s2238_s16  ;;  %v2713_v42 = vsel %vm520_vm11, %v2564_v59, %v2566_v60  ;;  %v2758_v59 = vsel %vm490_vm13, %v487_v29, %v2588_v8  ;;  %v2786_v3 = vsel %vm595_vm14, %v2592_v9, %v590_v37 }
 0x165   : > { %3474 = vst [vmem:[#allocation18_spill] sm:$0xff] %v2758_v59 }
 0x167   : > { %v2694_v23 = vpop.permute.xlu1 %593  ;;  %v592_v56 = vpop.permute.xlu0 %591 }
 0x168   : > { %957 = vrot.lane.b32.xlu1 %v564_v47, %s2239_s12  ;;  %947 = vrot.lane.b32.xlu0 %v549_v52, %s2239_s12  ;;  %v2727_v47 = vsel %vm505_vm12, %v2574_v63, %v2576_v1  ;;  %v2741_v52 = vsel %vm505_vm12, %v2578_v2, %v2580_v4  ;;  %v2770_v1 = vsel %vm490_vm13, %v2586_v6, %v487_v29  ;;  %v2194_v6 = vld [vmem:[%s3441_s2 + $0x14] ss:$8 sps:$4 sm:$0xff]  }
 0x169   : > { %v2773_v63 = vsel %vm490_vm13, %v481_v33, %v483_v16  ;;  %v2782_v5 = vsel %vm595_vm14, %v590_v37, %v592_v56  ;;  %1972 = vmatprep.mubr.msk.bf16.mxu1 %vm790_vm15, %v2194_v6  ;;  %1971 = vmatprep.mubr.msk.bf16.mxu0 %vm790_vm15, %v2194_v6  ;;  %v2804_v33 = vsel %vm595_vm14, %v592_v56, %v2694_v23 }
 0x16b   : > { %v571_v46 = vpop.permute.xlu1 %570  ;;  %v2766_v62 = vpop.permute.xlu0 %612 }
 0x16c   : > { %937 = vrot.lane.b32.xlu1 %v2558_v57, %s2239_s12  ;;  %927 = vrot.lane.b32.xlu0 %v2568_v61, %s2239_s12  ;;  %3475 = vst [vmem:[#allocation19_spill] sm:$0xff] %v2766_v62  ;;  %v2800_v29 = vsel %vm595_vm14, %v2694_v23, %v2766_v62  ;;  %v581_v56 = vsel %vm580_vm7, %v571_v46, %v2530_v18 }
 0x16d   : > { %3476 = vst [vmem:[#allocation20_spill] sm:$0xff] %v2800_v29 }
 0x16f   : > { %v541_v51 = vpop.permute.xlu1 %540  ;;  %v556_v16 = vpop.permute.xlu0 %555 }
 0x170   : > { %917 = vrot.lane.b32.xlu1 %v2580_v4, %s2239_s12  ;;  %701 = vrot.lane.b32.xlu0 %v2604_v10, %s2238_s16  ;;  %v551_v18 = vsel %vm550_vm9, %v541_v51, %v2542_v49 }
 0x173   : > { %v2760_v60 = vpop.permute.xlu1 %1150  ;;  %v526_v17 = vpop.permute.xlu0 %525 }
 0x174   : > { %699 = vrot.lane.b32.xlu1 %v2612_v12, %s2238_s16  ;;  %705 = vrot.lane.b32.xlu0 %v2616_v13, %s2238_s16 }
 0x177   : > { %v2779_v2 = vpop.permute.xlu1 %631  ;;  %v2818_v22 = vpop.permute.xlu0 %585 }
 0x178   : > { %703 = vrot.lane.b32.xlu1 %v2623_v19, %s2238_s16  ;;  %689 = vrot.lane.b32.xlu0 %v2627_v21, %s2238_s16 }
 0x17b   : > { %v2806_v37 = vpop.permute.xlu1 %635  ;;  %v2831_v7 = vpop.permute.xlu0 %629 }
 0x17c   : > { %691 = vrot.lane.b32.xlu1 %v2634_v24, %s2238_s16  ;;  %693 = vrot.lane.b32.xlu0 %v2637_v26, %s2238_s16 }
 0x17f   : > { %v2816_v6 = vpop.permute.xlu1 %1147  ;;  %v2841_v46 = vpop.permute.xlu0 %633 }
 0x180   : > { %695 = vrot.lane.b32.xlu1 %v2645_v31, %s2238_s16  ;;  %681 = vrot.lane.b32.xlu0 %v2649_v32, %s2238_s16 }
 0x183   : > { %v2826_v27 = vpop.permute.xlu1 %1144  ;;  %v2851_v30 = vpop.permute.xlu0 %627 }
 0x184   : > { %679 = vrot.lane.b32.xlu1 %v2657_v34, %s2238_s16  ;;  %685 = vrot.lane.b32.xlu0 %v2661_v36, %s2238_s16 }
 0x187   : > { %v2837_v14 = vpop.permute.xlu1 %1141 }
 0x188   : > { %683 = vrot.lane.b32.xlu1 %v2669_v0, %s2238_s16  ;;  %671 = vrot.lane.b32.xlu0 %v2674_v35, %s2238_s16  ;;  %3477 = vst [vmem:[#allocation21_spill] sm:$0xff] %v2837_v14  ;;  %v536_v14 = vsel %vm535_vm10, %v526_v17, %v2550_v54 }
 0x18c   : > { %669 = vrot.lane.b32.xlu1 %v2683_v20, %s2238_s16  ;;  %659 = vrot.lane.b32.xlu0 %v2688_v38, %s2238_s16 }
 0x190   : > { %673 = vrot.lane.b32.xlu1 %v2699_v40, %s2238_s16  ;;  %663 = vrot.lane.b32.xlu0 %v2704_v41, %s2238_s16 }
 0x194   : > { %661 = vrot.lane.b32.xlu1 %v2713_v42, %s2238_s16  ;;  %657 = vrot.lane.b32.xlu0 %v2718_v45, %s2238_s16 }
 0x198   : > { %649 = vrot.lane.b32.xlu1 %v2727_v47, %s2238_s16  ;;  %651 = vrot.lane.b32.xlu0 %v2732_v50, %s2238_s16 }
 0x19a   : > { %v688_v49 = vpop.permute.xlu0 %687 }
 0x19c   : > { %653 = vrot.lane.b32.xlu1 %v2741_v52, %s2238_s16  ;;  %639 = vrot.lane.b32.xlu0 %v2745_v55, %s2238_s16 }
 0x1a0   : > { %647 = vrot.lane.b32.xlu1 %v2754_v58, %s2238_s16  ;;  %643 = vrot.lane.b32.xlu0 %v2758_v59, %s2238_s16 }
 0x1a4   : > { %641 = vrot.lane.b32.xlu1 %v2770_v1, %s2238_s16  ;;  %637 = vrot.lane.b32.xlu0 %v2773_v63, %s2238_s16 }
 0x1a8   : > { %711 = vrot.lane.b32.xlu1 %v2782_v5, %s2238_s16  ;;  %709 = vrot.lane.b32.xlu0 %v2786_v3, %s2238_s16 }
 0x1ac   : > { %715 = vrot.lane.b32.xlu1 %v2800_v29, %s2238_s16  ;;  %713 = vrot.lane.b32.xlu0 %v2804_v33, %s2238_s16  ;;  %v566_v29 = vsel %vm565_vm8, %v556_v16, %v2536_v44  ;;  %vm1614_vm8 = vcmask 7168  }
 0x1b0   : > { %963 = vrot.lane.b32.xlu1 %v2604_v10, %s2239_s12  ;;  %961 = vrot.lane.b32.xlu0 %v2612_v12, %s2239_s12 }
 0x1b4   : > { %953 = vrot.lane.b32.xlu1 %v2634_v24, %s2239_s12  ;;  %965 = vrot.lane.b32.xlu0 %v2623_v19, %s2239_s12 }
 0x1b6   : > { %v2865_v44 = vpop.permute.xlu0 %675 }
 0x1b8   : > { %941 = vrot.lane.b32.xlu1 %v2657_v34, %s2239_s12  ;;  %959 = vrot.lane.b32.xlu0 %v581_v56, %s2239_s12  ;;  %v698_v56 = vpop.permute.xlu1 %697 }
 0x1bc   : > { %945 = vrot.lane.b32.xlu1 %v2669_v0, %s2239_s12  ;;  %951 = vrot.lane.b32.xlu0 %v2627_v21, %s2239_s12  ;;  %v2853_v62 = vpop.permute.xlu1 %677 }
 0x1c0   : > { %955 = vrot.lane.b32.xlu0 %v2637_v26, %s2239_s12  ;;  %939 = vrot.lane.b32.xlu1 %v551_v18, %s2239_s12  ;;  %v2859_v51 = vpop.permute.xlu1 %667 }
 0x1c4   : > { %949 = vrot.lane.b32.xlu0 %v566_v29, %s2239_s12  ;;  %933 = vrot.lane.b32.xlu1 %v2674_v35, %s2239_s12  ;;  %v2867_v16 = vpop.permute.xlu1 %665 }
 0x1c6   : > { %v2873_v29 = vpop.permute.xlu0 %655 }
 0x1c8   : > { %943 = vrot.lane.b32.xlu0 %v2649_v32, %s2239_s12  ;;  %921 = vrot.lane.b32.xlu1 %v2688_v38, %s2239_s12 }
 0x1cc   : > { %931 = vrot.lane.b32.xlu0 %v2683_v20, %s2239_s12  ;;  %925 = vrot.lane.b32.xlu1 %v2704_v41, %s2239_s12 }
 0x1d0   : > { %935 = vrot.lane.b32.xlu0 %v2699_v40, %s2239_s12  ;;  %919 = vrot.lane.b32.xlu1 %v2718_v45, %s2239_s12 }
 0x1d2   : > { %v2875_v18 = vpop.permute.xlu1 %645 }
 0x1d4   : > { %929 = vrot.lane.b32.xlu0 %v536_v14, %s2239_s12  ;;  %913 = vrot.lane.b32.xlu1 %v2732_v50, %s2239_s12 }
 0x1d6   : > { %v2882_v38 = vpop.permute.xlu0 %707  ;;  %v2884_v61 = vpop.permute.xlu1 %967 }
 0x1d8   : > { %923 = vrot.lane.b32.xlu0 %v2713_v42, %s2239_s12  ;;  %901 = vrot.lane.b32.xlu1 %v2745_v55, %s2239_s12 }
 0x1da   : > { %v2890_v45 = vpop.permute.xlu0 %947  ;;  %v2892_v4 = vpop.permute.xlu1 %957 }
 0x1db   : > { %3478 = vst [vmem:[#allocation22_spill] sm:$0xff] %v2890_v45 }
 0x1dc   : > { %911 = vrot.lane.b32.xlu0 %v2727_v47, %s2239_s12  ;;  %905 = vrot.lane.b32.xlu1 %v2758_v59, %s2239_s12 }
 0x1de   : > { %v2898_v14 = vpop.permute.xlu0 %927  ;;  %v2900_v17 = vpop.permute.xlu1 %937 }
 0x1df   : > { %3479 = vst [vmem:[#allocation23_spill] sm:$0xff] %v2898_v14  ;;  %3480 = vst [vmem:[#allocation24_spill] sm:$0xff] %v2900_v17 }
 0x1e0   : > { %915 = vrot.lane.b32.xlu0 %v2741_v52, %s2239_s12  ;;  %899 = vrot.lane.b32.xlu1 %v2773_v63, %s2239_s12 }
 0x1e2   : > { %v702_v54 = vpop.permute.xlu0 %701  ;;  %v2906_v55 = vpop.permute.xlu1 %917 }
 0x1e3   : > { %3481 = vst [vmem:[#allocation25_spill] sm:$0xff] %v2906_v55 }
 0x1e4   : > { %909 = vrot.lane.b32.xlu0 %v2754_v58, %s2239_s12  ;;  %893 = vrot.lane.b32.xlu1 %v2415_v15, %s2239_s12 }
 0x1e6   : > { %v706_v45 = vpop.permute.xlu0 %705  ;;  %v700_v59 = vpop.permute.xlu1 %699 }
 0x1e7   : > { %v747_v14 = vsel %vm717_vm0, %v700_v59, %v702_v54  ;;  %v746_v17 = vsel %vm717_vm0, %v698_v56, %v700_v59 }
 0x1e8   : > { %903 = vrot.lane.b32.xlu0 %v2770_v1, %s2239_s12  ;;  %897 = vrot.lane.b32.xlu1 %v2424_v28, %s2239_s12 }
 0x1e9   : > { %794 = vmatprep.subr.bf16.mxu0 %v747_v14 }
 0x1ea   : > { %795 = vmatpush1.bf16.msra.mxu0 %v746_v17  ;;  %v690_v63 = vpop.permute.xlu0 %689  ;;  %v704_v58 = vpop.permute.xlu1 %703 }
 0x1eb   : > { %v749_v55 = vsel %vm717_vm0, %v704_v58, %v706_v45  ;;  %v748_v15 = vsel %vm717_vm0, %v702_v54, %v704_v58  ;;  %v742_v45 = vsel %vm717_vm0, %v688_v49, %v690_v63 }
 0x1ec   : > { %907 = vrot.lane.b32.xlu0 %v2588_v8, %s2239_s12  ;;  %971 = vrot.lane.b32.xlu1 %v2786_v3, %s2239_s12 }
 0x1ed   : > { %837 = vmatprep.subr.bf16.mxu1 %v749_v55 }
 0x1ee   : > { %838 = vmatpush1.bf16.msra.mxu1 %v748_v15  ;;  %v694_v59 = vpop.permute.xlu0 %693  ;;  %v692_v56 = vpop.permute.xlu1 %691  ;;  %v596_v15 = vsel %vm595_vm14, %v2818_v22, %v2592_v9 }
 0x1ef   : > { %v743_v28 = vsel %vm717_vm0, %v690_v63, %v692_v56  ;;  %v744_v54 = vsel %vm717_vm0, %v692_v56, %v694_v59 }
 0x1f0   : > { %891 = vrot.lane.b32.xlu0 %v2412_v11, %s2239_s12  ;;  %975 = vrot.lane.b32.xlu1 %v2804_v33, %s2239_s12 }
 0x1f1   : > { %796 = vmatprep.subr.bf16.mxu0 %v743_v28 }
 0x1f2   : > { %797 = vmatpush1.bf16.msra.mxu0 %v742_v45  ;;  %v682_v14 = vpop.permute.xlu0 %681  ;;  %v696_v17 = vpop.permute.xlu1 %695 }
 0x1f3   : > { %v745_v55 = vsel %vm717_vm0, %v694_v59, %v696_v17 }
 0x1f4   : > { %895 = vrot.lane.b32.xlu0 %v2422_v25, %s2239_s12  ;;  %969 = vrot.lane.b32.xlu1 %v596_v15, %s2239_s12 }
 0x1f5   : > { %839 = vmatprep.subr.bf16.mxu1 %v745_v55 }
 0x1f6   : > { %840 = vmatpush1.bf16.msra.mxu1 %v744_v54  ;;  %v686_v28 = vpop.permute.xlu0 %685  ;;  %v680_v49 = vpop.permute.xlu1 %679 }
 0x1f7   : > { %v739_v63 = vsel %vm717_vm0, %v680_v49, %v682_v14  ;;  %v738_v58 = vsel %vm717_vm0, %v2853_v62, %v680_v49 }
 0x1f8   : > { %889 = vrot.lane.b32.xlu0 %v2478_v39, %s2239_s12  ;;  %1239 = vrot.lane.b32.xlu1 %v2623_v19, %s2240_s19 }
 0x1f9   : > { %798 = vmatprep.subr.bf16.mxu0 %v739_v63 }
 0x1fa   : > { %799 = vmatpush1.bf16.msra.mxu0 %v738_v58  ;;  %v672_v22 = vpop.permute.xlu0 %671  ;;  %v684_v9 = vpop.permute.xlu1 %683 }
 0x1fb   : > { %v741_v59 = vsel %vm717_vm0, %v684_v9, %v686_v28  ;;  %v740_v56 = vsel %vm717_vm0, %v682_v14, %v684_v9 }
 0x1fc   : > { %973 = vrot.lane.b32.xlu0 %v2782_v5, %s2239_s12  ;;  %1243 = vrot.lane.b32.xlu1 %v2534_v43, %s2240_s19 }
 0x1fd   : > { %841 = vmatprep.subr.bf16.mxu1 %v741_v59 }
 0x1fe   : > { %842 = vmatpush1.bf16.msra.mxu1 %v740_v56  ;;  %v660_v39 = vpop.permute.xlu0 %659  ;;  %v670_v62 = vpop.permute.xlu1 %669 }
 0x1ff   : > { %v735_v19 = vsel %vm717_vm0, %v670_v62, %v672_v22  ;;  %v734_v45 = vsel %vm717_vm0, %v2859_v51, %v670_v62 }
 0x200   : > { %977 = vrot.lane.b32.xlu0 %v2694_v23, %s2239_s12  ;;  %1227 = vrot.lane.b32.xlu1 %v2634_v24, %s2240_s19 }
 0x201   : > { %800 = vmatprep.subr.bf16.mxu0 %v735_v19 }
 0x202   : > { %801 = vmatpush1.bf16.msra.mxu0 %v734_v45  ;;  %v664_v14 = vpop.permute.xlu0 %663  ;;  %v674_v17 = vpop.permute.xlu1 %673 }
 0x203   : > { %v737_v43 = vsel %vm717_vm0, %v674_v17, %v2865_v44  ;;  %v736_v15 = vsel %vm717_vm0, %v672_v22, %v674_v17  ;;  %v733_v24 = vsel %vm717_vm0, %v664_v14, %v2867_v16 }
 0x204   : > { %1237 = vrot.lane.b32.xlu0 %v2604_v10, %s2240_s19  ;;  %1231 = vrot.lane.b32.xlu1 %v2645_v31, %s2240_s19 }
 0x205   : > { %843 = vmatprep.subr.bf16.mxu1 %v737_v43 }
 0x206   : > { %844 = vmatpush1.bf16.msra.mxu1 %v736_v15  ;;  %v658_v23 = vpop.permute.xlu0 %657  ;;  %v662_v51 = vpop.permute.xlu1 %661  ;;  %v3482_v15 = vld [vmem:[#allocation15_spill] sm:$0xff] }
 0x207   : > { %845 = vmatprep.subr.bf16.mxu1 %v733_v24  ;;  %v731_v55 = vsel %vm717_vm0, %v660_v39, %v662_v51  ;;  %v730_v44 = vsel %vm717_vm0, %v658_v23, %v660_v39  ;;  %v732_v54 = vsel %vm717_vm0, %v662_v51, %v664_v14  ;;  %v1146_v23 = vsel %vm505_vm12, %v3482_v15, %v2826_v27 }
 0x208   : > { %1241 = vrot.lane.b32.xlu0 %v2616_v13, %s2240_s19  ;;  %1225 = vrot.lane.b32.xlu1 %v2627_v21, %s2240_s19 }
 0x209   : > { %802 = vmatprep.subr.bf16.mxu0 %v731_v55 }
 0x20a   : > { %803 = vmatpush1.bf16.msra.mxu0 %v730_v44  ;;  %846 = vmatpush1.bf16.msra.mxu1 %v732_v54  ;;  %v652_v10 = vpop.permute.xlu0 %651  ;;  %v650_v31 = vpop.permute.xlu1 %649 }
 0x20b   : > { %v727_v16 = vsel %vm717_vm0, %v650_v31, %v652_v10 }
 0x20c   : > { %1235 = vrot.lane.b32.xlu0 %v2612_v12, %s2240_s19  ;;  %1219 = vrot.lane.b32.xlu1 %v2669_v0, %s2240_s19 }
 0x20d   : > { %804 = vmatprep.subr.bf16.mxu0 %v727_v16  ;;  %v3486_v16 = vld [vmem:[#allocation22_spill] sm:$0xff] }
 0x20e   : > { %v640_v28 = vpop.permute.xlu0 %639  ;;  %v654_v49 = vpop.permute.xlu1 %653 }
 0x20f   : > { %v729_v13 = vsel %vm717_vm0, %v654_v49, %v2873_v29  ;;  %v728_v21 = vsel %vm717_vm0, %v652_v10, %v654_v49  ;;  %v3484_v10 = vld [vmem:[#allocation16_spill] sm:$0xff] }
 0x210   : > { %1229 = vrot.lane.b32.xlu0 %v2637_v26, %s2240_s19  ;;  %1223 = vrot.lane.b32.xlu1 %v2548_v53, %s2240_s19  ;;  %v1152_v53 = vsel %vm535_vm10, %v2558_v57, %v2760_v60 }
 0x211   : > { %847 = vmatprep.subr.bf16.mxu1 %v729_v13 }
 0x212   : > { %848 = vmatpush1.bf16.msra.mxu1 %v728_v21  ;;  %v644_v12 = vpop.permute.xlu0 %643  ;;  %v648_v63 = vpop.permute.xlu1 %647 }
 0x213   : > { %v726_v0 = vsel %vm717_vm0, %v648_v63, %v650_v31  ;;  %v725_v58 = vsel %vm717_vm0, %v644_v12, %v2875_v18 }
 0x214   : > { %1233 = vrot.lane.b32.xlu0 %v2540_v48, %s2240_s19  ;;  %1207 = vrot.lane.b32.xlu1 %v2674_v35, %s2240_s19  ;;  %v721_v48 = vsel %vm717_vm0, %v2841_v46, %v2806_v37  ;;  %v719_v35 = vsel %vm717_vm0, %v2831_v7, %v2779_v2  ;;  %v718_v37 = vsel %vm717_vm0, %v2851_v30, %v2831_v7  ;;  %v2192_v30 = vld [vmem:[%s3441_s2 + $0x10] ss:$8 sps:$4 sm:$0xff]  }
 0x215   : > { %805 = vmatpush1.bf16.msra.mxu0 %v726_v0  ;;  %849 = vmatprep.subr.bf16.mxu1 %v725_v58  ;;  %v3488_v0 = vld [vmem:[#allocation11_spill] sm:$0xff] }
 0x216   : > { %v638_v26 = vpop.permute.xlu0 %637  ;;  %v642_v29 = vpop.permute.xlu1 %641 }
 0x217   : > { %v723_v22 = vsel %vm717_vm0, %v640_v28, %v642_v29  ;;  %v724_v9 = vsel %vm717_vm0, %v642_v29, %v644_v12  ;;  %v722_v18 = vsel %vm717_vm0, %v638_v26, %v640_v28 }
 0x218   : > { %1217 = vrot.lane.b32.xlu0 %v2649_v32, %s2240_s19  ;;  %1211 = vrot.lane.b32.xlu1 %v1152_v53, %s2240_s19  ;;  %v720_v32 = vsel %vm717_vm0, %v2779_v2, %v2841_v46  ;;  %v3489_v53 = vld [vmem:[#allocation12_spill] sm:$0xff] }
 0x219   : > { %806 = vmatprep.subr.bf16.mxu0 %v723_v22  ;;  %850 = vmatpush1.bf16.msra.mxu1 %v724_v9 }
 0x21a   : > { %807 = vmatpush1.bf16.msra.mxu0 %v722_v18  ;;  %851 = vmatprep.subr.bf16.mxu1 %v721_v48  ;;  %v710_v57 = vpop.permute.xlu0 %709  ;;  %v712_v59 = vpop.permute.xlu1 %711  ;;  %v3490_v48 = vld [vmem:[#allocation24_spill] sm:$0xff] }
 0x21b   : > { %808 = vmatprep.subr.bf16.mxu0 %v719_v35  ;;  %v751_v39 = vsel %vm717_vm0, %v710_v57, %v712_v59  ;;  %v750_v7 = vsel %vm717_vm0, %v2882_v38, %v710_v57  ;;  %v3491_v35 = vld [vmem:[#allocation23_spill] sm:$0xff] }
 0x21c   : > { %1221 = vrot.lane.b32.xlu0 %v2661_v36, %s2240_s19  ;;  %1205 = vrot.lane.b32.xlu1 %v2683_v20, %s2240_s19 }
 0x21d   : > { %852 = vmatpush1.bf16.msra.mxu1 %v720_v32 }
 0x21e   : > { %809 = vmatpush1.bf16.msra.mxu0 %v718_v37  ;;  %v714_v56 = vpop.permute.xlu0 %713  ;;  %v716_v62 = vpop.permute.xlu1 %715 }
 0x21f   : > { %824 = vmatprep.subr.bf16.mxu0 %v751_v39  ;;  %v753_v36 = vsel %vm717_vm0, %v714_v56, %v716_v62  ;;  %v752_v19 = vsel %vm717_vm0, %v712_v59, %v714_v56 }
 0x220   : > { %1215 = vrot.lane.b32.xlu0 %v2657_v34, %s2240_s19  ;;  %1199 = vrot.lane.b32.xlu1 %v2704_v41, %s2240_s19  ;;  %v2195_v34 = vld [vmem:[%s3441_s2 + $0x4] ss:$8 sps:$4 sm:$0xff]  }
 0x221   : > { %867 = vmatprep.subr.bf16.mxu1 %v753_v36  ;;  %v3493_v36 = vld [vmem:[#allocation19_spill] sm:$0xff] }
 0x222   : > { %825 = vmatpush2.bf16.msra.mxu0 %v750_v7  ;;  %868 = vmatpush2.bf16.msra.mxu1 %v752_v19  ;;  %v962_v20 = vpop.permute.xlu0 %961  ;;  %v964_v2 = vpop.permute.xlu1 %963 }
 0x223   : > { %v1009_v46 = vsel %vm979_vm1, %v962_v20, %v964_v2 }
 0x224   : > { %1209 = vrot.lane.b32.xlu0 %v2699_v40, %s2240_s19  ;;  %1203 = vrot.lane.b32.xlu1 %v2816_v6, %s2240_s19 }
 0x225   : > { %1055 = vmatprep.subr.bf16.mxu0 %v1009_v46  ;;  %870 = vmatmul.mubr.bf16.vlgmr.msra.gmra.mxu1 %v2192_v30  ;;  %v3495_v46 = vld [vmem:[#allocation25_spill] sm:$0xff] }
 0x226   : > { %v966_v38 = vpop.permute.xlu0 %965  ;;  %v954_v41 = vpop.permute.xlu1 %953  ;;  %827 = vmatmul.mubr.bf16.vlgmr.msra.gmra.mxu0 %v2192_v30  ;;  %1976 = vmatprep.mubr.msk.bf16.mxu1 %vm790_vm15, %v2195_v34 }
 0x227   : > { %v1010_v45 = vsel %vm979_vm1, %v964_v2, %v966_v38  ;;  %v1011_v14 = vsel %vm979_vm1, %v966_v38, %v2884_v61  ;;  %1975 = vmatprep.mubr.msk.bf16.mxu0 %vm790_vm15, %v2195_v34 }
 0x228   : > { %1213 = vrot.lane.b32.xlu0 %v2760_v60, %s2240_s19  ;;  %1187 = vrot.lane.b32.xlu1 %v2732_v50, %s2240_s19  ;;  %v3483_v50 = vld [vmem:[#allocation14_spill] sm:$0xff] }
 0x229   : > { %1098 = vmatprep.subr.bf16.mxu1 %v1011_v14  ;;  %v1149_v24 = vsel %vm520_vm11, %v3483_v50, %v2816_v6  ;;  %v3485_v6 = vld [vmem:[#allocation18_spill] sm:$0xff] }
 0x22a   : > { %1099 = vmatpush1.bf16.msra.mxu1 %v1010_v45  ;;  %v960_v40 = vpop.permute.xlu0 %959  ;;  %v942_v17 = vpop.permute.xlu1 %941 }
 0x22b   : > { %v1008_v43 = vsel %vm979_vm1, %v960_v40, %v962_v20  ;;  %v3494_v20 = vld [vmem:[#allocation13_spill] sm:$0xff]  ;;  %v3496_v40 = vld [vmem:[#allocation20_spill] sm:$0xff] }
 0x22c   : > { %1197 = vrot.lane.b32.xlu0 %v2713_v42, %s2240_s19  ;;  %1191 = vrot.lane.b32.xlu1 %v1146_v23, %s2240_s19 }
 0x22d   : > { %1056 = vmatpush1.bf16.msra.mxu0 %v1008_v43 }
 0x22e   : > { %v952_v61 = vpop.permute.xlu0 %951  ;;  %v946_v60 = vpop.permute.xlu1 %945 }
 0x22f   : > { %v1005_v51 = vsel %vm979_vm1, %v952_v61, %v954_v41 }
 0x230   : > { %1201 = vrot.lane.b32.xlu0 %v1149_v24, %s2240_s19  ;;  %1185 = vrot.lane.b32.xlu1 %v2727_v47, %s2240_s19  ;;  %v1003_v47 = vsel %vm979_vm1, %v946_v60, %v3486_v16 }
 0x231   : > { %1057 = vmatprep.subr.bf16.mxu0 %v1005_v51 }
 0x232   : > { %v956_v55 = vpop.permute.xlu0 %955  ;;  %v940_v44 = vpop.permute.xlu1 %939 }
 0x233   : > { %v1006_v42 = vsel %vm979_vm1, %v954_v41, %v956_v55  ;;  %v1007_v54 = vsel %vm979_vm1, %v956_v55, %v2892_v4  ;;  %v3487_v4 = vld [vmem:[#allocation21_spill] sm:$0xff]  ;;  %v1000_v58 = vsel %vm979_vm1, %v940_v44, %v942_v17 }
 0x234   : > { %1195 = vrot.lane.b32.xlu0 %v3484_v10, %s2240_s19  ;;  %1179 = vrot.lane.b32.xlu1 %v3485_v6, %s2240_s19  ;;  %v1143_v18 = vsel %vm490_vm13, %v2588_v8, %v3487_v4  ;;  %v3492_v8 = vld [vmem:[#allocation17_spill] sm:$0xff] }
 0x235   : > { %1100 = vmatprep.subr.bf16.mxu1 %v1007_v54 }
 0x236   : > { %1101 = vmatpush1.bf16.msra.mxu1 %v1006_v42  ;;  %v950_v31 = vpop.permute.xlu0 %949  ;;  %v934_v28 = vpop.permute.xlu1 %933 }
 0x237   : > { %v1004_v49 = vsel %vm979_vm1, %v950_v31, %v952_v61  ;;  %1102 = vmatprep.subr.bf16.mxu1 %v1003_v47 }
 0x238   : > { %1189 = vrot.lane.b32.xlu0 %v2741_v52, %s2240_s19  ;;  %1183 = vrot.lane.b32.xlu1 %v3487_v4, %s2240_s19 }
 0x239   : > { %1058 = vmatpush1.bf16.msra.mxu0 %v1004_v49 }
 0x23a   : > { %v944_v13 = vpop.permute.xlu0 %943  ;;  %v922_v21 = vpop.permute.xlu1 %921 }
 0x23b   : > { %v1002_v12 = vsel %vm979_vm1, %v944_v13, %v946_v60  ;;  %v1001_v63 = vsel %vm979_vm1, %v942_v17, %v944_v13 }
 0x23c   : > { %1193 = vrot.lane.b32.xlu0 %v2826_v27, %s2240_s19  ;;  %1167 = vrot.lane.b32.xlu1 %v3488_v0, %s2240_s19 }
 0x23d   : > { %1059 = vmatprep.subr.bf16.mxu0 %v1001_v63  ;;  %1103 = vmatpush1.bf16.msra.mxu1 %v1002_v12  ;;  %v2198_v63 = vld [vmem:[%s3441_s2 + $0x24] ss:$8 sps:$4 sm:$0xff]  }
 0x23e   : > { %1060 = vmatpush1.bf16.msra.mxu0 %v1000_v58  ;;  %v932_v52 = vpop.permute.xlu0 %931  ;;  %v926_v26 = vpop.permute.xlu1 %925 }
 0x23f   : > { %v997_v29 = vsel %vm979_vm1, %v932_v52, %v934_v28  ;;  %v995_v59 = vsel %vm979_vm1, %v926_v26, %v3491_v35 }
 0x240   : > { %1177 = vrot.lane.b32.xlu0 %v2770_v1, %s2240_s19  ;;  %1171 = vrot.lane.b32.xlu1 %v3489_v53, %s2240_s19 }
 0x241   : > { %1061 = vmatprep.subr.bf16.mxu0 %v997_v29 }
 0x242   : > { %v936_v27 = vpop.permute.xlu0 %935  ;;  %v920_v22 = vpop.permute.xlu1 %919 }
 0x243   : > { %v998_v9 = vsel %vm979_vm1, %v934_v28, %v936_v27  ;;  %v999_v57 = vsel %vm979_vm1, %v936_v27, %v3490_v48  ;;  %v992_v19 = vsel %vm979_vm1, %v920_v22, %v922_v21 }
 0x244   : > { %1181 = vrot.lane.b32.xlu0 %v1143_v18, %s2240_s19  ;;  %1165 = vrot.lane.b32.xlu1 %v2412_v11, %s2240_s19 }
 0x245   : > { %1104 = vmatprep.subr.bf16.mxu1 %v999_v57 }
 0x246   : > { %1105 = vmatpush1.bf16.msra.mxu1 %v998_v9  ;;  %v930_v1 = vpop.permute.xlu0 %929  ;;  %v914_v32 = vpop.permute.xlu1 %913 }
 0x247   : > { %v996_v37 = vsel %vm979_vm1, %v930_v1, %v932_v52  ;;  %1106 = vmatprep.subr.bf16.mxu1 %v995_v59 }
 0x248   : > { %1175 = vrot.lane.b32.xlu0 %v3492_v8, %s2240_s19  ;;  %1249 = vrot.lane.b32.xlu1 %v2804_v33, %s2240_s19 }
 0x249   : > { %1062 = vmatpush1.bf16.msra.mxu0 %v996_v37 }
 0x24a   : > { %v924_v56 = vpop.permute.xlu0 %923  ;;  %v902_v39 = vpop.permute.xlu1 %901 }
 0x24b   : > { %v994_v11 = vsel %vm979_vm1, %v924_v56, %v926_v26  ;;  %v993_v62 = vsel %vm979_vm1, %v922_v21, %v924_v56  ;;  %v2197_v21 = vld [vmem:[%s3441_s2] ss:$8 sps:$4 sm:$0xff]  }
 0x24c   : > { %1169 = vrot.lane.b32.xlu0 %v2422_v25, %s2240_s19  ;;  %1253 = vrot.lane.b32.xlu1 %v3493_v36, %s2240_s19 }
 0x24d   : > { %1063 = vmatprep.subr.bf16.mxu0 %v993_v62  ;;  %1107 = vmatpush1.bf16.msra.mxu1 %v994_v11 }
 0x24e   : > { %1064 = vmatpush1.bf16.msra.mxu0 %v992_v19  ;;  %v912_v7 = vpop.permute.xlu0 %911  ;;  %v906_v33 = vpop.permute.xlu1 %905 }
 0x24f   : > { %v989_v30 = vsel %vm979_vm1, %v912_v7, %v914_v32 }
 0x250   : > { %1173 = vrot.lane.b32.xlu0 %v3494_v20, %s2240_s19  ;;  %1065 = vmatprep.subr.bf16.mxu0 %v989_v30 }
 0x252   : > { %v916_v2 = vpop.permute.xlu0 %915  ;;  %v900_v34 = vpop.permute.xlu1 %899 }
 0x253   : > { %v990_v25 = vsel %vm979_vm1, %v914_v32, %v916_v2  ;;  %v991_v38 = vsel %vm979_vm1, %v916_v2, %v3495_v46  ;;  %v984_v23 = vsel %vm979_vm1, %v900_v34, %v902_v39 }
 0x254   : > { %1247 = vrot.lane.b32.xlu0 %v2782_v5, %s2240_s19  ;;  %1108 = vmatprep.subr.bf16.mxu1 %v991_v38 }
 0x255   : > { %1109 = vmatpush1.bf16.msra.mxu1 %v990_v25 }
 0x256   : > { %v910_v41 = vpop.permute.xlu0 %909  ;;  %v894_v45 = vpop.permute.xlu1 %893 }
 0x257   : > { %v988_v14 = vsel %vm979_vm1, %v910_v41, %v912_v7 }
 0x258   : > { %1251 = vrot.lane.b32.xlu0 %v3496_v40, %s2240_s19  ;;  %1066 = vmatpush1.bf16.msra.mxu0 %v988_v14 }
 0x25a   : > { %v904_v17 = vpop.permute.xlu0 %903  ;;  %v898_v43 = vpop.permute.xlu1 %897 }
 0x25b   : > { %v985_v15 = vsel %vm979_vm1, %v902_v39, %v904_v17  ;;  %v986_v50 = vsel %vm979_vm1, %v904_v17, %v906_v33 }
 0x25c   : > { %1245 = vrot.lane.b32.xlu0 %v2786_v3, %s2240_s19  ;;  %1067 = vmatprep.subr.bf16.mxu0 %v985_v15 }
 0x25d   : > { %1068 = vmatpush1.bf16.msra.mxu0 %v984_v23 }
 0x25e   : > { %v908_v5 = vpop.permute.xlu0 %907  ;;  %v972_v61 = vpop.permute.xlu1 %971 }
 0x25f   : > { %v987_v60 = vsel %vm979_vm1, %v906_v33, %v908_v5 }
 0x260   : > { %1110 = vmatprep.subr.bf16.mxu1 %v987_v60 }
 0x261   : > { %1111 = vmatpush1.bf16.msra.mxu1 %v986_v50 }
 0x262   : > { %v892_v24 = vpop.permute.xlu0 %891  ;;  %v976_v51 = vpop.permute.xlu1 %975 }
 0x263   : > { %v981_v55 = vsel %vm979_vm1, %v892_v24, %v894_v45 }
 0x264   : > { %1069 = vmatprep.subr.bf16.mxu0 %v981_v55 }
 0x266   : > { %v896_v44 = vpop.permute.xlu0 %895  ;;  %v970_v42 = vpop.permute.xlu1 %969 }
 0x267   : > { %v982_v54 = vsel %vm979_vm1, %v894_v45, %v896_v44  ;;  %v983_v3 = vsel %vm979_vm1, %v896_v44, %v898_v43  ;;  %v1012_v49 = vsel %vm979_vm1, %v970_v42, %v972_v61 }
 0x268   : > { %1112 = vmatprep.subr.bf16.mxu1 %v983_v3 }
 0x269   : > { %1113 = vmatpush1.bf16.msra.mxu1 %v982_v54 }
 0x26a   : > { %v890_v10 = vpop.permute.xlu0 %889  ;;  %v1240_v6 = vpop.permute.xlu1 %1239 }
 0x26b   : > { %v980_v31 = vsel %vm979_vm1, %v890_v10, %v892_v24 }
 0x26c   : > { %1070 = vmatpush1.bf16.msra.mxu0 %v980_v31 }
 0x26e   : > { %v974_v16 = vpop.permute.xlu0 %973  ;;  %v1244_v47 = vpop.permute.xlu1 %1243 }
 0x26f   : > { %v1013_v28 = vsel %vm979_vm1, %v972_v61, %v974_v16  ;;  %v1014_v0 = vsel %vm979_vm1, %v974_v16, %v976_v51 }
 0x270   : > { %1085 = vmatprep.subr.bf16.mxu0 %v1013_v28 }
 0x271   : > { %1086 = vmatpush2.bf16.msra.mxu0 %v1012_v49 }
 0x272   : > { %v978_v4 = vpop.permute.xlu0 %977  ;;  %v1228_v13 = vpop.permute.xlu1 %1227 }
 0x273   : > { %v1015_v12 = vsel %vm979_vm1, %v976_v51, %v978_v4 }
 0x274   : > { %1128 = vmatprep.subr.bf16.mxu1 %v1015_v12  ;;  %1088 = vmatmul.mubr.bf16.vlgmr.msra.gmra.mxu0 %v2197_v21 }
 0x275   : > { %1129 = vmatpush2.bf16.msra.mxu1 %v1014_v0  ;;  %1981 = vmatprep.mubr.msk.bf16.mxu0 %vm790_vm15, %v2198_v63 }
 0x276   : > { %v1238_v58 = vpop.permute.xlu0 %1237  ;;  %v1232_v52 = vpop.permute.xlu1 %1231 }
 0x277   : > { %v1285_v26 = vsel %vm1255_vm2, %v1238_v58, %v1240_v6 }
 0x278   : > { %1331 = vmatprep.subr.bf16.mxu0 %v1285_v26  ;;  %1131 = vmatmul.mubr.bf16.vlgmr.msra.gmra.mxu1 %v2197_v21 }
 0x279   : > { %1982 = vmatprep.mubr.msk.bf16.mxu1 %vm790_vm15, %v2198_v63 }
 0x27a   : > { %v1242_v29 = vpop.permute.xlu0 %1241  ;;  %v1226_v53 = vpop.permute.xlu1 %1225 }
 0x27b   : > { %v1286_v27 = vsel %vm1255_vm2, %v1240_v6, %v1242_v29  ;;  %v1287_v22 = vsel %vm1255_vm2, %v1242_v29, %v1244_v47  ;;  %v1280_v59 = vsel %vm1255_vm2, %v1226_v53, %v1228_v13 }
 0x27c   : > { %1374 = vmatprep.subr.bf16.mxu1 %v1287_v22 }
 0x27d   : > { %1375 = vmatpush1.bf16.msra.mxu1 %v1286_v27 }
 0x27e   : > { %v1236_v9 = vpop.permute.xlu0 %1235  ;;  %v1220_v18 = vpop.permute.xlu1 %1219 }
 0x27f   : > { %v1284_v48 = vsel %vm1255_vm2, %v1236_v9, %v1238_v58 }
 0x280   : > { %1332 = vmatpush1.bf16.msra.mxu0 %v1284_v48 }
 0x282   : > { %v1230_v57 = vpop.permute.xlu0 %1229  ;;  %v1224_v1 = vpop.permute.xlu1 %1223 }
 0x283   : > { %v1281_v35 = vsel %vm1255_vm2, %v1228_v13, %v1230_v57  ;;  %v1282_v56 = vsel %vm1255_vm2, %v1230_v57, %v1232_v52 }
 0x284   : > { %1333 = vmatprep.subr.bf16.mxu0 %v1281_v35  ;;  %v2200_v35 = vld [vmem:[%s3441_s2 + $0x20] ss:$8 sps:$4 sm:$0xff]  }
 0x285   : > { %1334 = vmatpush1.bf16.msra.mxu0 %v1280_v59 }
 0x286   : > { %v1234_v32 = vpop.permute.xlu0 %1233  ;;  %v1208_v37 = vpop.permute.xlu1 %1207 }
 0x287   : > { %v1283_v8 = vsel %vm1255_vm2, %v1232_v52, %v1234_v32  ;;  %v2241_v32 = vmov 1.0  }
 0x288   : > { %1376 = vmatprep.subr.bf16.mxu1 %v1283_v8 }
 0x289   : > { %1377 = vmatpush1.bf16.msra.mxu1 %v1282_v56 }
 0x28a   : > { %v1218_v39 = vpop.permute.xlu0 %1217  ;;  %v1212_v11 = vpop.permute.xlu1 %1211 }
 0x28b   : > { %v1277_v62 = vsel %vm1255_vm2, %v1218_v39, %v1220_v18 }
 0x28c   : > { %1335 = vmatprep.subr.bf16.mxu0 %v1277_v62 }
 0x28e   : > { %v1222_v36 = vpop.permute.xlu0 %1221  ;;  %v1206_v19 = vpop.permute.xlu1 %1205 }
 0x28f   : > { %v1278_v7 = vsel %vm1255_vm2, %v1220_v18, %v1222_v36  ;;  %v1279_v33 = vsel %vm1255_vm2, %v1222_v36, %v1224_v1  ;;  %v1272_v38 = vsel %vm1255_vm2, %v1206_v19, %v1208_v37 }
 0x290   : > { %1378 = vmatprep.subr.bf16.mxu1 %v1279_v33 }
 0x291   : > { %1379 = vmatpush1.bf16.msra.mxu1 %v1278_v7 }
 0x292   : > { %v1216_v30 = vpop.permute.xlu0 %1215  ;;  %v1200_v20 = vpop.permute.xlu1 %1199 }
 0x293   : > { %v1276_v2 = vsel %vm1255_vm2, %v1216_v30, %v1218_v39 }
 0x294   : > { %1336 = vmatpush1.bf16.msra.mxu0 %v1276_v2  ;;  %v1433_v2 = vld [vmem:[#allocation3 + $0x1] sm:$0xf] }
 0x295   : > { %vm1434_vm3 = vcmp.gt.f32.partialorder %v1433_v2, 0.0 }
 0x296   : > { %v1210_v34 = vpop.permute.xlu0 %1209  ;;  %v1204_v25 = vpop.permute.xlu1 %1203 }
 0x297   : > { %v1273_v46 = vsel %vm1255_vm2, %v1208_v37, %v1210_v34  ;;  %v1274_v40 = vsel %vm1255_vm2, %v1210_v34, %v1212_v11 }
 0x298   : > { %1337 = vmatprep.subr.bf16.mxu0 %v1273_v46  ;;  %v3497_v46 = vmov 0  }
 0x299   : > { %1338 = vmatpush1.bf16.msra.mxu0 %v1272_v38  ;;  %v1435_v38 = vsel %vm1434_vm3, 1, %v3497_v46 }
 0x29a   : > { %v1214_v41 = vpop.permute.xlu0 %1213  ;;  %v1188_v45 = vpop.permute.xlu1 %1187 }
 0x29b   : > { %v1275_v14 = vsel %vm1255_vm2, %v1212_v11, %v1214_v41 }
 0x29c   : > { %1380 = vmatprep.subr.bf16.mxu1 %v1275_v14  ;;  %v3498_v14 = vld [vmem:[#allocation10_spill] sm:$0xff] }
 0x29d   : > { %1381 = vmatpush1.bf16.msra.mxu1 %v1274_v40  ;;  %v3499_v40 = vsub.s32 3, %v3498_v14 }
 0x29e   : > { %v1198_v17 = vpop.permute.xlu0 %1197  ;;  %v1192_v43 = vpop.permute.xlu1 %1191 }
 0x29f   : > { %v1269_v15 = vsel %vm1255_vm2, %v1198_v17, %v1200_v20 }
 0x2a0   : > { %1339 = vmatprep.subr.bf16.mxu0 %v1269_v15 }
 0x2a2   : > { %v1202_v23 = vpop.permute.xlu0 %1201  ;;  %v1186_v5 = vpop.permute.xlu1 %1185 }
 0x2a3   : > { %v1270_v61 = vsel %vm1255_vm2, %v1200_v20, %v1202_v23  ;;  %v1271_v60 = vsel %vm1255_vm2, %v1202_v23, %v1204_v25  ;;  %v1264_v54 = vsel %vm1255_vm2, %v1186_v5, %v1188_v45 }
 0x2a4   : > { %1382 = vmatprep.subr.bf16.mxu1 %v1271_v60  ;;  %v3500_v60 = vsub.s32 2, %v3498_v14 }
 0x2a5   : > { %1383 = vmatpush1.bf16.msra.mxu1 %v1270_v61 }
 0x2a6   : > { %v1196_v50 = vpop.permute.xlu0 %1195  ;;  %v1180_v24 = vpop.permute.xlu1 %1179 }
 0x2a7   : > { %v1268_v51 = vsel %vm1255_vm2, %v1196_v50, %v1198_v17  ;;  %v3251_v17 = vrot.slane %v1435_v38, %v3499_v40  ;;  %v3257_v50 = vrot.slane %v1435_v38, %v3500_v60 }
 0x2a8   : > { %1340 = vmatpush1.bf16.msra.mxu0 %v1268_v51 }
 0x2a9   : > { %vm1455_vm4 = vcmp.eq.s32.totalorder %v3251_v17, 1  ;;  %vm1454_vm5 = vcmp.eq.s32.totalorder %v3257_v50, 1 }
 0x2aa   : > { %v1190_v55 = vpop.permute.xlu0 %1189  ;;  %v1184_v44 = vpop.permute.xlu1 %1183 }
 0x2ab   : > { %v1265_v42 = vsel %vm1255_vm2, %v1188_v45, %v1190_v55  ;;  %v1266_v6 = vsel %vm1255_vm2, %v1190_v55, %v1192_v43 }
 0x2ac   : > { %1341 = vmatprep.subr.bf16.mxu0 %v1265_v42 }
 0x2ad   : > { %1342 = vmatpush1.bf16.msra.mxu0 %v1264_v54 }
 0x2ae   : > { %v1194_v3 = vpop.permute.xlu0 %1193  ;;  %v1168_v31 = vpop.permute.xlu1 %1167 }
 0x2af   : > { %v1267_v10 = vsel %vm1255_vm2, %v1192_v43, %v1194_v3 }
 0x2b0   : > { %1384 = vmatprep.subr.bf16.mxu1 %v1267_v10 }
 0x2b1   : > { %1385 = vmatpush1.bf16.msra.mxu1 %v1266_v6 }
 0x2b2   : > { %v1178_v16 = vpop.permute.xlu0 %1177  ;;  %v1172_v49 = vpop.permute.xlu1 %1171 }
 0x2b3   : > { %v1261_v47 = vsel %vm1255_vm2, %v1178_v16, %v1180_v24 }
 0x2b4   : > { %1343 = vmatprep.subr.bf16.mxu0 %v1261_v47 }
 0x2b6   : > { %v1182_v28 = vpop.permute.xlu0 %1181  ;;  %v1166_v63 = vpop.permute.xlu1 %1165 }
 0x2b7   : > { %v1262_v4 = vsel %vm1255_vm2, %v1180_v24, %v1182_v28  ;;  %v1263_v13 = vsel %vm1255_vm2, %v1182_v28, %v1184_v44  ;;  %v1256_v52 = vsel %vm1255_vm2, %v1166_v63, %v1168_v31  ;;  %v3501_v24 = vsub.s32 1, %v3498_v14 }
 0x2b8   : > { %1386 = vmatprep.subr.bf16.mxu1 %v1263_v13 }
 0x2b9   : > { %1387 = vmatpush1.bf16.msra.mxu1 %v1262_v4  ;;  %v3261_v51 = vrot.slane %v1435_v38, %v3501_v24 }
 0x2ba   : > { %v1176_v21 = vpop.permute.xlu0 %1175  ;;  %v1250_v53 = vpop.permute.xlu1 %1249 }
 0x2bb   : > { %v1260_v12 = vsel %vm1255_vm2, %v1176_v21, %v1178_v16  ;;  %v3502_v16 = vsub.s32 0, %v3498_v14  ;;  %vm1453_vm6 = vcmp.eq.s32.totalorder %v3261_v51, 1 }
 0x2bc   : > { %1344 = vmatpush1.bf16.msra.mxu0 %v1260_v12 }
 0x2bd   : > { %v3270_v47 = vrot.slane %v1435_v38, %v3502_v16 }
 0x2be   : > { %v1170_v0 = vpop.permute.xlu0 %1169  ;;  %v1254_v18 = vpop.permute.xlu1 %1253 }
 0x2bf   : > { %v1257_v58 = vsel %vm1255_vm2, %v1168_v31, %v1170_v0  ;;  %v1258_v27 = vsel %vm1255_vm2, %v1170_v0, %v1172_v49  ;;  %vm1452_vm7 = vcmp.eq.s32.totalorder %v3270_v47, 1 }
 0x2c0   : > { %1345 = vmatprep.subr.bf16.mxu0 %v1257_v58 }
 0x2c1   : > { %1346 = vmatpush1.bf16.msra.mxu0 %v1256_v52 }
 0x2c2   : > { %v1174_v26 = vpop.permute.xlu0 %1173 }
 0x2c3   : > { %v1259_v29 = vsel %vm1255_vm2, %v1172_v49, %v1174_v26 }
 0x2c4   : > { %1388 = vmatprep.subr.bf16.mxu1 %v1259_v29 }
 0x2c5   : > { %1389 = vmatpush1.bf16.msra.mxu1 %v1258_v27 }
 0x2c6   : > { %v1248_v22 = vpop.permute.xlu0 %1247 }
 0x2c7   : > { %v1289_v9 = vsel %vm1255_vm2, %v1248_v22, %v1250_v53 }
 0x2c8   : > { %1361 = vmatprep.subr.bf16.mxu0 %v1289_v9 }
 0x2ca   : > { %v1252_v48 = vpop.permute.xlu0 %1251 }
 0x2cb   : > { %v1290_v57 = vsel %vm1255_vm2, %v1250_v53, %v1252_v48  ;;  %v1291_v1 = vsel %vm1255_vm2, %v1252_v48, %v1254_v18 }
 0x2cc   : > { %1404 = vmatprep.subr.bf16.mxu1 %v1291_v1 }
 0x2cd   : > { %1405 = vmatpush2.bf16.msra.mxu1 %v1290_v57 }
 0x2ce   : > { %v1246_v59 = vpop.permute.xlu0 %1245  ;;  %2039 = vmatprep.subr.mxu1 %v2241_v32 }
 0x2cf   : > { %v1288_v37 = vsel %vm1255_vm2, %v1246_v59, %v1248_v22 }
 0x2d0   : > { %1362 = vmatpush2.bf16.msra.mxu0 %v1288_v37  ;;  %1407 = vmatmul.mubr.bf16.vlgmr.msra.gmra.mxu1 %v2200_v35 }
 0x2d1   : > { %2040 = vmatpush3.msra.mxu1 %v2241_v32  ;;  %2001 = vmatprep.subr.mxu0 %v2241_v32 }
 0x2d2   : > { %2041 = vmatprep.subr.mxu1 %v2241_v32 }
 0x2d3   : > { %1364 = vmatmul.mubr.bf16.vlgmr.msra.gmra.mxu0 %v2200_v35  ;;  %2042 = vmatpush3.msra.mxu1 %v2241_v32 }
 0x2d4   : > { %2002 = vmatpush3.msra.mxu0 %v2241_v32  ;;  %2043 = vmatprep.subr.mxu1 %v2241_v32 }
 0x2d5   : > { %2003 = vmatprep.subr.mxu0 %v2241_v32  ;;  %2044 = vmatpush3.msra.mxu1 %v2241_v32 }
 0x2d6   : > { %2004 = vmatpush3.msra.mxu0 %v2241_v32  ;;  %2045 = vmatprep.subr.mxu1 %v2241_v32 }
 0x2d7   : > { %2005 = vmatprep.subr.mxu0 %v2241_v32  ;;  %2046 = vmatpush3.msra.mxu1 %v2241_v32 }
 0x2d8   : > { %2006 = vmatpush3.msra.mxu0 %v2241_v32  ;;  %2047 = vmatprep.subr.mxu1 %v2241_v32 }
 0x2d9   : > { %2007 = vmatprep.subr.mxu0 %v2241_v32  ;;  %2048 = vmatpush3.msra.mxu1 %v2241_v32 }
 0x2da   : > { %2008 = vmatpush3.msra.mxu0 %v2241_v32  ;;  %2049 = vmatprep.subr.mxu1 %v2241_v32 }
 0x2db   : > { %2009 = vmatprep.subr.mxu0 %v2241_v32  ;;  %2050 = vmatpush3.msra.mxu1 %v2241_v32 }
 0x2dc   : > { %2010 = vmatpush3.msra.mxu0 %v2241_v32  ;;  %2051 = vmatprep.subr.mxu1 %v2241_v32 }
 0x2dd   : > { %2011 = vmatprep.subr.mxu0 %v2241_v32  ;;  %2052 = vmatpush3.msra.mxu1 %v2241_v32 }
 0x2de   : > { %2012 = vmatpush3.msra.mxu0 %v2241_v32  ;;  %2053 = vmatprep.subr.mxu1 %v2241_v32 }
 0x2df   : > { %2013 = vmatprep.subr.mxu0 %v2241_v32  ;;  %2054 = vmatpush3.msra.mxu1 %v2241_v32 }
 0x2e0   : > { %2014 = vmatpush3.msra.mxu0 %v2241_v32  ;;  %2055 = vmatprep.subr.mxu1 %v2241_v32 }
 0x2e1   : > { %2015 = vmatprep.subr.mxu0 %v2241_v32  ;;  %2056 = vmatpush3.msra.mxu1 %v2241_v32 }
 0x2e2   : > { %2016 = vmatpush3.msra.mxu0 %v2241_v32  ;;  %2057 = vmatprep.subr.mxu1 %v2241_v32 }
 0x2e3   : > { %2017 = vmatprep.subr.mxu0 %v2241_v32  ;;  %2058 = vmatpush3.msra.mxu1 %v2241_v32 }
 0x2e4   : > { %2018 = vmatpush3.msra.mxu0 %v2241_v32  ;;  %2059 = vmatprep.subr.mxu1 %v2241_v32 }
 0x2e5   : > { %2019 = vmatprep.subr.mxu0 %v2241_v32  ;;  %2060 = vmatpush3.msra.mxu1 %v2241_v32  ;;  %v871_v8 = vpop.f32.mrf.mxu1 }
 0x2e6   : > { %2020 = vmatpush3.msra.mxu0 %v2241_v32  ;;  %2061 = vmatprep.subr.mxu1 %v2241_v32  ;;  %v828_v56 = vpop.f32.mrf.mxu0 }
 0x2e7   : > { %2021 = vmatprep.subr.mxu0 %v2241_v32  ;;  %2062 = vmatpush3.msra.mxu1 %v2241_v32  ;;  %v873_v39 = vpop.f32.mrf.mxu1 }
 0x2e8   : > { %2022 = vmatpush3.msra.mxu0 %v2241_v32  ;;  %2063 = vmatprep.subr.mxu1 %v2241_v32  ;;  %v830_v11 = vpop.f32.mrf.mxu0 }
 0x2e9   : > { %2023 = vmatprep.subr.mxu0 %v2241_v32  ;;  %2064 = vmatpush3.msra.mxu1 %v2241_v32  ;;  %v875_v62 = vpop.f32.mrf.mxu1 }
 0x2ea   : > { %2024 = vmatpush3.msra.mxu0 %v2241_v32  ;;  %2065 = vmatprep.subr.mxu1 %v2241_v32  ;;  %v832_v36 = vpop.f32.mrf.mxu0 }
 0x2eb   : > { %2025 = vmatprep.subr.mxu0 %v2241_v32  ;;  %2066 = vmatpush3.msra.mxu1 %v2241_v32  ;;  %v877_v19 = vpop.f32.mrf.mxu1 }
 0x2ec   : > { %2026 = vmatpush3.msra.mxu0 %v2241_v32  ;;  %2067 = vmatprep.subr.mxu1 %v2241_v32  ;;  %v834_v7 = vpop.f32.mrf.mxu0 }
 0x2ed   : > { %2027 = vmatprep.subr.mxu0 %v2241_v32  ;;  %2068 = vmatpush3.msra.mxu1 %v2241_v32 }
 0x2ee   : > { %2028 = vmatpush3.msra.mxu0 %v2241_v32  ;;  %2069 = vmatprep.subr.mxu1 %v2241_v32 }
 0x2ef   : > { %2029 = vmatprep.subr.mxu0 %v2241_v32  ;;  %2070 = vmatpush3.msra.mxu1 %v2241_v32 }
 0x2f0   : > { %2030 = vmatpush3.msra.mxu0 %v2241_v32  ;;  %2115 = vmatprep.subr.mxu1 %v2241_v32 }
 0x2f1   : > { %2031 = vmatprep.subr.mxu0 %v2241_v32 }
 0x2f2   : > { %2032 = vmatpush3.msra.mxu0 %v2241_v32 }
 0x2f3   : > { %2077 = vmatprep.subr.mxu0 %v2241_v32 }
 0x334   : > { %v1089_v30 = vpop.f32.mrf.mxu0 }
 0x335   : > { %v1090_v55 = vadd.f32 %v1089_v30, %v828_v56 }
 0x336   : > { %v1091_v34 = vpop.f32.mrf.mxu0 }
 0x337   : > { %v1092_v10 = vadd.f32 %v1091_v34, %v830_v11 }
 0x338   : > { %v1132_v33 = vpop.f32.mrf.mxu1  ;;  %v1093_v41 = vpop.f32.mrf.mxu0 }
 0x339   : > { %v1133_v43 = vadd.f32 %v1132_v33, %v871_v8  ;;  %v1094_v13 = vadd.f32 %v1093_v41, %v832_v36 }
 0x33a   : > { %v1134_v20 = vpop.f32.mrf.mxu1  ;;  %v1095_v5 = vpop.f32.mrf.mxu0 }
 0x33b   : > { %v1135_v23 = vadd.f32 %v1134_v20, %v873_v39  ;;  %v1096_v58 = vadd.f32 %v1095_v5, %v834_v7 }
 0x33c   : > { %v1136_v25 = vpop.f32.mrf.mxu1 }
 0x33d   : > { %v1137_v42 = vadd.f32 %v1136_v25, %v875_v62 }
 0x33e   : > { %v1138_v45 = vpop.f32.mrf.mxu1 }
 0x33f   : > { %v1139_v28 = vadd.f32 %v1138_v45, %v877_v19 }
 0x390   : > { %v1408_v15 = vpop.f32.mrf.mxu1 }
 0x391   : > { %v3253_v61 = vadd.f32 %v1408_v15, %v1133_v43 }
 0x392   : > { %v1410_v44 = vpop.f32.mrf.mxu1 }
 0x393   : > { %1427 = vst [vmem:[%s2334_s30 + $0x10] sm:$0xff] %v3253_v61  ;;  %v1420_v54 = vadd.f32 %v1410_v44, %v1135_v23  ;;  %v1365_v3 = vpop.f32.mrf.mxu0  ;;  %v1458_v18 = vsel %vm1454_vm5, %v3253_v61, 0.0 }
 0x394   : > { %v3266_v6 = vadd.f32 %v1365_v3, %v1090_v55  ;;  %v1412_v31 = vpop.f32.mrf.mxu1  ;;  %v1619_v57 = vmul.f32 %v1458_v18, %v3253_v61 }
 0x395   : > { %1428 = vst [vmem:[%s2334_s30 + $0x18] sm:$0xff] %v1420_v54  ;;  %v3273_v49 = vadd.f32 %v1412_v31, %v1137_v42  ;;  %v1367_v4 = vpop.f32.mrf.mxu0  ;;  %1987 = vmatprep.mubr.msk.f32.mxu1 %vm1455_vm4, %v1420_v54  ;;  %v1459_v29 = vsel %vm1455_vm4, %v1420_v54, 0.0 }
 0x396   : > { %1425 = vst [vmem:[%s2334_s30] sm:$0xff] %v3266_v6  ;;  %v1418_v21 = vadd.f32 %v1367_v4, %v1092_v10  ;;  %v1414_v12 = vpop.f32.mrf.mxu1  ;;  %1988 = vmatmul.mubr.msk.f32.vlgmr.msra.gmra.mxu1 %vm1454_vm5, %v3253_v61  ;;  %v1620_v27 = vmul.f32 %v1459_v29, %v1420_v54  ;;  %v1456_v1 = vsel %vm1452_vm7, %v3266_v6, 0.0 }
 0x397   : > { %1431 = vst [vmem:[%s2334_s30 + $0x30] sm:$0xff] %v3273_v49  ;;  %v3286_v63 = vadd.f32 %v1414_v12, %v1139_v28  ;;  %2116 = vmatpush3.msra.mxu1 %v2241_v32  ;;  %v1369_v0 = vpop.f32.mrf.mxu0  ;;  %v1462_v37 = vsel %vm1454_vm5, %v3273_v49, 0.0  ;;  %v1617_v8 = vmul.f32 %v1456_v1, %v3266_v6 }
 0x398   : > { %1426 = vst [vmem:[%s2334_s30 + $0x8] sm:$0xff] %v1418_v21  ;;  %v3290_v52 = vadd.f32 %v1369_v0, %v1094_v13  ;;  %2117 = vmatprep.subr.mxu1 %v2241_v32  ;;  %1983 = vmatprep.mubr.msk.f32.mxu0 %vm1453_vm6, %v1418_v21  ;;  %v1457_v22 = vsel %vm1453_vm6, %v1418_v21, 0.0  ;;  %v1623_v39 = vmul.f32 %v1462_v37, %v3273_v49 }
 0x399   : > { %1432 = vst [vmem:[%s2334_s30 + $0x38] sm:$0xff] %v3286_v63  ;;  %2118 = vmatpush3.msra.mxu1 %v2241_v32  ;;  %v1371_v26 = vpop.f32.mrf.mxu0  ;;  %1984 = vmatmul.mubr.msk.f32.vlgmr.msra.gmra.mxu0 %vm1452_vm7, %v3266_v6  ;;  %v1618_v9 = vmul.f32 %v1457_v22, %v1418_v21  ;;  %v1463_v48 = vsel %vm1455_vm4, %v3286_v63, 0.0 }
 0x39a   : > { %1429 = vst [vmem:[%s2334_s30 + $0x20] sm:$0xff] %v3290_v52  ;;  %v3306_v53 = vadd.f32 %v1371_v26, %v1096_v58  ;;  %1989 = vmatprep.mubr.msk.f32.mxu1 %vm1455_vm4, %v3286_v63  ;;  %2078 = vmatpush3.msra.mxu0 %v2241_v32  ;;  %v1624_v35 = vmul.f32 %v1463_v48, %v3286_v63  ;;  %v1460_v11 = vsel %vm1452_vm7, %v3290_v52, 0.0  ;;  %v1813_v3 = vld [vmem:[%s2334_s30 + $0x10] sm:$0xff] (%p2304_p4) }
 0x39b   : > { %2119 = vmatprep.subr.mxu1 %v2241_v32  ;;  %1990 = vmatmul.mubr.msk.f32.gmra.mxu1 %vm1454_vm5, %v3273_v49  ;;  %v1621_v62 = vmul.f32 %v1460_v11, %v3290_v52 }
 0x39c   : > { %1430 = vst [vmem:[%s2334_s30 + $0x28] sm:$0xff] %v3306_v53  ;;  %2079 = vmatprep.subr.mxu0 %v2241_v32  ;;  %2120 = vmatpush3.msra.mxu1 %v2241_v32  ;;  %v1461_v59 = vsel %vm1453_vm6, %v3306_v53, 0.0  ;;  %v1815_v10 = vld [vmem:[%s2334_s30 + $0x18] sm:$0xff] (%p2304_p4) }
 0x39d   : > { %2080 = vmatpush3.msra.mxu0 %v2241_v32  ;;  %2121 = vmatprep.subr.mxu1 %v2241_v32  ;;  %v1622_v56 = vmul.f32 %v1461_v59, %v3306_v53  ;;  %v1809_v42 = vld [vmem:[%s2334_s30] sm:$0xff] (%p2304_p4) }
 0x39e   : > { %1764 = vmatprep.mubr.f32.mxu1 %v1620_v27  ;;  %1985 = vmatprep.mubr.msk.f32.mxu0 %vm1453_vm6, %v3306_v53  ;;  %v1821_v16 = vld [vmem:[%s2334_s30 + $0x30] sm:$0xff] (%p2304_p4) }
 0x39f   : > { %2081 = vmatprep.subr.mxu0 %v2241_v32  ;;  %2122 = vmatpush3.msra.mxu1 %v2241_v32  ;;  %v1811_v54 = vld [vmem:[%s2334_s30 + $0x8] sm:$0xff] (%p2304_p4) }
 0x3a0   : > { %1986 = vmatmul.mubr.msk.f32.gmra.mxu0 %vm1452_vm7, %v3290_v52  ;;  %2123 = vmatprep.subr.mxu1 %v2241_v32  ;;  %v1823_v47 = vld [vmem:[%s2334_s30 + $0x38] sm:$0xff] (%p2304_p4) }
 0x3a1   : > { %2082 = vmatpush3.msra.mxu0 %v2241_v32  ;;  %1689 = vmatprep.mubr.f32.mxu0 %v1618_v9  ;;  %v1817_v6 = vld [vmem:[%s2334_s30 + $0x20] sm:$0xff] (%p2304_p4) }
 0x3a2   : > { %2083 = vmatprep.subr.mxu0 %v2241_v32  ;;  %2124 = vmatpush3.msra.mxu1 %v2241_v32 }
 0x3a3   : > { %2084 = vmatpush3.msra.mxu0 %v2241_v32  ;;  %2125 = vmatprep.subr.mxu1 %v2241_v32  ;;  %v1819_v31 = vld [vmem:[%s2334_s30 + $0x28] sm:$0xff] (%p2304_p4) }
 0x3a4   : > { %2085 = vmatprep.subr.mxu0 %v2241_v32  ;;  %2126 = vmatpush3.msra.mxu1 %v2241_v32 }
 0x3a5   : > { %2086 = vmatpush3.msra.mxu0 %v2241_v32  ;;  %2127 = vmatprep.subr.mxu1 %v2241_v32 }
 0x3a6   : > { %2087 = vmatprep.subr.mxu0 %v2241_v32  ;;  %2128 = vmatpush3.msra.mxu1 %v2241_v32 }
 0x3a7   : > { %2088 = vmatpush3.msra.mxu0 %v2241_v32  ;;  %2129 = vmatprep.subr.mxu1 %v2241_v32 }
 0x3a8   : > { %2089 = vmatprep.subr.mxu0 %v2241_v32  ;;  %2130 = vmatpush3.msra.mxu1 %v2241_v32 }
 0x3a9   : > { %2090 = vmatpush3.msra.mxu0 %v2241_v32  ;;  %2131 = vmatprep.subr.mxu1 %v2241_v32 }
 0x3aa   : > { %2091 = vmatprep.subr.mxu0 %v2241_v32  ;;  %2132 = vmatpush3.msra.mxu1 %v2241_v32 }
 0x3ab   : > { %2092 = vmatpush3.msra.mxu0 %v2241_v32  ;;  %2133 = vmatprep.subr.mxu1 %v2241_v32 }
 0x3ac   : > { %2093 = vmatprep.subr.mxu0 %v2241_v32  ;;  %2134 = vmatpush3.msra.mxu1 %v2241_v32 }
 0x3ad   : > { %2094 = vmatpush3.msra.mxu0 %v2241_v32  ;;  %2135 = vmatprep.subr.mxu1 %v2241_v32 }
 0x3ae   : > { %2095 = vmatprep.subr.mxu0 %v2241_v32  ;;  %2136 = vmatpush3.msra.mxu1 %v2241_v32 }
 0x3af   : > { %2096 = vmatpush3.msra.mxu0 %v2241_v32  ;;  %2137 = vmatprep.subr.mxu1 %v2241_v32 }
 0x3b0   : > { %2097 = vmatprep.subr.mxu0 %v2241_v32  ;;  %2138 = vmatpush3.msra.mxu1 %v2241_v32 }
 0x3b1   : > { %2098 = vmatpush3.msra.mxu0 %v2241_v32  ;;  %2139 = vmatprep.subr.mxu1 %v2241_v32 }
 0x3b2   : > { %2099 = vmatprep.subr.mxu0 %v2241_v32  ;;  %2140 = vmatpush3.msra.mxu1 %v2241_v32 }
 0x3b3   : > { %2100 = vmatpush3.msra.mxu0 %v2241_v32  ;;  %2141 = vmatprep.subr.mxu1 %v2241_v32 }
 0x3b4   : > { %2101 = vmatprep.subr.mxu0 %v2241_v32  ;;  %2142 = vmatpush3.msra.mxu1 %v2241_v32 }
 0x3b5   : > { %2102 = vmatpush3.msra.mxu0 %v2241_v32  ;;  %2143 = vmatprep.subr.mxu1 %v2241_v32 }
 0x3b6   : > { %2103 = vmatprep.subr.mxu0 %v2241_v32  ;;  %2144 = vmatpush3.msra.mxu1 %v2241_v32 }
 0x3b7   : > { %2104 = vmatpush3.msra.mxu0 %v2241_v32  ;;  %2145 = vmatprep.subr.mxu1 %v2241_v32 }
 0x3b8   : > { %2105 = vmatprep.subr.mxu0 %v2241_v32  ;;  %2146 = vmatpush3.msra.mxu1 %v2241_v32 }
 0x3b9   : > { %2106 = vmatpush3.msra.mxu0 %v2241_v32  ;;  %1765 = vmatmul.mubr.f32.vlgmr.msra.gmra.mxu1 %v1619_v57 }
 0x3ba   : > { %2107 = vmatprep.subr.mxu0 %v2241_v32  ;;  %1769 = vmatprep.mubr.f32.mxu1 %v1624_v35 }
 0x3bb   : > { %2108 = vmatpush3.msra.mxu0 %v2241_v32 }
 0x3bc   : > { %1690 = vmatmul.mubr.f32.vlgmr.msra.gmra.mxu0 %v1617_v8 }
 0x3bd   : > { %1694 = vmatprep.mubr.f32.mxu0 %v1622_v56  ;;  %1770 = vmatmul.mubr.f32.gmra.mxu1 %v1623_v39 }
 0x3c0   : > { %1695 = vmatmul.mubr.f32.gmra.mxu0 %v1621_v62 }
 0x456   : > { %v2071_v36 = vpop.f32.mrf.mxu1 }
 0x458   : > { %v2072_v19 = vpop.f32.mrf.mxu1 }
 0x459   : > { %v2033_v7 = vpop.f32.mrf.mxu0  ;;  %v2073_v33 = vadd.f32 %v2072_v19, %v2071_v36 }
 0x45b   : > { %v2034_v32 = vpop.f32.mrf.mxu0  ;;  %v2074_v30 = vpop.f32.mrf.mxu1 }
 0x45c   : > { %v2035_v20 = vadd.f32 %v2034_v32, %v2033_v7 }
 0x45d   : > { %v2075_v34 = vpop.f32.mrf.mxu1 }
 0x45e   : > { %v1606_v2 = vadd.f32 %v2073_v33, %v2035_v20  ;;  %v2076_v38 = vadd.f32 %v2075_v34, %v2074_v30 }
 0x460   : > { %1615 = vst.msk [vmem:[%s2314_s20] sm:$0xff] %vm1614_vm8, %v1606_v2  ;;  %v2036_v25 = vpop.f32.mrf.mxu0 }
 0x462   : > { %v2037_v46 = vpop.f32.mrf.mxu0 }
 0x463   : > { %v2038_v41 = vadd.f32 %v2037_v46, %v2036_v25 }
 0x465   : > { %v1611_v45 = vadd.f32 %v2076_v38, %v2038_v41 }
 0x467   : > { %1616 = vst.msk [vmem:[%s2314_s20 + $0x8] sm:$0xff] %vm1614_vm8, %v1611_v45  ;;  %s2000_s20 = sshll.u32 (%p2304_p4), %s2293_s27, 5 }
 0x479   : > { %v2147_v14 = vpop.f32.mrf.mxu1 }
 0x47b   : > { %v2148_v40 = vpop.f32.mrf.mxu1 }
 0x47c   : > { %v2109_v17 = vpop.f32.mrf.mxu0  ;;  %v2149_v23 = vadd.f32 %v2148_v40, %v2147_v14 }
 0x47d   : > { %v2150_v43 = vpop.f32.mrf.mxu1 }
 0x47e   : > { %v2110_v15 = vpop.f32.mrf.mxu0 }
 0x47f   : > { %v2111_v5 = vadd.f32 %v2110_v15, %v2109_v17  ;;  %v2151_v61 = vpop.f32.mrf.mxu1 }
 0x480   : > { %v2112_v60 = vpop.f32.mrf.mxu0  ;;  %v2152_v51 = vadd.f32 %v2151_v61, %v2150_v43 }
 0x481   : > { %v1767_v50 = vadd.f32 %v2149_v23, %v2111_v5 }
 0x482   : > { %v2113_v24 = vpop.f32.mrf.mxu0 }
 0x483   : > { %1775 = vst.msk [vmem:[%s2319_s23] sm:$0xff] %vm1614_vm8, %v1767_v50  ;;  %v2114_v55 = vadd.f32 %v2113_v24, %v2112_v60  ;;  %1793 = sbr.rel (!%p2304_p4) target bundleno = 1164 (0x48c), region = 100 }
 0x485   : > { %v1772_v44 = vadd.f32 %v2152_v51, %v2114_v55 }
 0x487   : > { %1776 = vst.msk [vmem:[%s2319_s23 + $0x8] sm:$0xff] %vm1614_vm8, %v1772_v44  ;;  %s1796_s23 = scalar_lea.vmem (%p2304_p4), %s3444_s5, %s2000_s20 }
 0x488   : > { %1810 = vst [vmem:[%s1796_s23] sm:$0xff] %v1809_v42  ;;  %1812 = vst [vmem:[%s1796_s23 + $0x8] sm:$0xff] %v1811_v54 }
 0x489   : > { %1814 = vst [vmem:[%s1796_s23 + $0x10] sm:$0xff] %v1813_v3  ;;  %1816 = vst [vmem:[%s1796_s23 + $0x18] sm:$0xff] %v1815_v10 }
 0x48a   : > { %1818 = vst [vmem:[%s1796_s23 + $0x80] sm:$0xff] %v1817_v6  ;;  %1820 = vst [vmem:[%s1796_s23 + $0x88] sm:$0xff] %v1819_v31 }
 0x48b   : > { %1822 = vst [vmem:[%s1796_s23 + $0x90] sm:$0xff] %v1821_v16  ;;  %1824 = vst [vmem:[%s1796_s23 + $0x98] sm:$0xff] %v1823_v47 }
 0x48c PF: > { %p15_p8 = scmp.ge.s32.totalorder %s2295_s28, 6   ;;  %s3503_s24 = smov %s2223_s25 }
 0x48d   : > { %s3504_s25 = smov %s2302_s8  ;;  %s3505_s26 = smov %s2295_s28 }
 0x48e   :  { %17 = sbr.rel (!%p15_p8) target bundleno = 2 (0x2), region = 194 }
 0x493   :  { %1862 = vsyncmov [#allocation4] }
 0x496   :  { %s1863_s27 = vpop.sfrf %1862 }
 0x497   :  { %p1996_p9 = scmp.ne.s32.totalorder %s1863_s27, 0 }
 0x499   :  { %1867 = shalt.err (%p1996_p9)  }
 0x49a   :  { %1869 = vsyncmov [#allocation4 + $0x1] }
 0x49d   :  { %s1870_s9 = vpop.sfrf %1869 }
 0x49e   :  { %p1997_p10 = scmp.ne.s32.totalorder %s1870_s9, 0 }
 0x4a0   :  { %1874 = shalt.err (%p1997_p10)  }

</bundles_post_ra>
